<compile_context>
chip_gen: v7x
topology: tpu7x:2x2x1
jax: 0.10.0
libtpu: 0.0.40
codegen_flags: <defaults>
</compile_context>

<pallas_src>
import math
import functools

import jax
import jax.numpy as jnp
from jax.experimental import pallas as pl
from jax.experimental.pallas import tpu as pltpu


MXU_DTYPE = jnp.bfloat16                    # matmul operand dtype (f32 accum)
LN_EPS = 1e-5
BN_SCALE = 1.0 / math.sqrt(1.0 + 1e-5)      # BatchNorm1d eval, default stats


# ----------------------------------------------------------------------------
# In-kernel helpers
# ----------------------------------------------------------------------------
def _mm(a, b):
    """MXU matmul: bf16 operands, f32 accumulation."""
    return jnp.dot(a.astype(MXU_DTYPE), b.astype(MXU_DTYPE),
                   preferred_element_type=jnp.float32)


def _gelu(x):
    # PyTorch nn.GELU() default = exact erf formulation (kept in f32).
    return 0.5 * x * (1.0 + jax.lax.erf(x * (1.0 / math.sqrt(2.0))))


def _layernorm(x, g, b, eps=LN_EPS):
    mean = jnp.mean(x, axis=-1, keepdims=True)
    cent = x - mean
    var = jnp.mean(cent * cent, axis=-1, keepdims=True)
    return cent * jax.lax.rsqrt(var + eps) * g + b


# ----------------------------------------------------------------------------
# Kernel 1: fused transformer block (pre-LN), one grid step per batch element
# ----------------------------------------------------------------------------
def _tf_block_kernel(x_ref, ln1g_ref, ln1b_ref, wqkv_ref, bqkv_ref,
                     wo_ref, bo_ref, ln2g_ref, ln2b_ref,
                     ffw1_ref, ffb1_ref, ffw2_ref, ffb2_ref, o_ref,
                     *, heads):
    x = x_ref[0]                                  # (L1, D) f32
    L1, D = x.shape
    dh = D // heads
    scale = 1.0 / math.sqrt(dh)

    # ---- self-attention sub-layer (pre-LN) ---------------------------------
    h = _layernorm(x, ln1g_ref[...], ln1b_ref[...])
    qkv = _mm(h, wqkv_ref[...]) + bqkv_ref[...]   # (L1, 3D) fused QKV matmul
    wo = wo_ref[...]
    attn = jnp.zeros((L1, D), jnp.float32)
    for hd in range(heads):                       # static, small head count
        lo = hd * dh
        qh = qkv[:, lo:lo + dh]
        kh = qkv[:, D + lo:D + lo + dh]
        vh = qkv[:, 2 * D + lo:2 * D + lo + dh]
        s = _mm(qh, kh.T) * scale                 # (L1, L1)
        s = s - jnp.max(s, axis=-1, keepdims=True)
        p = jnp.exp(s)
        p = p * pl.reciprocal(jnp.sum(p, axis=-1, keepdims=True), approx=True)
        # concat_h(head_h) @ Wo  ==  sum_h head_h @ Wo[h*dh:(h+1)*dh, :]
        attn = attn + _mm(_mm(p, vh), wo[lo:lo + dh, :])
    x = x + attn + bo_ref[...]                    # dropout = identity (eval)

    # ---- feed-forward sub-layer (pre-LN) -----------------------------------
    h = _layernorm(x, ln2g_ref[...], ln2b_ref[...])
    ff = _gelu(_mm(h, ffw1_ref[...]) + ffb1_ref[...])
    ff = _mm(ff, ffw2_ref[...]) + ffb2_ref[...]
    o_ref[0] = (x + ff).astype(o_ref.dtype)


def transformer_block(p, x, heads):
    """x: (B, L1, D) -> (B, L1, D); one pallas_call for the whole block."""
    B, L1, D = x.shape
    F = p["ff_w1"].shape[1]
    kernel = functools.partial(_tf_block_kernel, heads=heads)
    row = lambda n: pl.BlockSpec((1, n), lambda b: (0, 0))
    mat = lambda m, n: pl.BlockSpec((m, n), lambda b: (0, 0))
    return pl.pallas_call(
        kernel,
        out_shape=jax.ShapeDtypeStruct((B, L1, D), jnp.float32),
        grid=(B,),
        in_specs=[
            pl.BlockSpec((1, L1, D), lambda b: (b, 0, 0)),
            row(D), row(D),               # ln1 gamma / beta
            mat(D, 3 * D), row(3 * D),    # fused Wqkv / bqkv
            mat(D, D), row(D),            # Wo / bo
            row(D), row(D),               # ln2 gamma / beta
            mat(D, F), row(F),            # FFN W1 / b1
            mat(F, D), row(D),            # FFN W2 / b2
        ],
        out_specs=pl.BlockSpec((1, L1, D), lambda b: (b, 0, 0)),
        compiler_params=pltpu.CompilerParams(
            dimension_semantics=("parallel",)),
    )(
        x,
        p["ln1_g"].reshape(1, D), p["ln1_b"].reshape(1, D),
        p["wqkv"], p["bqkv"].reshape(1, 3 * D),
        p["wo"], p["bo"].reshape(1, D),
        p["ln2_g"].reshape(1, D), p["ln2_b"].reshape(1, D),
        p["ff_w1"], p["ff_b1"].reshape(1, F),
        p["ff_w2"], p["ff_b2"].reshape(1, D),
    )


# ----------------------------------------------------------------------------
# Kernel 2: fused head = MLP_Layers + CrossAttention + residual + ProjLayer
#           + sigmoid, single launch
# ----------------------------------------------------------------------------
def _head_kernel(*refs, n_mlp):
    it = iter(refs)
    det_ref, xcls_ref = next(it), next(it)
    fcw, fcb = next(it), next(it)
    mlp = [(next(it), next(it)) for _ in range(n_mlp)]
    wv, bv, wp_ca, bp_ca = next(it), next(it), next(it), next(it)
    p1w, p1b, p2w, p2b, p3w, p3b, pw, pb = (next(it) for _ in range(8))
    o_ref = next(it)

    # ---- MLP_Layers on detections (Dropout = identity in eval) -------------
    h = _gelu(_mm(det_ref[...], fcw[...]) + fcb[...])
    for w, b in mlp:
        h = _gelu(_mm(h, w[...]) + b[...])

    # ---- CrossAttention (query len == key len == 1) -------------------------
    # softmax over a single key == 1 exactly, so attention output == value(ctx)
    # reshaped back; q/k projections cancel out of the math.
    v = _mm(h, wv[...]) + bv[...]
    cross = _mm(v, wp_ca[...]) + bp_ca[...]
    x = xcls_ref[...] + cross

    # ---- ProjLayer: drop(gelu(bn(linear)))  x3, then bn4(proj) --------------
    # BatchNorm1d folded to a pure 1/sqrt(1+eps) scale (eval, default stats).
    y = _gelu((_mm(x, p1w[...]) + p1b[...]) * BN_SCALE)
    y = _gelu((_mm(y, p2w[...]) + p2b[...]) * BN_SCALE)
    y = _gelu((_mm(y, p3w[...]) + p3b[...]) * BN_SCALE)
    score = (_mm(y, pw[...]) + pb[...]) * BN_SCALE

    # ---- sigmoid -------------------------------------------------------------
    o_ref[...] = (1.0 / (1.0 + jnp.exp(-score))).astype(o_ref.dtype)


def lcter_head(fc_p, ca_p, proj_p, x_cls, detections):
    B, _ = x_cls.shape
    args = [detections, x_cls, fc_p["fc_w"], fc_p["fc_b"].reshape(1, -1)]
    for w, b in fc_p["mlp"]:
        args += [w, b.reshape(1, -1)]
    args += [ca_p["wv"], ca_p["bv"].reshape(1, -1),
             ca_p["wp"], ca_p["bp"].reshape(1, -1)]
    args += [proj_p["w1"], proj_p["b1"].reshape(1, -1),
             proj_p["w2"], proj_p["b2"].reshape(1, -1),
             proj_p["w3"], proj_p["b3"].reshape(1, -1),
             proj_p["wp"], proj_p["bp"].reshape(1, -1)]
    kernel = functools.partial(_head_kernel, n_mlp=len(fc_p["mlp"]))
    in_specs = [pl.BlockSpec(a.shape, lambda i, n=a.ndim: (0,) * n)
                for a in args]
    return pl.pallas_call(
        kernel,
        out_shape=jax.ShapeDtypeStruct((B, 1), jnp.float32),
        grid=(1,),
        in_specs=in_specs,
        out_specs=pl.BlockSpec((B, 1), lambda i: (0, 0)),
    )(*args)


# ----------------------------------------------------------------------------
# Forward pass (glue in plain JAX: position-emb add, CLS concat, CLS slice)
# ----------------------------------------------------------------------------
def lcter_forward(params, seq, detections, heads):
    B, L, D = seq.shape
    seq = seq + params["pos"][None, :L, :]                         # PositionEmb
    cls = jnp.broadcast_to(params["seq_emb"][None, :, :], (B, 1, D))
    x = jnp.concatenate([cls, seq], axis=1)                        # (B, L+1, D)
    for blk in params["tf"]:
        x = transformer_block(blk, x, heads)
    x_cls = x[:, 0, :]                                             # (B, D)
    return lcter_head(params["fc"], params["ca"], params["proj"],
                      x_cls, detections)                           # (B, 1), post-sigmoid


# ----------------------------------------------------------------------------
# Deterministic parameter construction (xavier-normal weights, zero biases)
# ----------------------------------------------------------------------------
def xavier(key, fan_in, fan_out):
    std = math.sqrt(2.0 / (fan_in + fan_out))
    return jax.random.normal(key, (fan_in, fan_out), jnp.float32) * std


def build_params(key, cfg):
    D = 2 * cfg["hidden_units"]
    ks = iter(jax.random.split(key, 64))
    zeros = lambda n: jnp.zeros((n,), jnp.float32)
    ones = lambda n: jnp.ones((n,), jnp.float32)

    fc = {
        "fc_w": xavier(next(ks), cfg["LLM_size"], D), "fc_b": zeros(D),
        "mlp": [(xavier(next(ks), D, D), zeros(D)) for _ in range(cfg["dnn_layer"])],
    }

    tf = []
    for _ in range(cfg["block_num"]):
        wq = xavier(next(ks), D, D)
        wk = xavier(next(ks), D, D)
        wv = xavier(next(ks), D, D)
        tf.append({
            "wqkv": jnp.concatenate([wq, wk, wv], axis=1), "bqkv": zeros(3 * D),
            "wo": xavier(next(ks), D, D), "bo": zeros(D),
            "ln1_g": ones(D), "ln1_b": zeros(D),
            "ln2_g": ones(D), "ln2_b": zeros(D),
            "ff_w1": xavier(next(ks), D, cfg["ffd_hidden"]),
            "ff_b1": zeros(cfg["ffd_hidden"]),
            "ff_w2": xavier(next(ks), cfg["ffd_hidden"], D), "ff_b2": zeros(D),
        })

    # CrossAttention: wq/bq/wk/bk are kept for structural fidelity but cancel
    # out of the forward math for length-1 query/context (softmax over one key
    # is exactly 1), so the kernel only consumes value + proj.
    ca = {
        "wq": xavier(next(ks), D, D), "bq": zeros(D),
        "wk": xavier(next(ks), D, D), "bk": zeros(D),
        "wv": xavier(next(ks), D, D), "bv": zeros(D),
        "wp": xavier(next(ks), D, D), "bp": zeros(D),
    }

    hdim = 128
    proj = {
        "w1": xavier(next(ks), D, 10 * hdim), "b1": zeros(10 * hdim),
        "w2": xavier(next(ks), 10 * hdim, 4 * hdim), "b2": zeros(4 * hdim),
        "w3": xavier(next(ks), 4 * hdim, hdim), "b3": zeros(hdim),
        "wp": xavier(next(ks), hdim, 1), "bp": zeros(1),
    }

    return {
        "fc": fc, "tf": tf, "ca": ca, "proj": proj,
        "seq_emb": xavier(next(ks), 1, D),              # nn.Embedding(1, D)
        "pos": xavier(next(ks), cfg["max_len"], D),     # learned PositionEmb
    }


# ----------------------------------------------------------------------------
if __name__ == "__main__":
    cfg = dict(
        LLM_size=64,
        hidden_units=16,     # -> model dim D = 32
        heads=4,
        ffd_hidden=64,
        dnn_layer=1,
        dropout_rate=0.1,
        block_num=1,
        max_len=8,
    )
    B, L, D = 2, cfg["max_len"], 2 * cfg["hidden_units"]

    root = jax.random.PRNGKey(0)
    k_params, k_seq, k_det = jax.random.split(root, 3)
    params = build_params(k_params, cfg)

    seq = jax.random.normal(k_seq, (B, L, D), jnp.float32)
    detections = jax.random.normal(k_det, (B, cfg["LLM_size"]), jnp.float32)

    fwd = jax.jit(functools.partial(lcter_forward, heads=cfg["heads"]))
    out = fwd(params, seq, detections)
    out = jax.block_until_ready(out)
    assert out.shape == (B, 1), out.shape
    assert bool(jnp.all(jnp.isfinite(out)))
    assert bool(jnp.all((out >= 0.0) & (out <= 1.0)))
    print("KERNEL_OK")
</pallas_src>

<mosaic_0001>
module attributes {stable_mosaic.version = 11 : i64} {
  func.func @_head_kernel(%arg0: i32, %arg1: memref<2x64xf32, #tpu.memory_space<vmem>>, %arg2: memref<2x32xf32, #tpu.memory_space<vmem>>, %arg3: memref<64x32xf32, #tpu.memory_space<vmem>>, %arg4: memref<1x32xf32, #tpu.memory_space<vmem>>, %arg5: memref<32x32xf32, #tpu.memory_space<vmem>>, %arg6: memref<1x32xf32, #tpu.memory_space<vmem>>, %arg7: memref<32x32xf32, #tpu.memory_space<vmem>>, %arg8: memref<1x32xf32, #tpu.memory_space<vmem>>, %arg9: memref<32x32xf32, #tpu.memory_space<vmem>>, %arg10: memref<1x32xf32, #tpu.memory_space<vmem>>, %arg11: memref<32x1280xf32, #tpu.memory_space<vmem>>, %arg12: memref<1x1280xf32, #tpu.memory_space<vmem>>, %arg13: memref<1280x512xf32, #tpu.memory_space<vmem>>, %arg14: memref<1x512xf32, #tpu.memory_space<vmem>>, %arg15: memref<512x128xf32, #tpu.memory_space<vmem>>, %arg16: memref<1x128xf32, #tpu.memory_space<vmem>>, %arg17: memref<128x1xf32, #tpu.memory_space<vmem>>, %arg18: memref<1x1xf32, #tpu.memory_space<vmem>>, %arg19: memref<2x1xf32, #tpu.memory_space<vmem>>) attributes {dimension_semantics = [#tpu.dimension_semantics<arbitrary>], iteration_bounds = array<i64: 1>, scalar_prefetch = 0 : i64, scratch_operands = 0 : i64, tpu.core_type = #tpu.core_type<tc>, window_params = [{pipeline_mode = #tpu.pipeline_mode<synchronous>, transform_indices = @transform_0, window_bounds = array<i64: 2, 64>}, {pipeline_mode = #tpu.pipeline_mode<synchronous>, transform_indices = @transform_1, window_bounds = array<i64: 2, 32>}, {pipeline_mode = #tpu.pipeline_mode<synchronous>, transform_indices = @transform_2, window_bounds = array<i64: 64, 32>}, {pipeline_mode = #tpu.pipeline_mode<synchronous>, transform_indices = @transform_3, window_bounds = array<i64: 1, 32>}, {pipeline_mode = #tpu.pipeline_mode<synchronous>, transform_indices = @transform_4, window_bounds = array<i64: 32, 32>}, {pipeline_mode = #tpu.pipeline_mode<synchronous>, transform_indices = @transform_5, window_bounds = array<i64: 1, 32>}, {pipeline_mode = #tpu.pipeline_mode<synchronous>, transform_indices = @transform_6, window_bounds = array<i64: 32, 32>}, {pipeline_mode = #tpu.pipeline_mode<synchronous>, transform_indices = @transform_7, window_bounds = array<i64: 1, 32>}, {pipeline_mode = #tpu.pipeline_mode<synchronous>, transform_indices = @transform_8, window_bounds = array<i64: 32, 32>}, {pipeline_mode = #tpu.pipeline_mode<synchronous>, transform_indices = @transform_9, window_bounds = array<i64: 1, 32>}, {pipeline_mode = #tpu.pipeline_mode<synchronous>, transform_indices = @transform_10, window_bounds = array<i64: 32, 1280>}, {pipeline_mode = #tpu.pipeline_mode<synchronous>, transform_indices = @transform_11, window_bounds = array<i64: 1, 1280>}, {pipeline_mode = #tpu.pipeline_mode<synchronous>, transform_indices = @transform_12, window_bounds = array<i64: 1280, 512>}, {pipeline_mode = #tpu.pipeline_mode<synchronous>, transform_indices = @transform_13, window_bounds = array<i64: 1, 512>}, {pipeline_mode = #tpu.pipeline_mode<synchronous>, transform_indices = @transform_14, window_bounds = array<i64: 512, 128>}, {pipeline_mode = #tpu.pipeline_mode<synchronous>, transform_indices = @transform_15, window_bounds = array<i64: 1, 128>}, {pipeline_mode = #tpu.pipeline_mode<synchronous>, transform_indices = @transform_16, window_bounds = array<i64: 128, 1>}, {pipeline_mode = #tpu.pipeline_mode<synchronous>, transform_indices = @transform_17, window_bounds = array<i64: 1, 1>}, {pipeline_mode = #tpu.pipeline_mode<synchronous>, transform_indices = @transform_18, window_bounds = array<i64: 2, 1>}]} {
    %c0 = arith.constant 0 : index
    %c0_0 = arith.constant 0 : index
    %0 = vector.load %arg1[%c0, %c0_0] : memref<2x64xf32, #tpu.memory_space<vmem>>, vector<2x64xf32>
    %c0_1 = arith.constant 0 : index
    %c0_2 = arith.constant 0 : index
    %1 = vector.load %arg3[%c0_1, %c0_2] : memref<64x32xf32, #tpu.memory_space<vmem>>, vector<64x32xf32>
    %2 = arith.truncf %0 : vector<2x64xf32> to vector<2x64xbf16>
    %3 = arith.truncf %1 : vector<64x32xf32> to vector<64x32xbf16>
    %cst = arith.constant dense<0.000000e+00> : vector<2x32xf32>
    %4 = tpu.matmul %2, %3, %cst {dimension_numbers = #tpu.dot_dimension_numbers<[1], [0], [0], [1], [0, 0, 1, 1], [], []>} : vector<2x64xbf16>, vector<64x32xbf16>, vector<2x32xf32> -> vector<2x32xf32>
    %c0_3 = arith.constant 0 : index
    %c0_4 = arith.constant 0 : index
    %5 = vector.load %arg4[%c0_3, %c0_4] : memref<1x32xf32, #tpu.memory_space<vmem>>, vector<1x32xf32>
    %6 = vector.broadcast %5 : vector<1x32xf32> to vector<2x32xf32>
    %7 = arith.addf %4, %6 : vector<2x32xf32>
    %cst_5 = arith.constant 5.000000e-01 : f32
    %8 = vector.broadcast %cst_5 : f32 to vector<2x32xf32>
    %9 = arith.mulf %8, %7 : vector<2x32xf32>
    %cst_6 = arith.constant 0.707106769 : f32
    %10 = vector.broadcast %cst_6 : f32 to vector<2x32xf32>
    %11 = arith.mulf %7, %10 : vector<2x32xf32>
    %12 = math.erf %11 : vector<2x32xf32>
    %cst_7 = arith.constant 1.000000e+00 : f32
    %13 = vector.broadcast %cst_7 : f32 to vector<2x32xf32>
    %14 = arith.addf %13, %12 : vector<2x32xf32>
    %15 = arith.mulf %9, %14 : vector<2x32xf32>
    %c0_8 = arith.constant 0 : index
    %c0_9 = arith.constant 0 : index
    %16 = vector.load %arg5[%c0_8, %c0_9] : memref<32x32xf32, #tpu.memory_space<vmem>>, vector<32x32xf32>
    %17 = arith.truncf %15 : vector<2x32xf32> to vector<2x32xbf16>
    %18 = arith.truncf %16 : vector<32x32xf32> to vector<32x32xbf16>
    %cst_10 = arith.constant dense<0.000000e+00> : vector<2x32xf32>
    %19 = tpu.matmul %17, %18, %cst_10 {dimension_numbers = #tpu.dot_dimension_numbers<[1], [0], [0], [1], [0, 0, 1, 1], [], []>} : vector<2x32xbf16>, vector<32x32xbf16>, vector<2x32xf32> -> vector<2x32xf32>
    %c0_11 = arith.constant 0 : index
    %c0_12 = arith.constant 0 : index
    %20 = vector.load %arg6[%c0_11, %c0_12] : memref<1x32xf32, #tpu.memory_space<vmem>>, vector<1x32xf32>
    %21 = vector.broadcast %20 : vector<1x32xf32> to vector<2x32xf32>
    %22 = arith.addf %19, %21 : vector<2x32xf32>
    %cst_13 = arith.constant 5.000000e-01 : f32
    %23 = vector.broadcast %cst_13 : f32 to vector<2x32xf32>
    %24 = arith.mulf %23, %22 : vector<2x32xf32>
    %cst_14 = arith.constant 0.707106769 : f32
    %25 = vector.broadcast %cst_14 : f32 to vector<2x32xf32>
    %26 = arith.mulf %22, %25 : vector<2x32xf32>
    %27 = math.erf %26 : vector<2x32xf32>
    %cst_15 = arith.constant 1.000000e+00 : f32
    %28 = vector.broadcast %cst_15 : f32 to vector<2x32xf32>
    %29 = arith.addf %28, %27 : vector<2x32xf32>
    %30 = arith.mulf %24, %29 : vector<2x32xf32>
    %c0_16 = arith.constant 0 : index
    %c0_17 = arith.constant 0 : index
    %31 = vector.load %arg7[%c0_16, %c0_17] : memref<32x32xf32, #tpu.memory_space<vmem>>, vector<32x32xf32>
    %32 = arith.truncf %30 : vector<2x32xf32> to vector<2x32xbf16>
    %33 = arith.truncf %31 : vector<32x32xf32> to vector<32x32xbf16>
    %cst_18 = arith.constant dense<0.000000e+00> : vector<2x32xf32>
    %34 = tpu.matmul %32, %33, %cst_18 {dimension_numbers = #tpu.dot_dimension_numbers<[1], [0], [0], [1], [0, 0, 1, 1], [], []>} : vector<2x32xbf16>, vector<32x32xbf16>, vector<2x32xf32> -> vector<2x32xf32>
    %c0_19 = arith.constant 0 : index
    %c0_20 = arith.constant 0 : index
    %35 = vector.load %arg8[%c0_19, %c0_20] : memref<1x32xf32, #tpu.memory_space<vmem>>, vector<1x32xf32>
    %36 = vector.broadcast %35 : vector<1x32xf32> to vector<2x32xf32>
    %37 = arith.addf %34, %36 : vector<2x32xf32>
    %c0_21 = arith.constant 0 : index
    %c0_22 = arith.constant 0 : index
    %38 = vector.load %arg9[%c0_21, %c0_22] : memref<32x32xf32, #tpu.memory_space<vmem>>, vector<32x32xf32>
    %39 = arith.truncf %37 : vector<2x32xf32> to vector<2x32xbf16>
    %40 = arith.truncf %38 : vector<32x32xf32> to vector<32x32xbf16>
    %cst_23 = arith.constant dense<0.000000e+00> : vector<2x32xf32>
    %41 = tpu.matmul %39, %40, %cst_23 {dimension_numbers = #tpu.dot_dimension_numbers<[1], [0], [0], [1], [0, 0, 1, 1], [], []>} : vector<2x32xbf16>, vector<32x32xbf16>, vector<2x32xf32> -> vector<2x32xf32>
    %c0_24 = arith.constant 0 : index
    %c0_25 = arith.constant 0 : index
    %42 = vector.load %arg10[%c0_24, %c0_25] : memref<1x32xf32, #tpu.memory_space<vmem>>, vector<1x32xf32>
    %43 = vector.broadcast %42 : vector<1x32xf32> to vector<2x32xf32>
    %44 = arith.addf %41, %43 : vector<2x32xf32>
    %c0_26 = arith.constant 0 : index
    %c0_27 = arith.constant 0 : index
    %45 = vector.load %arg2[%c0_26, %c0_27] : memref<2x32xf32, #tpu.memory_space<vmem>>, vector<2x32xf32>
    %46 = arith.addf %45, %44 : vector<2x32xf32>
    %c0_28 = arith.constant 0 : index
    %c0_29 = arith.constant 0 : index
    %47 = vector.load %arg11[%c0_28, %c0_29] : memref<32x1280xf32, #tpu.memory_space<vmem>>, vector<32x1280xf32>
    %48 = arith.truncf %46 : vector<2x32xf32> to vector<2x32xbf16>
    %49 = arith.truncf %47 : vector<32x1280xf32> to vector<32x1280xbf16>
    %cst_30 = arith.constant dense<0.000000e+00> : vector<2x1280xf32>
    %50 = tpu.matmul %48, %49, %cst_30 {dimension_numbers = #tpu.dot_dimension_numbers<[1], [0], [0], [1], [0, 0, 1, 1], [], []>} : vector<2x32xbf16>, vector<32x1280xbf16>, vector<2x1280xf32> -> vector<2x1280xf32>
    %c0_31 = arith.constant 0 : index
    %c0_32 = arith.constant 0 : index
    %51 = vector.load %arg12[%c0_31, %c0_32] : memref<1x1280xf32, #tpu.memory_space<vmem>>, vector<1x1280xf32>
    %52 = vector.broadcast %51 : vector<1x1280xf32> to vector<2x1280xf32>
    %53 = arith.addf %50, %52 : vector<2x1280xf32>
    %cst_33 = arith.constant 0.999994993 : f32
    %54 = vector.broadcast %cst_33 : f32 to vector<2x1280xf32>
    %55 = arith.mulf %53, %54 : vector<2x1280xf32>
    %cst_34 = arith.constant 5.000000e-01 : f32
    %56 = vector.broadcast %cst_34 : f32 to vector<2x1280xf32>
    %57 = arith.mulf %56, %55 : vector<2x1280xf32>
    %cst_35 = arith.constant 0.707106769 : f32
    %58 = vector.broadcast %cst_35 : f32 to vector<2x1280xf32>
    %59 = arith.mulf %55, %58 : vector<2x1280xf32>
    %60 = math.erf %59 : vector<2x1280xf32>
    %cst_36 = arith.constant 1.000000e+00 : f32
    %61 = vector.broadcast %cst_36 : f32 to vector<2x1280xf32>
    %62 = arith.addf %61, %60 : vector<2x1280xf32>
    %63 = arith.mulf %57, %62 : vector<2x1280xf32>
    %c0_37 = arith.constant 0 : index
    %c0_38 = arith.constant 0 : index
    %64 = vector.load %arg13[%c0_37, %c0_38] : memref<1280x512xf32, #tpu.memory_space<vmem>>, vector<1280x512xf32>
    %65 = arith.truncf %63 : vector<2x1280xf32> to vector<2x1280xbf16>
    %66 = arith.truncf %64 : vector<1280x512xf32> to vector<1280x512xbf16>
    %cst_39 = arith.constant dense<0.000000e+00> : vector<2x512xf32>
    %67 = tpu.matmul %65, %66, %cst_39 {dimension_numbers = #tpu.dot_dimension_numbers<[1], [0], [0], [1], [0, 0, 1, 1], [], []>} : vector<2x1280xbf16>, vector<1280x512xbf16>, vector<2x512xf32> -> vector<2x512xf32>
    %c0_40 = arith.constant 0 : index
    %c0_41 = arith.constant 0 : index
    %68 = vector.load %arg14[%c0_40, %c0_41] : memref<1x512xf32, #tpu.memory_space<vmem>>, vector<1x512xf32>
    %69 = vector.broadcast %68 : vector<1x512xf32> to vector<2x512xf32>
    %70 = arith.addf %67, %69 : vector<2x512xf32>
    %cst_42 = arith.constant 0.999994993 : f32
    %71 = vector.broadcast %cst_42 : f32 to vector<2x512xf32>
    %72 = arith.mulf %70, %71 : vector<2x512xf32>
    %cst_43 = arith.constant 5.000000e-01 : f32
    %73 = vector.broadcast %cst_43 : f32 to vector<2x512xf32>
    %74 = arith.mulf %73, %72 : vector<2x512xf32>
    %cst_44 = arith.constant 0.707106769 : f32
    %75 = vector.broadcast %cst_44 : f32 to vector<2x512xf32>
    %76 = arith.mulf %72, %75 : vector<2x512xf32>
    %77 = math.erf %76 : vector<2x512xf32>
    %cst_45 = arith.constant 1.000000e+00 : f32
    %78 = vector.broadcast %cst_45 : f32 to vector<2x512xf32>
    %79 = arith.addf %78, %77 : vector<2x512xf32>
    %80 = arith.mulf %74, %79 : vector<2x512xf32>
    %c0_46 = arith.constant 0 : index
    %c0_47 = arith.constant 0 : index
    %81 = vector.load %arg15[%c0_46, %c0_47] : memref<512x128xf32, #tpu.memory_space<vmem>>, vector<512x128xf32>
    %82 = arith.truncf %80 : vector<2x512xf32> to vector<2x512xbf16>
    %83 = arith.truncf %81 : vector<512x128xf32> to vector<512x128xbf16>
    %cst_48 = arith.constant dense<0.000000e+00> : vector<2x128xf32>
    %84 = tpu.matmul %82, %83, %cst_48 {dimension_numbers = #tpu.dot_dimension_numbers<[1], [0], [0], [1], [0, 0, 1, 1], [], []>} : vector<2x512xbf16>, vector<512x128xbf16>, vector<2x128xf32> -> vector<2x128xf32>
    %c0_49 = arith.constant 0 : index
    %c0_50 = arith.constant 0 : index
    %85 = vector.load %arg16[%c0_49, %c0_50] : memref<1x128xf32, #tpu.memory_space<vmem>>, vector<1x128xf32>
    %86 = vector.broadcast %85 : vector<1x128xf32> to vector<2x128xf32>
    %87 = arith.addf %84, %86 : vector<2x128xf32>
    %cst_51 = arith.constant 0.999994993 : f32
    %88 = vector.broadcast %cst_51 : f32 to vector<2x128xf32>
    %89 = arith.mulf %87, %88 : vector<2x128xf32>
    %cst_52 = arith.constant 5.000000e-01 : f32
    %90 = vector.broadcast %cst_52 : f32 to vector<2x128xf32>
    %91 = arith.mulf %90, %89 : vector<2x128xf32>
    %cst_53 = arith.constant 0.707106769 : f32
    %92 = vector.broadcast %cst_53 : f32 to vector<2x128xf32>
    %93 = arith.mulf %89, %92 : vector<2x128xf32>
    %94 = math.erf %93 : vector<2x128xf32>
    %cst_54 = arith.constant 1.000000e+00 : f32
    %95 = vector.broadcast %cst_54 : f32 to vector<2x128xf32>
    %96 = arith.addf %95, %94 : vector<2x128xf32>
    %97 = arith.mulf %91, %96 : vector<2x128xf32>
    %c0_55 = arith.constant 0 : index
    %c0_56 = arith.constant 0 : index
    %98 = vector.load %arg17[%c0_55, %c0_56] : memref<128x1xf32, #tpu.memory_space<vmem>>, vector<128x1xf32>
    %99 = arith.truncf %97 : vector<2x128xf32> to vector<2x128xbf16>
    %100 = arith.truncf %98 : vector<128x1xf32> to vector<128x1xbf16>
    %cst_57 = arith.constant dense<0.000000e+00> : vector<2x1xf32>
    %101 = tpu.matmul %99, %100, %cst_57 {dimension_numbers = #tpu.dot_dimension_numbers<[1], [0], [0], [1], [0, 0, 1, 1], [], []>} : vector<2x128xbf16>, vector<128x1xbf16>, vector<2x1xf32> -> vector<2x1xf32>
    %c0_58 = arith.constant 0 : index
    %c0_59 = arith.constant 0 : index
    %102 = vector.load %arg18[%c0_58, %c0_59] : memref<1x1xf32, #tpu.memory_space<vmem>>, vector<1x1xf32>
    %103 = vector.broadcast %102 : vector<1x1xf32> to vector<2x1xf32>
    %104 = arith.addf %101, %103 : vector<2x1xf32>
    %cst_60 = arith.constant 0.999994993 : f32
    %105 = vector.broadcast %cst_60 : f32 to vector<2x1xf32>
    %106 = arith.mulf %104, %105 : vector<2x1xf32>
    %cst_61 = arith.constant 0.000000e+00 : f32
    %107 = vector.broadcast %cst_61 : f32 to vector<2x1xf32>
    %108 = arith.subf %107, %106 : vector<2x1xf32>
    %109 = math.exp %108 : vector<2x1xf32>
    %cst_62 = arith.constant 1.000000e+00 : f32
    %110 = vector.broadcast %cst_62 : f32 to vector<2x1xf32>
    %111 = arith.addf %110, %109 : vector<2x1xf32>
    %cst_63 = arith.constant 1.000000e+00 : f32
    %112 = vector.broadcast %cst_63 : f32 to vector<2x1xf32>
    %113 = arith.divf %112, %111 : vector<2x1xf32>
    %c0_64 = arith.constant 0 : index
    %c0_65 = arith.constant 0 : index
    %114 = vector.load %arg19[%c0_64, %c0_65] : memref<2x1xf32, #tpu.memory_space<vmem>>, vector<2x1xf32>
    tpu.vector_store %arg19[%c0_64, %c0_65], %113 {strides = array<i32>} : memref<2x1xf32, #tpu.memory_space<vmem>>, vector<2x1xf32>,
    return
  }
  func.func @transform_0(%arg0: i32) -> (i32, i32) {
    %c0_i32 = arith.constant 0 : i32
    %c0_i32_0 = arith.constant 0 : i32
    %c0_i32_1 = arith.constant 0 : i32
    return %c0_i32, %c0_i32_0 : i32, i32
  }
  func.func @transform_1(%arg0: i32) -> (i32, i32) {
    %c0_i32 = arith.constant 0 : i32
    %c0_i32_0 = arith.constant 0 : i32
    %c0_i32_1 = arith.constant 0 : i32
    return %c0_i32, %c0_i32_0 : i32, i32
  }
  func.func @transform_2(%arg0: i32) -> (i32, i32) {
    %c0_i32 = arith.constant 0 : i32
    %c0_i32_0 = arith.constant 0 : i32
    %c0_i32_1 = arith.constant 0 : i32
    return %c0_i32, %c0_i32_0 : i32, i32
  }
  func.func @transform_3(%arg0: i32) -> (i32, i32) {
    %c0_i32 = arith.constant 0 : i32
    %c0_i32_0 = arith.constant 0 : i32
    %c0_i32_1 = arith.constant 0 : i32
    return %c0_i32, %c0_i32_0 : i32, i32
  }
  func.func @transform_4(%arg0: i32) -> (i32, i32) {
    %c0_i32 = arith.constant 0 : i32
    %c0_i32_0 = arith.constant 0 : i32
    %c0_i32_1 = arith.constant 0 : i32
    return %c0_i32, %c0_i32_0 : i32, i32
  }
  func.func @transform_5(%arg0: i32) -> (i32, i32) {
    %c0_i32 = arith.constant 0 : i32
    %c0_i32_0 = arith.constant 0 : i32
    %c0_i32_1 = arith.constant 0 : i32
    return %c0_i32, %c0_i32_0 : i32, i32
  }
  func.func @transform_6(%arg0: i32) -> (i32, i32) {
    %c0_i32 = arith.constant 0 : i32
    %c0_i32_0 = arith.constant 0 : i32
    %c0_i32_1 = arith.constant 0 : i32
    return %c0_i32, %c0_i32_0 : i32, i32
  }
  func.func @transform_7(%arg0: i32) -> (i32, i32) {
    %c0_i32 = arith.constant 0 : i32
    %c0_i32_0 = arith.constant 0 : i32
    %c0_i32_1 = arith.constant 0 : i32
    return %c0_i32, %c0_i32_0 : i32, i32
  }
  func.func @transform_8(%arg0: i32) -> (i32, i32) {
    %c0_i32 = arith.constant 0 : i32
    %c0_i32_0 = arith.constant 0 : i32
    %c0_i32_1 = arith.constant 0 : i32
    return %c0_i32, %c0_i32_0 : i32, i32
  }
  func.func @transform_9(%arg0: i32) -> (i32, i32) {
    %c0_i32 = arith.constant 0 : i32
    %c0_i32_0 = arith.constant 0 : i32
    %c0_i32_1 = arith.constant 0 : i32
    return %c0_i32, %c0_i32_0 : i32, i32
  }
  func.func @transform_10(%arg0: i32) -> (i32, i32) {
    %c0_i32 = arith.constant 0 : i32
    %c0_i32_0 = arith.constant 0 : i32
    %c0_i32_1 = arith.constant 0 : i32
    return %c0_i32, %c0_i32_0 : i32, i32
  }
  func.func @transform_11(%arg0: i32) -> (i32, i32) {
    %c0_i32 = arith.constant 0 : i32
    %c0_i32_0 = arith.constant 0 : i32
    %c0_i32_1 = arith.constant 0 : i32
    return %c0_i32, %c0_i32_0 : i32, i32
  }
  func.func @transform_12(%arg0: i32) -> (i32, i32) {
    %c0_i32 = arith.constant 0 : i32
    %c0_i32_0 = arith.constant 0 : i32
    %c0_i32_1 = arith.constant 0 : i32
    return %c0_i32, %c0_i32_0 : i32, i32
  }
  func.func @transform_13(%arg0: i32) -> (i32, i32) {
    %c0_i32 = arith.constant 0 : i32
    %c0_i32_0 = arith.constant 0 : i32
    %c0_i32_1 = arith.constant 0 : i32
    return %c0_i32, %c0_i32_0 : i32, i32
  }
  func.func @transform_14(%arg0: i32) -> (i32, i32) {
    %c0_i32 = arith.constant 0 : i32
    %c0_i32_0 = arith.constant 0 : i32
    %c0_i32_1 = arith.constant 0 : i32
    return %c0_i32, %c0_i32_0 : i32, i32
  }
  func.func @transform_15(%arg0: i32) -> (i32, i32) {
    %c0_i32 = arith.constant 0 : i32
    %c0_i32_0 = arith.constant 0 : i32
    %c0_i32_1 = arith.constant 0 : i32
    return %c0_i32, %c0_i32_0 : i32, i32
  }
  func.func @transform_16(%arg0: i32) -> (i32, i32) {
    %c0_i32 = arith.constant 0 : i32
    %c0_i32_0 = arith.constant 0 : i32
    %c0_i32_1 = arith.constant 0 : i32
    return %c0_i32, %c0_i32_0 : i32, i32
  }
  func.func @transform_17(%arg0: i32) -> (i32, i32) {
    %c0_i32 = arith.constant 0 : i32
    %c0_i32_0 = arith.constant 0 : i32
    %c0_i32_1 = arith.constant 0 : i32
    return %c0_i32, %c0_i32_0 : i32, i32
  }
  func.func @transform_18(%arg0: i32) -> (i32, i32) {
    %c0_i32 = arith.constant 0 : i32
    %c0_i32_0 = arith.constant 0 : i32
    %c0_i32_1 = arith.constant 0 : i32
    return %c0_i32, %c0_i32_0 : i32, i32
  }
}

module attributes {stable_mosaic.version = 11 : i64} {
  func.func @_tf_block_kernel(%arg0: i32, %arg1: memref<1x9x32xf32, #tpu.memory_space<vmem>>, %arg2: memref<1x32xf32, #tpu.memory_space<vmem>>, %arg3: memref<1x32xf32, #tpu.memory_space<vmem>>, %arg4: memref<32x96xf32, #tpu.memory_space<vmem>>, %arg5: memref<1x96xf32, #tpu.memory_space<vmem>>, %arg6: memref<32x32xf32, #tpu.memory_space<vmem>>, %arg7: memref<1x32xf32, #tpu.memory_space<vmem>>, %arg8: memref<1x32xf32, #tpu.memory_space<vmem>>, %arg9: memref<1x32xf32, #tpu.memory_space<vmem>>, %arg10: memref<32x64xf32, #tpu.memory_space<vmem>>, %arg11: memref<1x64xf32, #tpu.memory_space<vmem>>, %arg12: memref<64x32xf32, #tpu.memory_space<vmem>>, %arg13: memref<1x32xf32, #tpu.memory_space<vmem>>, %arg14: memref<1x9x32xf32, #tpu.memory_space<vmem>>) attributes {dimension_semantics = [#tpu.dimension_semantics<parallel>], iteration_bounds = array<i64: 2>, scalar_prefetch = 0 : i64, scratch_operands = 0 : i64, tpu.core_type = #tpu.core_type<tc>, window_params = [{transform_indices = @transform_0, window_bounds = array<i64: 1, 9, 32>}, {pipeline_mode = #tpu.pipeline_mode<synchronous>, transform_indices = @transform_1, window_bounds = array<i64: 1, 32>}, {pipeline_mode = #tpu.pipeline_mode<synchronous>, transform_indices = @transform_2, window_bounds = array<i64: 1, 32>}, {pipeline_mode = #tpu.pipeline_mode<synchronous>, transform_indices = @transform_3, window_bounds = array<i64: 32, 96>}, {pipeline_mode = #tpu.pipeline_mode<synchronous>, transform_indices = @transform_4, window_bounds = array<i64: 1, 96>}, {pipeline_mode = #tpu.pipeline_mode<synchronous>, transform_indices = @transform_5, window_bounds = array<i64: 32, 32>}, {pipeline_mode = #tpu.pipeline_mode<synchronous>, transform_indices = @transform_6, window_bounds = array<i64: 1, 32>}, {pipeline_mode = #tpu.pipeline_mode<synchronous>, transform_indices = @transform_7, window_bounds = array<i64: 1, 32>}, {pipeline_mode = #tpu.pipeline_mode<synchronous>, transform_indices = @transform_8, window_bounds = array<i64: 1, 32>}, {pipeline_mode = #tpu.pipeline_mode<synchronous>, transform_indices = @transform_9, window_bounds = array<i64: 32, 64>}, {pipeline_mode = #tpu.pipeline_mode<synchronous>, transform_indices = @transform_10, window_bounds = array<i64: 1, 64>}, {pipeline_mode = #tpu.pipeline_mode<synchronous>, transform_indices = @transform_11, window_bounds = array<i64: 64, 32>}, {pipeline_mode = #tpu.pipeline_mode<synchronous>, transform_indices = @transform_12, window_bounds = array<i64: 1, 32>}, {transform_indices = @transform_13, window_bounds = array<i64: 1, 9, 32>}]} {
    %c0 = arith.constant 0 : index
    %c0_0 = arith.constant 0 : index
    %c0_1 = arith.constant 0 : index
    %0 = vector.load %arg1[%c0, %c0_0, %c0_1] : memref<1x9x32xf32, #tpu.memory_space<vmem>>, vector<1x9x32xf32>
    %1 = vector.shape_cast %0 : vector<1x9x32xf32> to vector<9x32xf32>
    %c0_2 = arith.constant 0 : index
    %c0_3 = arith.constant 0 : index
    %2 = vector.load %arg2[%c0_2, %c0_3] : memref<1x32xf32, #tpu.memory_space<vmem>>, vector<1x32xf32>
    %c0_4 = arith.constant 0 : index
    %c0_5 = arith.constant 0 : index
    %3 = vector.load %arg3[%c0_4, %c0_5] : memref<1x32xf32, #tpu.memory_space<vmem>>, vector<1x32xf32>
    %cst = arith.constant dense<0.000000e+00> : vector<9xf32>
    %4 = vector.multi_reduction <add>, %1, %cst [1] : vector<9x32xf32> to vector<9xf32>
    %5 = vector.shape_cast %4 : vector<9xf32> to vector<9x1xf32>
    %cst_6 = arith.constant 3.200000e+01 : f32
    %6 = vector.broadcast %cst_6 : f32 to vector<9x1xf32>
    %7 = arith.divf %5, %6 : vector<9x1xf32>
    %8 = vector.broadcast %7 : vector<9x1xf32> to vector<9x32xf32>
    %9 = arith.subf %1, %8 : vector<9x32xf32>
    %10 = arith.mulf %9, %9 : vector<9x32xf32>
    %cst_7 = arith.constant dense<0.000000e+00> : vector<9xf32>
    %11 = vector.multi_reduction <add>, %10, %cst_7 [1] : vector<9x32xf32> to vector<9xf32>
    %12 = vector.shape_cast %11 : vector<9xf32> to vector<9x1xf32>
    %cst_8 = arith.constant 3.200000e+01 : f32
    %13 = vector.broadcast %cst_8 : f32 to vector<9x1xf32>
    %14 = arith.divf %12, %13 : vector<9x1xf32>
    %cst_9 = arith.constant 9.99999974E-6 : f32
    %15 = vector.broadcast %cst_9 : f32 to vector<9x1xf32>
    %16 = arith.addf %14, %15 : vector<9x1xf32>
    %17 = math.rsqrt %16 : vector<9x1xf32>
    %18 = vector.broadcast %17 : vector<9x1xf32> to vector<9x32xf32>
    %19 = arith.mulf %9, %18 : vector<9x32xf32>
    %20 = vector.broadcast %2 : vector<1x32xf32> to vector<9x32xf32>
    %21 = arith.mulf %19, %20 : vector<9x32xf32>
    %22 = vector.broadcast %3 : vector<1x32xf32> to vector<9x32xf32>
    %23 = arith.addf %21, %22 : vector<9x32xf32>
    %c0_10 = arith.constant 0 : index
    %c0_11 = arith.constant 0 : index
    %24 = vector.load %arg4[%c0_10, %c0_11] : memref<32x96xf32, #tpu.memory_space<vmem>>, vector<32x96xf32>
    %25 = arith.truncf %23 : vector<9x32xf32> to vector<9x32xbf16>
    %26 = arith.truncf %24 : vector<32x96xf32> to vector<32x96xbf16>
    %cst_12 = arith.constant dense<0.000000e+00> : vector<9x96xf32>
    %27 = tpu.matmul %25, %26, %cst_12 {dimension_numbers = #tpu.dot_dimension_numbers<[1], [0], [0], [1], [0, 0, 1, 1], [], []>} : vector<9x32xbf16>, vector<32x96xbf16>, vector<9x96xf32> -> vector<9x96xf32>
    %c0_13 = arith.constant 0 : index
    %c0_14 = arith.constant 0 : index
    %28 = vector.load %arg5[%c0_13, %c0_14] : memref<1x96xf32, #tpu.memory_space<vmem>>, vector<1x96xf32>
    %29 = vector.broadcast %28 : vector<1x96xf32> to vector<9x96xf32>
    %30 = arith.addf %27, %29 : vector<9x96xf32>
    %c0_15 = arith.constant 0 : index
    %c0_16 = arith.constant 0 : index
    %31 = vector.load %arg6[%c0_15, %c0_16] : memref<32x32xf32, #tpu.memory_space<vmem>>, vector<32x32xf32>
    %cst_17 = arith.constant 0.000000e+00 : f32
    %32 = vector.broadcast %cst_17 : f32 to vector<9x32xf32>
    %33 = vector.extract_strided_slice %30 {offsets = [0, 0], sizes = [9, 8], strides = [1, 1]} : vector<9x96xf32> to vector<9x8xf32>
    %34 = vector.extract_strided_slice %30 {offsets = [0, 32], sizes = [9, 8], strides = [1, 1]} : vector<9x96xf32> to vector<9x8xf32>
    %35 = vector.extract_strided_slice %30 {offsets = [0, 64], sizes = [9, 8], strides = [1, 1]} : vector<9x96xf32> to vector<9x8xf32>
    %36 = tpu.transpose %34, [1, 0] : vector<9x8xf32> -> vector<8x9xf32>
    %37 = arith.truncf %33 : vector<9x8xf32> to vector<9x8xbf16>
    %38 = arith.truncf %36 : vector<8x9xf32> to vector<8x9xbf16>
    %cst_18 = arith.constant dense<0.000000e+00> : vector<9x9xf32>
    %39 = tpu.matmul %37, %38, %cst_18 {dimension_numbers = #tpu.dot_dimension_numbers<[1], [0], [0], [1], [0, 0, 1, 1], [], []>} : vector<9x8xbf16>, vector<8x9xbf16>, vector<9x9xf32> -> vector<9x9xf32>
    %cst_19 = arith.constant 0.353553385 : f32
    %40 = vector.broadcast %cst_19 : f32 to vector<9x9xf32>
    %41 = arith.mulf %39, %40 : vector<9x9xf32>
    %cst_20 = arith.constant dense<0xFF800000> : vector<9xf32>
    %42 = vector.multi_reduction <maximumf>, %41, %cst_20 [1] : vector<9x9xf32> to vector<9xf32>
    %43 = vector.shape_cast %42 : vector<9xf32> to vector<9x1xf32>
    %44 = vector.broadcast %43 : vector<9x1xf32> to vector<9x9xf32>
    %45 = arith.subf %41, %44 : vector<9x9xf32>
    %46 = math.exp %45 : vector<9x9xf32>
    %cst_21 = arith.constant dense<0.000000e+00> : vector<9xf32>
    %47 = vector.multi_reduction <add>, %46, %cst_21 [1] : vector<9x9xf32> to vector<9xf32>
    %48 = vector.shape_cast %47 : vector<9xf32> to vector<9x1xf32>
    %49 = tpu.reciprocal %48 {approx = true} : vector<9x1xf32> -> vector<9x1xf32>
    %50 = vector.broadcast %49 : vector<9x1xf32> to vector<9x9xf32>
    %51 = arith.mulf %46, %50 : vector<9x9xf32>
    %52 = arith.truncf %51 : vector<9x9xf32> to vector<9x9xbf16>
    %53 = arith.truncf %35 : vector<9x8xf32> to vector<9x8xbf16>
    %cst_22 = arith.constant dense<0.000000e+00> : vector<9x8xf32>
    %54 = tpu.matmul %52, %53, %cst_22 {dimension_numbers = #tpu.dot_dimension_numbers<[1], [0], [0], [1], [0, 0, 1, 1], [], []>} : vector<9x9xbf16>, vector<9x8xbf16>, vector<9x8xf32> -> vector<9x8xf32>
    %55 = vector.extract_strided_slice %31 {offsets = [0, 0], sizes = [8, 32], strides = [1, 1]} : vector<32x32xf32> to vector<8x32xf32>
    %56 = arith.truncf %54 : vector<9x8xf32> to vector<9x8xbf16>
    %57 = arith.truncf %55 : vector<8x32xf32> to vector<8x32xbf16>
    %cst_23 = arith.constant dense<0.000000e+00> : vector<9x32xf32>
    %58 = tpu.matmul %56, %57, %cst_23 {dimension_numbers = #tpu.dot_dimension_numbers<[1], [0], [0], [1], [0, 0, 1, 1], [], []>} : vector<9x8xbf16>, vector<8x32xbf16>, vector<9x32xf32> -> vector<9x32xf32>
    %59 = arith.addf %32, %58 : vector<9x32xf32>
    %60 = vector.extract_strided_slice %30 {offsets = [0, 8], sizes = [9, 8], strides = [1, 1]} : vector<9x96xf32> to vector<9x8xf32>
    %61 = vector.extract_strided_slice %30 {offsets = [0, 40], sizes = [9, 8], strides = [1, 1]} : vector<9x96xf32> to vector<9x8xf32>
    %62 = vector.extract_strided_slice %30 {offsets = [0, 72], sizes = [9, 8], strides = [1, 1]} : vector<9x96xf32> to vector<9x8xf32>
    %63 = tpu.transpose %61, [1, 0] : vector<9x8xf32> -> vector<8x9xf32>
    %64 = arith.truncf %60 : vector<9x8xf32> to vector<9x8xbf16>
    %65 = arith.truncf %63 : vector<8x9xf32> to vector<8x9xbf16>
    %cst_24 = arith.constant dense<0.000000e+00> : vector<9x9xf32>
    %66 = tpu.matmul %64, %65, %cst_24 {dimension_numbers = #tpu.dot_dimension_numbers<[1], [0], [0], [1], [0, 0, 1, 1], [], []>} : vector<9x8xbf16>, vector<8x9xbf16>, vector<9x9xf32> -> vector<9x9xf32>
    %cst_25 = arith.constant 0.353553385 : f32
    %67 = vector.broadcast %cst_25 : f32 to vector<9x9xf32>
    %68 = arith.mulf %66, %67 : vector<9x9xf32>
    %cst_26 = arith.constant dense<0xFF800000> : vector<9xf32>
    %69 = vector.multi_reduction <maximumf>, %68, %cst_26 [1] : vector<9x9xf32> to vector<9xf32>
    %70 = vector.shape_cast %69 : vector<9xf32> to vector<9x1xf32>
    %71 = vector.broadcast %70 : vector<9x1xf32> to vector<9x9xf32>
    %72 = arith.subf %68, %71 : vector<9x9xf32>
    %73 = math.exp %72 : vector<9x9xf32>
    %cst_27 = arith.constant dense<0.000000e+00> : vector<9xf32>
    %74 = vector.multi_reduction <add>, %73, %cst_27 [1] : vector<9x9xf32> to vector<9xf32>
    %75 = vector.shape_cast %74 : vector<9xf32> to vector<9x1xf32>
    %76 = tpu.reciprocal %75 {approx = true} : vector<9x1xf32> -> vector<9x1xf32>
    %77 = vector.broadcast %76 : vector<9x1xf32> to vector<9x9xf32>
    %78 = arith.mulf %73, %77 : vector<9x9xf32>
    %79 = arith.truncf %78 : vector<9x9xf32> to vector<9x9xbf16>
    %80 = arith.truncf %62 : vector<9x8xf32> to vector<9x8xbf16>
    %cst_28 = arith.constant dense<0.000000e+00> : vector<9x8xf32>
    %81 = tpu.matmul %79, %80, %cst_28 {dimension_numbers = #tpu.dot_dimension_numbers<[1], [0], [0], [1], [0, 0, 1, 1], [], []>} : vector<9x9xbf16>, vector<9x8xbf16>, vector<9x8xf32> -> vector<9x8xf32>
    %82 = vector.extract_strided_slice %31 {offsets = [8, 0], sizes = [8, 32], strides = [1, 1]} : vector<32x32xf32> to vector<8x32xf32>
    %83 = arith.truncf %81 : vector<9x8xf32> to vector<9x8xbf16>
    %84 = arith.truncf %82 : vector<8x32xf32> to vector<8x32xbf16>
    %cst_29 = arith.constant dense<0.000000e+00> : vector<9x32xf32>
    %85 = tpu.matmul %83, %84, %cst_29 {dimension_numbers = #tpu.dot_dimension_numbers<[1], [0], [0], [1], [0, 0, 1, 1], [], []>} : vector<9x8xbf16>, vector<8x32xbf16>, vector<9x32xf32> -> vector<9x32xf32>
    %86 = arith.addf %59, %85 : vector<9x32xf32>
    %87 = vector.extract_strided_slice %30 {offsets = [0, 16], sizes = [9, 8], strides = [1, 1]} : vector<9x96xf32> to vector<9x8xf32>
    %88 = vector.extract_strided_slice %30 {offsets = [0, 48], sizes = [9, 8], strides = [1, 1]} : vector<9x96xf32> to vector<9x8xf32>
    %89 = vector.extract_strided_slice %30 {offsets = [0, 80], sizes = [9, 8], strides = [1, 1]} : vector<9x96xf32> to vector<9x8xf32>
    %90 = tpu.transpose %88, [1, 0] : vector<9x8xf32> -> vector<8x9xf32>
    %91 = arith.truncf %87 : vector<9x8xf32> to vector<9x8xbf16>
    %92 = arith.truncf %90 : vector<8x9xf32> to vector<8x9xbf16>
    %cst_30 = arith.constant dense<0.000000e+00> : vector<9x9xf32>
    %93 = tpu.matmul %91, %92, %cst_30 {dimension_numbers = #tpu.dot_dimension_numbers<[1], [0], [0], [1], [0, 0, 1, 1], [], []>} : vector<9x8xbf16>, vector<8x9xbf16>, vector<9x9xf32> -> vector<9x9xf32>
    %cst_31 = arith.constant 0.353553385 : f32
    %94 = vector.broadcast %cst_31 : f32 to vector<9x9xf32>
    %95 = arith.mulf %93, %94 : vector<9x9xf32>
    %cst_32 = arith.constant dense<0xFF800000> : vector<9xf32>
    %96 = vector.multi_reduction <maximumf>, %95, %cst_32 [1] : vector<9x9xf32> to vector<9xf32>
    %97 = vector.shape_cast %96 : vector<9xf32> to vector<9x1xf32>
    %98 = vector.broadcast %97 : vector<9x1xf32> to vector<9x9xf32>
    %99 = arith.subf %95, %98 : vector<9x9xf32>
    %100 = math.exp %99 : vector<9x9xf32>
    %cst_33 = arith.constant dense<0.000000e+00> : vector<9xf32>
    %101 = vector.multi_reduction <add>, %100, %cst_33 [1] : vector<9x9xf32> to vector<9xf32>
    %102 = vector.shape_cast %101 : vector<9xf32> to vector<9x1xf32>
    %103 = tpu.reciprocal %102 {approx = true} : vector<9x1xf32> -> vector<9x1xf32>
    %104 = vector.broadcast %103 : vector<9x1xf32> to vector<9x9xf32>
    %105 = arith.mulf %100, %104 : vector<9x9xf32>
    %106 = arith.truncf %105 : vector<9x9xf32> to vector<9x9xbf16>
    %107 = arith.truncf %89 : vector<9x8xf32> to vector<9x8xbf16>
    %cst_34 = arith.constant dense<0.000000e+00> : vector<9x8xf32>
    %108 = tpu.matmul %106, %107, %cst_34 {dimension_numbers = #tpu.dot_dimension_numbers<[1], [0], [0], [1], [0, 0, 1, 1], [], []>} : vector<9x9xbf16>, vector<9x8xbf16>, vector<9x8xf32> -> vector<9x8xf32>
    %109 = vector.extract_strided_slice %31 {offsets = [16, 0], sizes = [8, 32], strides = [1, 1]} : vector<32x32xf32> to vector<8x32xf32>
    %110 = arith.truncf %108 : vector<9x8xf32> to vector<9x8xbf16>
    %111 = arith.truncf %109 : vector<8x32xf32> to vector<8x32xbf16>
    %cst_35 = arith.constant dense<0.000000e+00> : vector<9x32xf32>
    %112 = tpu.matmul %110, %111, %cst_35 {dimension_numbers = #tpu.dot_dimension_numbers<[1], [0], [0], [1], [0, 0, 1, 1], [], []>} : vector<9x8xbf16>, vector<8x32xbf16>, vector<9x32xf32> -> vector<9x32xf32>
    %113 = arith.addf %86, %112 : vector<9x32xf32>
    %114 = vector.extract_strided_slice %30 {offsets = [0, 24], sizes = [9, 8], strides = [1, 1]} : vector<9x96xf32> to vector<9x8xf32>
    %115 = vector.extract_strided_slice %30 {offsets = [0, 56], sizes = [9, 8], strides = [1, 1]} : vector<9x96xf32> to vector<9x8xf32>
    %116 = vector.extract_strided_slice %30 {offsets = [0, 88], sizes = [9, 8], strides = [1, 1]} : vector<9x96xf32> to vector<9x8xf32>
    %117 = tpu.transpose %115, [1, 0] : vector<9x8xf32> -> vector<8x9xf32>
    %118 = arith.truncf %114 : vector<9x8xf32> to vector<9x8xbf16>
    %119 = arith.truncf %117 : vector<8x9xf32> to vector<8x9xbf16>
    %cst_36 = arith.constant dense<0.000000e+00> : vector<9x9xf32>
    %120 = tpu.matmul %118, %119, %cst_36 {dimension_numbers = #tpu.dot_dimension_numbers<[1], [0], [0], [1], [0, 0, 1, 1], [], []>} : vector<9x8xbf16>, vector<8x9xbf16>, vector<9x9xf32> -> vector<9x9xf32>
    %cst_37 = arith.constant 0.353553385 : f32
    %121 = vector.broadcast %cst_37 : f32 to vector<9x9xf32>
    %122 = arith.mulf %120, %121 : vector<9x9xf32>
    %cst_38 = arith.constant dense<0xFF800000> : vector<9xf32>
    %123 = vector.multi_reduction <maximumf>, %122, %cst_38 [1] : vector<9x9xf32> to vector<9xf32>
    %124 = vector.shape_cast %123 : vector<9xf32> to vector<9x1xf32>
    %125 = vector.broadcast %124 : vector<9x1xf32> to vector<9x9xf32>
    %126 = arith.subf %122, %125 : vector<9x9xf32>
    %127 = math.exp %126 : vector<9x9xf32>
    %cst_39 = arith.constant dense<0.000000e+00> : vector<9xf32>
    %128 = vector.multi_reduction <add>, %127, %cst_39 [1] : vector<9x9xf32> to vector<9xf32>
    %129 = vector.shape_cast %128 : vector<9xf32> to vector<9x1xf32>
    %130 = tpu.reciprocal %129 {approx = true} : vector<9x1xf32> -> vector<9x1xf32>
    %131 = vector.broadcast %130 : vector<9x1xf32> to vector<9x9xf32>
    %132 = arith.mulf %127, %131 : vector<9x9xf32>
    %133 = arith.truncf %132 : vector<9x9xf32> to vector<9x9xbf16>
    %134 = arith.truncf %116 : vector<9x8xf32> to vector<9x8xbf16>
    %cst_40 = arith.constant dense<0.000000e+00> : vector<9x8xf32>
    %135 = tpu.matmul %133, %134, %cst_40 {dimension_numbers = #tpu.dot_dimension_numbers<[1], [0], [0], [1], [0, 0, 1, 1], [], []>} : vector<9x9xbf16>, vector<9x8xbf16>, vector<9x8xf32> -> vector<9x8xf32>
    %136 = vector.extract_strided_slice %31 {offsets = [24, 0], sizes = [8, 32], strides = [1, 1]} : vector<32x32xf32> to vector<8x32xf32>
    %137 = arith.truncf %135 : vector<9x8xf32> to vector<9x8xbf16>
    %138 = arith.truncf %136 : vector<8x32xf32> to vector<8x32xbf16>
    %cst_41 = arith.constant dense<0.000000e+00> : vector<9x32xf32>
    %139 = tpu.matmul %137, %138, %cst_41 {dimension_numbers = #tpu.dot_dimension_numbers<[1], [0], [0], [1], [0, 0, 1, 1], [], []>} : vector<9x8xbf16>, vector<8x32xbf16>, vector<9x32xf32> -> vector<9x32xf32>
    %140 = arith.addf %113, %139 : vector<9x32xf32>
    %141 = arith.addf %1, %140 : vector<9x32xf32>
    %c0_42 = arith.constant 0 : index
    %c0_43 = arith.constant 0 : index
    %142 = vector.load %arg7[%c0_42, %c0_43] : memref<1x32xf32, #tpu.memory_space<vmem>>, vector<1x32xf32>
    %143 = vector.broadcast %142 : vector<1x32xf32> to vector<9x32xf32>
    %144 = arith.addf %141, %143 : vector<9x32xf32>
    %c0_44 = arith.constant 0 : index
    %c0_45 = arith.constant 0 : index
    %145 = vector.load %arg8[%c0_44, %c0_45] : memref<1x32xf32, #tpu.memory_space<vmem>>, vector<1x32xf32>
    %c0_46 = arith.constant 0 : index
    %c0_47 = arith.constant 0 : index
    %146 = vector.load %arg9[%c0_46, %c0_47] : memref<1x32xf32, #tpu.memory_space<vmem>>, vector<1x32xf32>
    %cst_48 = arith.constant dense<0.000000e+00> : vector<9xf32>
    %147 = vector.multi_reduction <add>, %144, %cst_48 [1] : vector<9x32xf32> to vector<9xf32>
    %148 = vector.shape_cast %147 : vector<9xf32> to vector<9x1xf32>
    %cst_49 = arith.constant 3.200000e+01 : f32
    %149 = vector.broadcast %cst_49 : f32 to vector<9x1xf32>
    %150 = arith.divf %148, %149 : vector<9x1xf32>
    %151 = vector.broadcast %150 : vector<9x1xf32> to vector<9x32xf32>
    %152 = arith.subf %144, %151 : vector<9x32xf32>
    %153 = arith.mulf %152, %152 : vector<9x32xf32>
    %cst_50 = arith.constant dense<0.000000e+00> : vector<9xf32>
    %154 = vector.multi_reduction <add>, %153, %cst_50 [1] : vector<9x32xf32> to vector<9xf32>
    %155 = vector.shape_cast %154 : vector<9xf32> to vector<9x1xf32>
    %cst_51 = arith.constant 3.200000e+01 : f32
    %156 = vector.broadcast %cst_51 : f32 to vector<9x1xf32>
    %157 = arith.divf %155, %156 : vector<9x1xf32>
    %cst_52 = arith.constant 9.99999974E-6 : f32
    %158 = vector.broadcast %cst_52 : f32 to vector<9x1xf32>
    %159 = arith.addf %157, %158 : vector<9x1xf32>
    %160 = math.rsqrt %159 : vector<9x1xf32>
    %161 = vector.broadcast %160 : vector<9x1xf32> to vector<9x32xf32>
    %162 = arith.mulf %152, %161 : vector<9x32xf32>
    %163 = vector.broadcast %145 : vector<1x32xf32> to vector<9x32xf32>
    %164 = arith.mulf %162, %163 : vector<9x32xf32>
    %165 = vector.broadcast %146 : vector<1x32xf32> to vector<9x32xf32>
    %166 = arith.addf %164, %165 : vector<9x32xf32>
    %c0_53 = arith.constant 0 : index
    %c0_54 = arith.constant 0 : index
    %167 = vector.load %arg10[%c0_53, %c0_54] : memref<32x64xf32, #tpu.memory_space<vmem>>, vector<32x64xf32>
    %168 = arith.truncf %166 : vector<9x32xf32> to vector<9x32xbf16>
    %169 = arith.truncf %167 : vector<32x64xf32> to vector<32x64xbf16>
    %cst_55 = arith.constant dense<0.000000e+00> : vector<9x64xf32>
    %170 = tpu.matmul %168, %169, %cst_55 {dimension_numbers = #tpu.dot_dimension_numbers<[1], [0], [0], [1], [0, 0, 1, 1], [], []>} : vector<9x32xbf16>, vector<32x64xbf16>, vector<9x64xf32> -> vector<9x64xf32>
    %c0_56 = arith.constant 0 : index
    %c0_57 = arith.constant 0 : index
    %171 = vector.load %arg11[%c0_56, %c0_57] : memref<1x64xf32, #tpu.memory_space<vmem>>, vector<1x64xf32>
    %172 = vector.broadcast %171 : vector<1x64xf32> to vector<9x64xf32>
    %173 = arith.addf %170, %172 : vector<9x64xf32>
    %cst_58 = arith.constant 5.000000e-01 : f32
    %174 = vector.broadcast %cst_58 : f32 to vector<9x64xf32>
    %175 = arith.mulf %174, %173 : vector<9x64xf32>
    %cst_59 = arith.constant 0.707106769 : f32
    %176 = vector.broadcast %cst_59 : f32 to vector<9x64xf32>
    %177 = arith.mulf %173, %176 : vector<9x64xf32>
    %178 = math.erf %177 : vector<9x64xf32>
    %cst_60 = arith.constant 1.000000e+00 : f32
    %179 = vector.broadcast %cst_60 : f32 to vector<9x64xf32>
    %180 = arith.addf %179, %178 : vector<9x64xf32>
    %181 = arith.mulf %175, %180 : vector<9x64xf32>
    %c0_61 = arith.constant 0 : index
    %c0_62 = arith.constant 0 : index
    %182 = vector.load %arg12[%c0_61, %c0_62] : memref<64x32xf32, #tpu.memory_space<vmem>>, vector<64x32xf32>
    %183 = arith.truncf %181 : vector<9x64xf32> to vector<9x64xbf16>
    %184 = arith.truncf %182 : vector<64x32xf32> to vector<64x32xbf16>
    %cst_63 = arith.constant dense<0.000000e+00> : vector<9x32xf32>
    %185 = tpu.matmul %183, %184, %cst_63 {dimension_numbers = #tpu.dot_dimension_numbers<[1], [0], [0], [1], [0, 0, 1, 1], [], []>} : vector<9x64xbf16>, vector<64x32xbf16>, vector<9x32xf32> -> vector<9x32xf32>
    %c0_64 = arith.constant 0 : index
    %c0_65 = arith.constant 0 : index
    %186 = vector.load %arg13[%c0_64, %c0_65] : memref<1x32xf32, #tpu.memory_space<vmem>>, vector<1x32xf32>
    %187 = vector.broadcast %186 : vector<1x32xf32> to vector<9x32xf32>
    %188 = arith.addf %185, %187 : vector<9x32xf32>
    %189 = arith.addf %144, %188 : vector<9x32xf32>
    %c0_66 = arith.constant 0 : index
    %c0_67 = arith.constant 0 : index
    %c0_68 = arith.constant 0 : index
    %190 = vector.load %arg14[%c0_66, %c0_67, %c0_68] : memref<1x9x32xf32, #tpu.memory_space<vmem>>, vector<1x9x32xf32>
    %191 = vector.shape_cast %190 : vector<1x9x32xf32> to vector<9x32xf32>
    %192 = vector.shape_cast %189 : vector<9x32xf32> to vector<1x9x32xf32>
    tpu.vector_store %arg14[%c0_66, %c0_67, %c0_68], %192 {strides = array<i32>} : memref<1x9x32xf32, #tpu.memory_space<vmem>>, vector<1x9x32xf32>,
    return
  }
  func.func @transform_0(%arg0: i32) -> (i32, i32, i32) {
    %c0_i32 = arith.constant 0 : i32
    %c0_i32_0 = arith.constant 0 : i32
    %c0_i32_1 = arith.constant 0 : i32
    return %arg0, %c0_i32, %c0_i32_0 : i32, i32, i32
  }
  func.func @transform_1(%arg0: i32) -> (i32, i32) {
    %c0_i32 = arith.constant 0 : i32
    %c0_i32_0 = arith.constant 0 : i32
    %c0_i32_1 = arith.constant 0 : i32
    return %c0_i32, %c0_i32_0 : i32, i32
  }
  func.func @transform_2(%arg0: i32) -> (i32, i32) {
    %c0_i32 = arith.constant 0 : i32
    %c0_i32_0 = arith.constant 0 : i32
    %c0_i32_1 = arith.constant 0 : i32
    return %c0_i32, %c0_i32_0 : i32, i32
  }
  func.func @transform_3(%arg0: i32) -> (i32, i32) {
    %c0_i32 = arith.constant 0 : i32
    %c0_i32_0 = arith.constant 0 : i32
    %c0_i32_1 = arith.constant 0 : i32
    return %c0_i32, %c0_i32_0 : i32, i32
  }
  func.func @transform_4(%arg0: i32) -> (i32, i32) {
    %c0_i32 = arith.constant 0 : i32
    %c0_i32_0 = arith.constant 0 : i32
    %c0_i32_1 = arith.constant 0 : i32
    return %c0_i32, %c0_i32_0 : i32, i32
  }
  func.func @transform_5(%arg0: i32) -> (i32, i32) {
    %c0_i32 = arith.constant 0 : i32
    %c0_i32_0 = arith.constant 0 : i32
    %c0_i32_1 = arith.constant 0 : i32
    return %c0_i32, %c0_i32_0 : i32, i32
  }
  func.func @transform_6(%arg0: i32) -> (i32, i32) {
    %c0_i32 = arith.constant 0 : i32
    %c0_i32_0 = arith.constant 0 : i32
    %c0_i32_1 = arith.constant 0 : i32
    return %c0_i32, %c0_i32_0 : i32, i32
  }
  func.func @transform_7(%arg0: i32) -> (i32, i32) {
    %c0_i32 = arith.constant 0 : i32
    %c0_i32_0 = arith.constant 0 : i32
    %c0_i32_1 = arith.constant 0 : i32
    return %c0_i32, %c0_i32_0 : i32, i32
  }
  func.func @transform_8(%arg0: i32) -> (i32, i32) {
    %c0_i32 = arith.constant 0 : i32
    %c0_i32_0 = arith.constant 0 : i32
    %c0_i32_1 = arith.constant 0 : i32
    return %c0_i32, %c0_i32_0 : i32, i32
  }
  func.func @transform_9(%arg0: i32) -> (i32, i32) {
    %c0_i32 = arith.constant 0 : i32
    %c0_i32_0 = arith.constant 0 : i32
    %c0_i32_1 = arith.constant 0 : i32
    return %c0_i32, %c0_i32_0 : i32, i32
  }
  func.func @transform_10(%arg0: i32) -> (i32, i32) {
    %c0_i32 = arith.constant 0 : i32
    %c0_i32_0 = arith.constant 0 : i32
    %c0_i32_1 = arith.constant 0 : i32
    return %c0_i32, %c0_i32_0 : i32, i32
  }
  func.func @transform_11(%arg0: i32) -> (i32, i32) {
    %c0_i32 = arith.constant 0 : i32
    %c0_i32_0 = arith.constant 0 : i32
    %c0_i32_1 = arith.constant 0 : i32
    return %c0_i32, %c0_i32_0 : i32, i32
  }
  func.func @transform_12(%arg0: i32) -> (i32, i32) {
    %c0_i32 = arith.constant 0 : i32
    %c0_i32_0 = arith.constant 0 : i32
    %c0_i32_1 = arith.constant 0 : i32
    return %c0_i32, %c0_i32_0 : i32, i32
  }
  func.func @transform_13(%arg0: i32) -> (i32, i32, i32) {
    %c0_i32 = arith.constant 0 : i32
    %c0_i32_0 = arith.constant 0 : i32
    %c0_i32_1 = arith.constant 0 : i32
    return %arg0, %c0_i32, %c0_i32_0 : i32, i32, i32
  }
}

</mosaic_0001>

<bundles_post_ra>
// kernel: lcter_forward.2
= control target key start
LH: loop header
LB: loop body
LE: loop exit
PB: predicated region body
PF: predicated region fallthrough
CT: control target
= control target key end

     0   :  { %s3229_s0 = inlined_call_operand.vmem [shape: f32[2,9,32], index: 0, kind: input, shape index: {}]   ;;  %s3230_s1 = inlined_call_operand.hbm [shape: f32[1,32], index: 1, kind: input, shape index: {}]   ;;  %s3231_s2 = inlined_call_operand.hbm [shape: f32[1,32], index: 2, kind: input, shape index: {}]   ;;  %s3232_s3 = inlined_call_operand.hbm [shape: f32[32,96], index: 3, kind: input, shape index: {}]   ;;  %s3233_s4 = inlined_call_operand.hbm [shape: f32[1,96], index: 4, kind: input, shape index: {}]   ;;  %s3234_s5 = inlined_call_operand.hbm [shape: f32[32,32], index: 5, kind: input, shape index: {}]   ;;  %s3235_s6 = inlined_call_operand.hbm [shape: f32[1,32], index: 6, kind: input, shape index: {}]   ;;  %s3236_s7 = inlined_call_operand.hbm [shape: f32[1,32], index: 7, kind: input, shape index: {}]   ;;  %s3237_s8 = inlined_call_operand.hbm [shape: f32[1,32], index: 8, kind: input, shape index: {}]   ;;  %s3238_s9 = inlined_call_operand.hbm [shape: f32[32,64], index: 9, kind: input, shape index: {}]   ;;  %s3239_s10 = inlined_call_operand.hbm [shape: f32[1,64], index: 10, kind: input, shape index: {}]   ;;  %s3240_s11 = inlined_call_operand.vmem [shape: f32[64,32], index: 11, kind: input, shape index: {}]   ;;  %s3241_s12 = inlined_call_operand.hbm [shape: f32[1,32], index: 12, kind: input, shape index: {}]   ;;  %s3242_s13 = inlined_call_operand.vmem [shape: f32[2,9,32], index: 13, kind: output, shape index: {}]  }
   0x1   :  { %3246 = sst [smem:[#allocation26_spill]] %s3230_s1 }
   0x2   :  { %18 = vsyncpa [#allocation3], 0 }
   0x3   :  { %19 = vsyncpa [#allocation5], 0 }
   0x4   :  { %20 = vsyncpa [#allocation8], 0 }
   0x5   :  { %21 = vsyncpa [#allocation11], 0 }
   0x6   :  { %22 = vsyncpa [#allocation14], 0 }
   0x7   :  { %23 = vsyncpa [#allocation17], 0  ;;  %s2722_s25 = smov 0  }
   0x8 LB: > { %3247 = sst [smem:[#allocation25_spill]] %s2623_s25  ;;  %s2625_s26 = smov [#allocation4]   ;;  %s2623_s25 = sphi %s2722_s25, %s29_s25  }
   0x9   : > { %s362_s27 = sshll.u32 %s2625_s26, 4  ;;  %s2728_s28 = sadd.s32 4294967295, %s2623_s25   ;;  %s2733_s27 = int_to_ptr.vmem [resolvable:$true] %s362_s27 }
   0xa   : > { %p1910_p0 = scmp.ge.s32.totalorder %s2623_s25, 1  ;;  %p338_p1 = scmp.lt.s32.totalorder %s2623_s25, 3 }
   0xb   : > { %p3244_p2 = scmp.eq.s32.totalorder %s2728_s28, 0  ;;  %s2626_s30 = smov [#allocation7]  }
   0xc   : > { %p2735_p3 = pnand %p1910_p0, %p338_p1  ;;  %s386_s14 = sshll.u32 %s2626_s30, 4  ;;  %s2741_s14 = int_to_ptr.vmem [resolvable:$true] %s386_s14 }
   0xd   : > { %s2627_s15 = smov [#allocation10]   ;;  %s2628_s18 = smov [#allocation13]  }
   0xe   : > { %s3248_s29 = scalar_select %p2735_p3, 1, 0 }
   0xf   : > { %p2145_p4 = pneg %p2735_p3  ;;  %s410_s16 = sshll.u32 %s2627_s15, 4  ;;  %s2749_s16 = int_to_ptr.vmem [resolvable:$true] %s410_s16 }
  0x10   : > { %s432_s19 = sshll.u32 %s2628_s18, 4  ;;  %s2285_s22 = scalar_lea.hbm %s3231_s2, 16  ;;  %s2751_s19 = int_to_ptr.vmem [resolvable:$true] %s432_s19 }
  0x11   : > { %p2745_p5 = pnand %p3244_p2, %p2145_p4  ;;  %p2286_p6 = scmp.ne.s32.totalorder %s3231_s2, %s2285_s22 }
  0x12   : > { %p2292_p10 = scmp.lt.u32.totalorder %s2285_s22, %s3231_s2 }
  0x13   : > { %p2761_p7 = pneg %p2745_p5 }
  0x15   : > { %p2288_p8 = pnand %p2761_p7, %p2286_p6 }
  0x17   : > { %p2289_p9 = pneg %p2288_p8 }
  0x19   : > { %p2294_p11 = pnand %p2292_p10, %p2289_p9 }
  0x1b   : > { %2297 = shalt.err (!%p2294_p11)
}
  0x1c   : > { %s2298_s18 = scalar_lea.vmem %s2733_s27, 16  ;;  %s2305_s20 = scalar_lea.vmem %s2733_s27, 32 }
  0x1d   : > { %p2299_p12 = scmp.ne.s32.totalorder %s2733_s27, %s2298_s18  ;;  %p2306_p1 = scmp.lt.s32.totalorder %s2733_s27, %s2733_s27 }
  0x1e   : > { %p2307_p4 = scmp.lt.s32.totalorder %s2305_s20, %s2298_s18 }
  0x1f   : > { %p2301_p13 = pnand %p2299_p12, %p2761_p7 }
  0x20   : > { %p2308_p6 = por %p2307_p4, %p2306_p1 }
  0x21   : > { %p2302_p0 = pneg %p2301_p13 }
  0x23   : > { %p2309_p8 = pnand %p2308_p6, %p2302_p0 }
  0x25   : > { %2312 = shalt.err (!%p2309_p8)
}
  0x26   : > { %2151 = dma.hbm_to_vmem [thread:$0]  (!%p2745_p5), %s3231_s2, 16, %s2733_s27, [#allocation5]  }
  0x27   : > { %s2313_s30 = scalar_lea.hbm %s3233_s4, 16 }
  0x28   : > { %p2314_p9 = scmp.ne.s32.totalorder %s3233_s4, %s2313_s30  ;;  %p2320_p12 = scmp.lt.u32.totalorder %s2313_s30, %s3233_s4 }
  0x2a   : > { %p2316_p10 = pnand %p2314_p9, %p2761_p7 }
  0x2c   : > { %p2317_p11 = pneg %p2316_p10 }
  0x2e   : > { %p2322_p13 = pnand %p2320_p12, %p2317_p11 }
  0x30   : > { %2325 = shalt.err (!%p2322_p13)
}
  0x31   : > { %s2326_s27 = scalar_lea.vmem %s2741_s14, 16  ;;  %s2333_s25 = scalar_lea.vmem %s2741_s14, 32 }
  0x32   : > { %p2327_p0 = scmp.ne.s32.totalorder %s2741_s14, %s2326_s27  ;;  %p2334_p6 = scmp.lt.s32.totalorder %s2741_s14, %s2741_s14 }
  0x33   : > { %p2335_p8 = scmp.lt.s32.totalorder %s2333_s25, %s2326_s27 }
  0x34   : > { %p2329_p1 = pnand %p2327_p0, %p2761_p7 }
  0x35   : > { %p2336_p9 = por %p2335_p8, %p2334_p6 }
  0x36   : > { %p2330_p4 = pneg %p2329_p1 }
  0x38   : > { %p2337_p10 = pnand %p2336_p9, %p2330_p4 }
  0x3a   : > { %2340 = shalt.err (!%p2337_p10)
}
  0x3b   : > { %2157 = dma.hbm_to_vmem [thread:$0]  (!%p2745_p5), %s3233_s4, 16, %s2741_s14, [#allocation8]  }
  0x3c   : > { %s2341_s30 = scalar_lea.hbm %s3235_s6, 16 }
  0x3d   : > { %p2342_p11 = scmp.ne.s32.totalorder %s3235_s6, %s2341_s30  ;;  %p2348_p0 = scmp.lt.u32.totalorder %s2341_s30, %s3235_s6 }
  0x3f   : > { %p2344_p12 = pnand %p2342_p11, %p2761_p7 }
  0x41   : > { %p2345_p13 = pneg %p2344_p12 }
  0x43   : > { %p2350_p1 = pnand %p2348_p0, %p2345_p13 }
  0x45   : > { %2353 = shalt.err (!%p2350_p1)
}
  0x46   : > { %s2354_s14 = scalar_lea.vmem %s2749_s16, 16  ;;  %s2361_s25 = scalar_lea.vmem %s2749_s16, 32 }
  0x47   : > { %p2355_p4 = scmp.ne.s32.totalorder %s2749_s16, %s2354_s14  ;;  %p2362_p9 = scmp.lt.s32.totalorder %s2749_s16, %s2749_s16 }
  0x48   : > { %p2363_p10 = scmp.lt.s32.totalorder %s2361_s25, %s2354_s14 }
  0x49   : > { %p2357_p6 = pnand %p2355_p4, %p2761_p7 }
  0x4a   : > { %p2364_p11 = por %p2363_p10, %p2362_p9 }
  0x4b   : > { %p2358_p8 = pneg %p2357_p6 }
  0x4d   : > { %p2365_p12 = pnand %p2364_p11, %p2358_p8 }
  0x4f   : > { %2368 = shalt.err (!%p2365_p12)
}
  0x50   : > { %2163 = dma.hbm_to_vmem [thread:$0]  (!%p2745_p5), %s3235_s6, 16, %s2749_s16, [#allocation11]  }
  0x51   : > { %s2369_s30 = scalar_lea.hbm %s3237_s8, 16 }
  0x52   : > { %p2370_p13 = scmp.ne.s32.totalorder %s3237_s8, %s2369_s30  ;;  %p2376_p4 = scmp.lt.u32.totalorder %s2369_s30, %s3237_s8 }
  0x54   : > { %p2372_p0 = pnand %p2370_p13, %p2761_p7 }
  0x56   : > { %p2373_p1 = pneg %p2372_p0 }
  0x58   : > { %p2378_p6 = pnand %p2376_p4, %p2373_p1 }
  0x5a   : > { %2381 = shalt.err (!%p2378_p6)
}
  0x5b   : > { %s2382_s16 = scalar_lea.vmem %s2751_s19, 16  ;;  %s2389_s14 = scalar_lea.vmem %s2751_s19, 32 }
  0x5c   : > { %p2383_p8 = scmp.ne.s32.totalorder %s2751_s19, %s2382_s16  ;;  %p2390_p11 = scmp.lt.s32.totalorder %s2751_s19, %s2751_s19 }
  0x5d   : > { %p2391_p12 = scmp.lt.s32.totalorder %s2389_s14, %s2382_s16 }
  0x5e   : > { %p2385_p9 = pnand %p2383_p8, %p2761_p7 }
  0x5f   : > { %p2392_p13 = por %p2391_p12, %p2390_p11 }
  0x60   : > { %p2386_p10 = pneg %p2385_p9 }
  0x62   : > { %p2393_p0 = pnand %p2392_p13, %p2386_p10 }
  0x64   : > { %2396 = shalt.err (!%p2393_p0)
}
  0x65   : > { %2169 = dma.hbm_to_vmem [thread:$0]  (!%p2745_p5), %s3237_s8, 16, %s2751_s19, [#allocation14]  }
  0x66   : > { %s2629_s22 = smov [#allocation16]   ;;  %s2630_s24 = smov [#allocation2]  }
  0x67   : > { %s456_s23 = sshll.u32 %s2629_s22, 4  ;;  %s351_s30 = sshll.u32 %s2630_s24, 4  ;;  %s457_s23 = int_to_ptr.vmem [resolvable:$true] %s456_s23  ;;  %s352_s30 = int_to_ptr.vmem [resolvable:$true] %s351_s30 }
  0x68   : > { %s2397_s20 = scalar_lea.hbm %s3239_s10, 16 }
  0x69   : > { %p2398_p1 = scmp.ne.s32.totalorder %s3239_s10, %s2397_s20  ;;  %p2404_p8 = scmp.lt.u32.totalorder %s2397_s20, %s3239_s10 }
  0x6b   : > { %p2400_p4 = pnand %p2398_p1, %p2761_p7 }
  0x6d   : > { %p2401_p6 = pneg %p2400_p4 }
  0x6f   : > { %p2406_p9 = pnand %p2404_p8, %p2401_p6 }
  0x71   : > { %2409 = shalt.err (!%p2406_p9)
}
  0x72   : > { %s2410_s19 = scalar_lea.vmem %s457_s23, 16  ;;  %s2417_s21 = scalar_lea.vmem %s457_s23, 32 }
  0x73   : > { %p2411_p10 = scmp.ne.s32.totalorder %s457_s23, %s2410_s19  ;;  %p2418_p13 = scmp.lt.s32.totalorder %s457_s23, %s457_s23 }
  0x74   : > { %p2419_p0 = scmp.lt.s32.totalorder %s2417_s21, %s2410_s19 }
  0x75   : > { %p2413_p11 = pnand %p2411_p10, %p2761_p7 }
  0x76   : > { %p2420_p2 = por %p2419_p0, %p2418_p13 }
  0x77   : > { %p2414_p12 = pneg %p2413_p11 }
  0x79   : > { %p2421_p3 = pnand %p2420_p2, %p2414_p12 }
  0x7b   : > { %2424 = shalt.err (!%p2421_p3)
}
  0x7c   : > { %2175 = dma.hbm_to_vmem [thread:$0]  (!%p2745_p5), %s3239_s10, 16, %s457_s23, [#allocation17]  }
  0x7d   : > { %s3251_s1 = sld [smem:[#allocation26_spill]] }
  0x83   : > { %s2425_s20 = scalar_lea.hbm %s3251_s1, 16 }
  0x84   : > { %p2426_p1 = scmp.ne.s32.totalorder %s3251_s1, %s2425_s20  ;;  %p2432_p3 = scmp.lt.u32.totalorder %s2425_s20, %s3251_s1 }
  0x86   : > { %p2428_p4 = pnand %p2426_p1, %p2761_p7 }
  0x88   : > { %p2429_p2 = pneg %p2428_p4 }
  0x8a   : > { %p2434_p6 = pnand %p2432_p3, %p2429_p2 }
  0x8c   : > { %2437 = shalt.err (!%p2434_p6)
}
  0x8d   : > { %s2438_s19 = scalar_lea.vmem %s352_s30, 16  ;;  %s2445_s23 = scalar_lea.vmem %s352_s30, 32 }
  0x8e   : > { %p2439_p8 = scmp.ne.s32.totalorder %s352_s30, %s2438_s19  ;;  %p2446_p11 = scmp.lt.s32.totalorder %s352_s30, %s352_s30 }
  0x8f   : > { %p2447_p12 = scmp.lt.s32.totalorder %s2445_s23, %s2438_s19 }
  0x90   : > { %p2441_p9 = pnand %p2439_p8, %p2761_p7 }
  0x91   : > { %p2448_p13 = por %p2447_p12, %p2446_p11 }
  0x92   : > { %p2442_p10 = pneg %p2441_p9 }
  0x94   : > { %p2449_p0 = pnand %p2448_p13, %p2442_p10 }
  0x96   : > { %2452 = shalt.err (!%p2449_p0)
}
  0x97   : > { %2148 = dma.hbm_to_vmem [thread:$0]  (!%p2745_p5), %s3251_s1, 16, %s352_s30, [#allocation3]  }
  0x98   : > { %s2631_s24 = smov [#allocation6]   ;;  %s2453_s27 = scalar_lea.hbm %s3232_s3, 512 }
  0x99   : > { %s372_s15 = sshll.u32 %s2631_s24, 4  ;;  %p2454_p1 = scmp.ne.s32.totalorder %s3232_s3, %s2453_s27  ;;  %s373_s15 = int_to_ptr.vmem [resolvable:$true] %s372_s15 }
  0x9a   : > { %p2460_p3 = scmp.lt.u32.totalorder %s2453_s27, %s3232_s3 }
  0x9b   : > { %p2456_p4 = pnand %p2454_p1, %p2761_p7 }
  0x9d   : > { %p2457_p2 = pneg %p2456_p4 }
  0x9f   : > { %p2462_p6 = pnand %p2460_p3, %p2457_p2 }
  0xa1   : > { %2465 = shalt.err (!%p2462_p6)
}
  0xa2   : > { %s2466_s30 = scalar_lea.vmem %s373_s15, 512  ;;  %p2474_p11 = scmp.lt.s32.totalorder %s373_s15, %s373_s15 }
  0xa3   : > { %p2467_p8 = scmp.ne.s32.totalorder %s373_s15, %s2466_s30  ;;  %p2475_p12 = scmp.lt.s32.totalorder %s2466_s30, %s2466_s30 }
  0xa5   : > { %p2469_p9 = pnand %p2467_p8, %p2761_p7  ;;  %p2476_p13 = por %p2475_p12, %p2474_p11 }
  0xa7   : > { %p2470_p10 = pneg %p2469_p9 }
  0xa9   : > { %p2477_p0 = pnand %p2476_p13, %p2470_p10 }
  0xab   : > { %2480 = shalt.err (!%p2477_p0)
}
  0xac   : > { %s2632_s23 = smov 128   ;;  %s2633_s21 = smov 8  }
  0xad   : > { %2154 = dma.hbm_to_vmem [thread:$0]  (!%p2745_p5), %s3232_s3, 512, %s373_s15, [#allocation5], %s2632_s23, %s2632_s23, %s2633_s21  }
  0xae   : > { %s2634_s18 = smov [#allocation9]   ;;  %s2635_s27 = smov [#allocation12]  }
  0xaf   : > { %s396_s20 = sshll.u32 %s2634_s18, 4  ;;  %s421_s16 = sshll.u32 %s2635_s27, 4  ;;  %s397_s20 = int_to_ptr.vmem [resolvable:$true] %s396_s20  ;;  %s2912_s16 = int_to_ptr.vmem [resolvable:$true] %s421_s16 }
  0xb0   : > { %s2481_s19 = scalar_lea.hbm %s3234_s5, 512 }
  0xb1   : > { %p2482_p1 = scmp.ne.s32.totalorder %s3234_s5, %s2481_s19  ;;  %p2488_p3 = scmp.lt.u32.totalorder %s2481_s19, %s3234_s5 }
  0xb3   : > { %p2484_p4 = pnand %p2482_p1, %p2761_p7 }
  0xb5   : > { %p2485_p2 = pneg %p2484_p4 }
  0xb7   : > { %p2490_p6 = pnand %p2488_p3, %p2485_p2 }
  0xb9   : > { %2493 = shalt.err (!%p2490_p6)
}
  0xba   : > { %s2494_s24 = scalar_lea.vmem %s397_s20, 512  ;;  %p2502_p11 = scmp.lt.s32.totalorder %s397_s20, %s397_s20 }
  0xbb   : > { %p2495_p8 = scmp.ne.s32.totalorder %s397_s20, %s2494_s24  ;;  %p2503_p12 = scmp.lt.s32.totalorder %s2494_s24, %s2494_s24 }
  0xbd   : > { %p2497_p9 = pnand %p2495_p8, %p2761_p7  ;;  %p2504_p13 = por %p2503_p12, %p2502_p11 }
  0xbf   : > { %p2498_p10 = pneg %p2497_p9 }
  0xc1   : > { %p2505_p0 = pnand %p2504_p13, %p2498_p10 }
  0xc3   : > { %2508 = shalt.err (!%p2505_p0)
}
  0xc4   : > { %2160 = dma.hbm_to_vmem [thread:$0]  (!%p2745_p5), %s3234_s5, 512, %s397_s20, [#allocation8], %s2632_s23, %s2632_s23, %s2633_s21  }
  0xc5   : > { %s2509_s25 = scalar_lea.hbm %s3236_s7, 16 }
  0xc6   : > { %p2510_p1 = scmp.ne.s32.totalorder %s3236_s7, %s2509_s25  ;;  %p2516_p3 = scmp.lt.u32.totalorder %s2509_s25, %s3236_s7 }
  0xc8   : > { %p2512_p4 = pnand %p2510_p1, %p2761_p7 }
  0xca   : > { %p2513_p2 = pneg %p2512_p4 }
  0xcc   : > { %p2518_p6 = pnand %p2516_p3, %p2513_p2 }
  0xce   : > { %2521 = shalt.err (!%p2518_p6)
}
  0xcf   : > { %s2522_s20 = scalar_lea.vmem %s2912_s16, 16  ;;  %s2529_s24 = scalar_lea.vmem %s2912_s16, 32 }
  0xd0   : > { %p2523_p8 = scmp.ne.s32.totalorder %s2912_s16, %s2522_s20  ;;  %p2530_p11 = scmp.lt.s32.totalorder %s2912_s16, %s2912_s16 }
  0xd1   : > { %p2531_p12 = scmp.lt.s32.totalorder %s2529_s24, %s2522_s20 }
  0xd2   : > { %p2525_p9 = pnand %p2523_p8, %p2761_p7 }
  0xd3   : > { %p2532_p13 = por %p2531_p12, %p2530_p11 }
  0xd4   : > { %p2526_p10 = pneg %p2525_p9 }
  0xd6   : > { %p2533_p0 = pnand %p2532_p13, %p2526_p10 }
  0xd8   : > { %2536 = shalt.err (!%p2533_p0)
}
  0xd9   : > { %2166 = dma.hbm_to_vmem [thread:$0]  (!%p2745_p5), %s3236_s7, 16, %s2912_s16, [#allocation11]  }
  0xda   : > { %s2636_s27 = smov [#allocation15]   ;;  %s2637_s25 = smov [#allocation18]  }
  0xdb   : > { %s442_s14 = sshll.u32 %s2636_s27, 4  ;;  %s470_s19 = sshll.u32 %s2637_s25, 4  ;;  %s443_s14 = int_to_ptr.vmem [resolvable:$true] %s442_s14  ;;  %s2959_s19 = int_to_ptr.vmem [resolvable:$true] %s470_s19 }
  0xdc   : > { %s2537_s15 = scalar_lea.hbm %s3238_s9, 512 }
  0xdd   : > { %p2538_p1 = scmp.ne.s32.totalorder %s3238_s9, %s2537_s15  ;;  %p2544_p3 = scmp.lt.u32.totalorder %s2537_s15, %s3238_s9 }
  0xdf   : > { %p2540_p4 = pnand %p2538_p1, %p2761_p7 }
  0xe1   : > { %p2541_p2 = pneg %p2540_p4 }
  0xe3   : > { %p2546_p6 = pnand %p2544_p3, %p2541_p2 }
  0xe5   : > { %2549 = shalt.err (!%p2546_p6)
}
  0xe6   : > { %s2550_s18 = scalar_lea.vmem %s443_s14, 512  ;;  %p2558_p11 = scmp.lt.s32.totalorder %s443_s14, %s443_s14 }
  0xe7   : > { %p2551_p8 = scmp.ne.s32.totalorder %s443_s14, %s2550_s18  ;;  %p2559_p12 = scmp.lt.s32.totalorder %s2550_s18, %s2550_s18 }
  0xe9   : > { %p2553_p9 = pnand %p2551_p8, %p2761_p7  ;;  %p2560_p13 = por %p2559_p12, %p2558_p11 }
  0xeb   : > { %p2554_p10 = pneg %p2553_p9 }
  0xed   : > { %p2561_p0 = pnand %p2560_p13, %p2554_p10 }
  0xef   : > { %2564 = shalt.err (!%p2561_p0)
}
  0xf0   : > { %2172 = dma.hbm_to_vmem [thread:$0]  (!%p2745_p5), %s3238_s9, 512, %s443_s14, [#allocation14], %s2632_s23, %s2632_s23, %s2633_s21  }
  0xf1   : > { %s2565_s15 = scalar_lea.hbm %s3241_s12, 16 }
  0xf2   : > { %p2566_p1 = scmp.ne.s32.totalorder %s3241_s12, %s2565_s15  ;;  %p2572_p3 = scmp.lt.u32.totalorder %s2565_s15, %s3241_s12 }
  0xf4   : > { %p2568_p4 = pnand %p2566_p1, %p2761_p7 }
  0xf6   : > { %p2569_p2 = pneg %p2568_p4 }
  0xf8   : > { %p2574_p6 = pnand %p2572_p3, %p2569_p2 }
  0xfa   : > { %2577 = shalt.err (!%p2574_p6)
}
  0xfb   : > { %s2578_s23 = scalar_lea.vmem %s2959_s19, 16  ;;  %s2585_s21 = scalar_lea.vmem %s2959_s19, 32 }
  0xfc   : > { %p2579_p8 = scmp.ne.s32.totalorder %s2959_s19, %s2578_s23  ;;  %p2586_p11 = scmp.lt.s32.totalorder %s2959_s19, %s2959_s19 }
  0xfd   : > { %p2587_p12 = scmp.lt.s32.totalorder %s2585_s21, %s2578_s23 }
  0xfe   : > { %p2581_p9 = pnand %p2579_p8, %p2761_p7 }
  0xff   : > { %p2588_p13 = por %p2587_p12, %p2586_p11 }
 0x100   : > { %p2582_p10 = pneg %p2581_p9 }
 0x102   : > { %p2589_p0 = pnand %p2588_p13, %p2582_p10 }
 0x104   : > { %2592 = shalt.err (!%p2589_p0)
}
 0x105   : > { %2178 = dma.hbm_to_vmem [thread:$0]  (!%p2745_p5), %s3241_s12, 16, %s2959_s19, [#allocation17]  }
 0x106   : > { %p3252_p1 = scmp.ne.s32.totalorder %s3248_s29, 0 }
 0x107   : > { %p3253_p7 = scmp.eq.s32.totalorder (!%p3252_p1), %s2728_s28, 0 }
 0x108   : > { %491 = sbr.rel (%p3252_p1) target bundleno = 4146 (0x1032), region = 72 }
 0x10f   : > { %2598 = dma.done.wait (%p3253_p7), [#allocation3], 16   ;;  %p3254_p4 = pmov %p3253_p7 }
 0x111   : > { %2600 = vsyncadd (%p3254_p4), [#allocation3], 4294967280  ;;  %p3255_p2 = pmov %p3254_p4 }
 0x113   : > { %2602 = dma.done.wait (%p3255_p2), [#allocation5], 528   ;;  %p3256_p3 = pmov %p3255_p2 }
 0x114   : > { %p3257_p6 = pmov %p3255_p2 }
 0x115   : > { %2604 = vsyncadd (%p3256_p3), [#allocation5], 4294966768 }
 0x116   : > { %2606 = dma.done.wait (%p3257_p6), [#allocation8], 528   ;;  %p3258_p5 = pmov %p3255_p2 }
 0x117   : > { %p3259_p8 = pmov %p3255_p2 }
 0x118   : > { %2608 = vsyncadd (%p3258_p5), [#allocation8], 4294966768 }
 0x119   : > { %2610 = dma.done.wait (%p3259_p8), [#allocation11], 32   ;;  %p3260_p9 = pmov %p3255_p2 }
 0x11a   : > { %p3261_p10 = pmov %p3255_p2 }
 0x11b   : > { %2612 = vsyncadd (%p3260_p9), [#allocation11], 4294967264 }
 0x11c   : > { %2614 = dma.done.wait (%p3261_p10), [#allocation14], 528   ;;  %p3262_p11 = pmov %p3255_p2 }
 0x11d   : > { %p3263_p12 = pmov %p3255_p2 }
 0x11e   : > { %2616 = vsyncadd (%p3262_p11), [#allocation14], 4294966768 }
 0x11f   : > { %2618 = dma.done.wait (%p3263_p12), [#allocation17], 32   ;;  %p3264_p13 = pmov %p3255_p2 }
 0x120   : > { %p575_p0 = scmp.lt.s32.totalorder %s2728_s28, 1  ;;  %vm590_vm0 = vcmask 261120   ;;  %vm594_vm1 = vcmask 253952   ;;  %v635_v14 = vld [vmem:[#allocation6] sm:$0xff]  ;;  %v636_v15 = vld [vmem:[#allocation6 + $0x8] sm:$0xff]  ;;  %v2638_v17 = vmov 0.0  }
 0x121   : > { %2620 = vsyncadd (%p3264_p13), [#allocation17], 4294967264  ;;  %v640_v16 = vpack.c.bf16 %v636_v15, %v635_v14  ;;  %2001 = vmatprep.subr.bf16.mxu0 %v2638_v17  ;;  %v637_v18 = vld [vmem:[#allocation6 + $0x10] sm:$0xff]  ;;  %v638_v19 = vld [vmem:[#allocation6 + $0x18] sm:$0xff]  ;;  %2015 = vmatprep.subr.bf16.mxu1 %v2638_v17  ;;  %vm2639_vm2 = vmmov 0   ;;  %s2640_s27 = smov 96  }
 0x122   : > { %s3267_s28 = smov (!%p575_p0, %s2728_s28), 1  ;;  %v641_v20 = vpack.c.bf16 %v638_v19, %v637_v18  ;;  %2005 = vmatprep.mubr.msk.bf16.mxu0 %vm2639_vm2, %v2638_v17  ;;  %2017 = vmatprep.mubr.msk.bf16.mxu1 %vm2639_vm2, %v2638_v17  ;;  %v1939_v29 = vld [vmem:[#allocation2] ss:$0 sm:$0xff]  ;;  %v1940_v33 = vld [vmem:[#allocation4] ss:$0 sm:$0xff]  ;;  %s2641_s25 = smov 120  }
 0x123   : > { %s1964_s29 = sshll.u32 %s3267_s28, 4  ;;  %2002 = vmatpush3.bf16.msra.mxu0 %v640_v16  ;;  %v1941_v38 = vld [vmem:[#allocation7] ss:$0 sm:$0xff]  ;;  %s2642_s30 = smov 88   ;;  %vm743_vm3 = vcmask 1043456   ;;  %vm739_vm4 = vcmask 64512  }
 0x124   : > { %s579_s19 = scalar_lea.vmem %s3229_s0, %s1964_s29  ;;  %2003 = vmatprep.subr.bf16.mxu0 %v2638_v17  ;;  %vm790_vm5 = vcmask 72704   ;;  %vm794_vm6 = vcmask 65536   ;;  %s2643_s22 = smov 64   ;;  %vm821_vm7 = vcmask 1044480   ;;  %vm1697_vm8 = vcmask 523264  }
 0x125   : > { %v3042_v0 = vld [vmem:[%s579_s19] sm:$0xff]  ;;  %v3044_v1 = vld [vmem:[%s579_s19 + $0x8] sm:$0x1]  ;;  %s2644_s15 = smov 80   ;;  %s2645_s20 = smov 56  }
 0x126   : > { %v591_v2 = vsel %vm590_vm0, %v3042_v0, 0.0  ;;  %v595_v3 = vsel %vm594_vm1, %v3044_v1, 0.0  ;;  %s2646_s24 = smov 112   ;;  %s2648_s1 = smov 72  }
 0x127   : > { %592 = vadd.xlane.f32.xlu0 %v591_v2  ;;  %2004 = vmatpush3.bf16.msra.mxu0 %v641_v20  ;;  %s2649_s16 = smov 104   ;;  %s2650_s23 = smov 48  }
 0x128   : > { %2009 = vmatprep.subr.bf16.mxu0 %v2638_v17  ;;  %s2651_s21 = smov 40   ;;  %s584_s17 = scalar_lea.vmem %s3242_s13, %s1964_s29 }
 0x12b   : > { %596 = vadd.xlane.f32.xlu0 %v595_v3 }
 0x1b4   : > { %v593_v4 = vpop.xlane.xlu0 %592 }
 0x1b5   : > { %v599_v5 = vmul.f32 0.03125, %v593_v4 }
 0x1b7   : > { %v601_v6 = vsub.f32 %v3042_v0, %v599_v5 }
 0x1b8   : > { %v597_v7 = vpop.xlane.xlu0 %596 }
 0x1b9   : > { %v600_v8 = vmul.f32 0.03125, %v597_v7  ;;  %v603_v9 = vmul.f32 %v601_v6, %v601_v6 }
 0x1bb   : > { %v602_v10 = vsub.f32 %v3044_v1, %v600_v8  ;;  %v605_v11 = vsel %vm590_vm0, %v603_v9, 0.0 }
 0x1bc   : > { %606 = vadd.xlane.f32.xlu1 %v605_v11 }
 0x1bd   : > { %v604_v12 = vmul.f32 %v602_v10, %v602_v10 }
 0x1bf   : > { %v608_v13 = vsel %vm594_vm1, %v604_v12, 0.0 }
 0x1c0   : > { %609 = vadd.xlane.f32.xlu1 %v608_v13 }
 0x249   : > { %v607_v21 = vpop.xlane.xlu1 %606 }
 0x24a   : > { %v611_v22 = vmul.f32 0.03125, %v607_v21 }
 0x24c   : > { %v613_v23 = vadd.f32 1e-05, %v611_v22 }
 0x24d   : > { %v610_v24 = vpop.xlane.xlu1 %609 }
 0x24e   : > { %2241 = vrsqrt.f32 %v613_v23  ;;  %v612_v25 = vmul.f32 0.03125, %v610_v24 }
 0x250   : > { %v614_v26 = vadd.f32 1e-05, %v612_v25 }
 0x252   : > { %2243 = vrsqrt.f32 %v614_v26 }
 0x258   : > { %v2242_v27 = vpop.eup %2241 }
 0x259   : > { %v617_v28 = vmul.f32 %v2242_v27, %v601_v6 }
 0x25b   : > { %v625_v32 = vmul.f32 %v1939_v29, %v617_v28 }
 0x25c   : > { %v2244_v30 = vpop.eup %2243 }
 0x25d   : > { %v618_v31 = vmul.f32 %v2244_v30, %v602_v10  ;;  %v633_v35 = vadd.f32 %v1940_v33, %v625_v32 }
 0x25f   : > { %v626_v34 = vmul.f32 %v1939_v29, %v618_v31 }
 0x261   : > { %v634_v36 = vadd.f32 %v1940_v33, %v626_v34  ;;  %v2647_v34 = vmov 65535  }
 0x263   : > { %v639_v37 = vpack.c.bf16 %v634_v36, %v633_v35  ;;  %v822_v35 = vsel %vm743_vm3, 4294967295, %v2647_v34 }
 0x265   : > { %2006 = vmatmul.mubr.msk.bf16.vlgmr.msra.gmra.mrb[0].mxu0 %vm590_vm0, %v639_v37  ;;  %v3103_v37 = vsel %vm821_vm7, %v822_v35, 0 }
 0x266   : > { %2011 = vmatprep.mubr.msk.bf16.mxu0 %vm2639_vm2, %v2638_v17 }
 0x338   : > { %v686_v39 = vpop.f32.mrb[0].mxu0 }
 0x339   : > { %v3065_v40 = vadd.f32 %v1941_v38, %v686_v39  ;;  %v2007_v41 = vpop.f32.mrb[1].mxu0 }
 0x33a   : > { %v689_v42 = vpop.f32.mrb[2].mxu0 }
 0x33b   : > { %v3067_v43 = vadd.f32 %v1941_v38, %v689_v42  ;;  %699 = vrot.lane.b32.xlu0 %v3065_v40, %s2640_s27  ;;  %v2008_v44 = vpop.f32.mrb[3].mxu0 }
 0x33d   : > { %v3072_v45 = vpack.c.bf16 %v3067_v43, %v3065_v40  ;;  %701 = vrot.lane.b32.xlu1 %v3067_v43, %s2640_s27  ;;  %v2236_v35 = vpack.i.bf16 %v3067_v43, %v3065_v40 }
 0x33f   : > { %909 = vrot.lane.b32.xlu0 %v3072_v45, %s2641_s25 }
 0x341   : > { %870 = vrot.lane.b32.xlu1 %v3065_v40, %s2642_s30 }
 0x345   : > { %872 = vrot.lane.b32.xlu1 %v3067_v43, %s2642_s30 }
 0x3ad   : > { %v700_v46 = vpop.permute.xlu0 %699 }
 0x3ae   : > { %705 = vxpose.xlu1.b32.start [1/2] (short) (narrow) %v700_v46, 8 }
 0x3af   : > { %v702_v47 = vpop.permute.xlu1 %701 }
 0x3b1   : > { %v910_v52 = vpop.permute.xlu0 %909 }
 0x3b2   : > { %706 = vxpose.xlu1.b32.end [2/2] (short) (narrow) %v702_v47, 8 }
 0x3b3   : > { %v871_v48 = vpop.permute.xlu1 %870 }
 0x3b4   : > { %876 = vxpose.xlu0.b32.start [1/2] (short) (narrow) %v871_v48, 8 }
 0x3b7   : > { %v873_v49 = vpop.permute.xlu1 %872 }
 0x3b8   : > { %877 = vxpose.xlu0.b32.end [2/2] (short) (narrow) %v873_v49, 8 }
 0x42e   : > { %v721_v50 = vpop.trf.xlu1 }
 0x42f   : > { %v738_v51 = vpack.c.bf16 %v721_v50, %v721_v50 }
 0x431   : > { %v745_v53 = vsel %vm743_vm3, %v738_v51, 0 }
 0x432   : > { %2010 = vmatpush3.bf16.msra.mxu0 %v745_v53 }
 0x433   : > { %2021 = vmatprep.subr.bf16.mxu0 %v2638_v17 }
 0x434   : > { %v892_v54 = vpop.trf.xlu0 }
 0x435   : > { %2012 = vmatmul.mubr.msk.bf16.vlgmr.msra.gmra.mrb[4].mxu0 %vm739_vm4, %v3072_v45  ;;  %v908_v55 = vpack.c.bf16 %v892_v54, %v892_v54 }
 0x436   : > { %2023 = vmatprep.mubr.msk.bf16.mxu0 %vm2639_vm2, %v2638_v17 }
 0x437   : > { %v915_v56 = vsel %vm743_vm3, %v908_v55, 0 }
 0x438   : > { %2022 = vmatpush3.bf16.msra.mxu0 %v915_v56 }
 0x439   : > { %2033 = vmatprep.subr.bf16.mxu0 %v2638_v17 }
 0x43d   : > { %2024 = vmatmul.mubr.msk.bf16.vlgmr.msra.gmra.mrb[8].mxu0 %vm739_vm4, %v910_v52 }
 0x43e   : > { %2035 = vmatprep.mubr.msk.bf16.mxu0 %vm2639_vm2, %v2638_v17 }
 0x508   : > { %v781_v57 = vpop.f32.mrb[4].mxu0 }
 0x509   : > { %v788_v58 = vmul.f32 0.35355338, %v781_v57  ;;  %v2013_v59 = vpop.f32.mrb[5].mxu0 }
 0x50a   : > { %v784_v60 = vpop.f32.mrb[6].mxu0 }
 0x50b   : > { %v789_v61 = vmul.f32 0.35355338, %v784_v60  ;;  %v2014_v62 = vpop.f32.mrb[7].mxu0  ;;  %v791_v63 = vsel %vm790_vm5, %v788_v58, -inf }
 0x50c   : > { %792 = vmax.xlane.f32.xlu0 %v791_v63 }
 0x50d   : > { %v795_v2 = vsel %vm794_vm6, %v789_v61, -inf }
 0x50e   : > { %796 = vmax.xlane.f32.xlu1 %v795_v2 }
 0x510   : > { %v951_v3 = vpop.f32.mrb[8].mxu0 }
 0x511   : > { %v958_v4 = vmul.f32 0.35355338, %v951_v3  ;;  %v2025_v5 = vpop.f32.mrb[9].mxu0 }
 0x512   : > { %v954_v6 = vpop.f32.mrb[10].mxu0 }
 0x513   : > { %v959_v7 = vmul.f32 0.35355338, %v954_v6  ;;  %v2026_v8 = vpop.f32.mrb[11].mxu0  ;;  %v960_v9 = vsel %vm790_vm5, %v958_v4, -inf }
 0x514   : > { %961 = vmax.xlane.f32.xlu0 %v960_v9 }
 0x515   : > { %v963_v10 = vsel %vm794_vm6, %v959_v7, -inf }
 0x518   : > { %964 = vmax.xlane.f32.xlu0 %v963_v10 }
 0x599   : > { %v793_v11 = vpop.xlane.xlu0 %792 }
 0x59a   : > { %v798_v12 = vsub.f32 %v788_v58, %v793_v11  ;;  %v693_v58 = vld [vmem:[#allocation9] sm:$0xff] }
 0x59b   : > { %v797_v13 = vpop.xlane.xlu1 %796  ;;  %v869_v59 = vpack.c.bf16 %v693_v58, %v693_v58 }
 0x59c   : > { %v800_v14 = vmul.f32 1.442695, %v798_v12  ;;  %v799_v15 = vsub.f32 %v789_v61, %v797_v13  ;;  %v694_v61 = vld [vmem:[#allocation9 + $0x8] sm:$0xff] }
 0x59d   : > { %v1085_v60 = vsel %vm743_vm3, %v869_v59, 0  ;;  %v1033_v62 = vpack.c.bf16 %v694_v61, %v694_v61 }
 0x59e   : > { %2245 = vpow2.f32 %v800_v14  ;;  %v802_v16 = vmul.f32 1.442695, %v799_v15 }
 0x59f   : > { %v1038_v63 = vsel %vm743_vm3, %v1033_v62, 0 }
 0x5a0   : > { %2247 = vpow2.f32 %v802_v16  ;;  %2034 = vmatpush3.bf16.msra.mxu0 %v1038_v63 }
 0x5a1   : > { %v962_v18 = vpop.xlane.xlu0 %961  ;;  %2045 = vmatprep.subr.bf16.mxu0 %v2638_v17 }
 0x5a2   : > { %v966_v19 = vsub.f32 %v958_v4, %v962_v18 }
 0x5a4   : > { %v968_v20 = vmul.f32 1.442695, %v966_v19 }
 0x5a5   : > { %v965_v21 = vpop.xlane.xlu0 %964 }
 0x5a6   : > { %2249 = vpow2.f32 %v968_v20  ;;  %v967_v22 = vsub.f32 %v959_v7, %v965_v21 }
 0x5a8   : > { %v2246_v23 = vpop.eup %2245  ;;  %v970_v24 = vmul.f32 1.442695, %v967_v22 }
 0x5a9   : > { %v804_v25 = vsel %vm790_vm5, %v2246_v23, 0.0 }
 0x5aa   : > { %v2248_v26 = vpop.eup %2247  ;;  %2251 = vpow2.f32 %v970_v24  ;;  %805 = vadd.xlane.f32.xlu1 %v804_v25 }
 0x5ab   : > { %v807_v27 = vsel %vm794_vm6, %v2248_v26, 0.0 }
 0x5ac   : > { %808 = vadd.xlane.f32.xlu0 %v807_v27 }
 0x5b0   : > { %v2250_v28 = vpop.eup %2249 }
 0x5b1   : > { %v972_v29 = vsel %vm790_vm5, %v2250_v28, 0.0 }
 0x5b2   : > { %973 = vadd.xlane.f32.xlu1 %v972_v29 }
 0x5b4   : > { %v2252_v30 = vpop.eup %2251 }
 0x5b5   : > { %v975_v31 = vsel %vm794_vm6, %v2252_v30, 0.0 }
 0x5b6   : > { %976 = vadd.xlane.f32.xlu0 %v975_v31 }
 0x5c3   : > { %816 = vrot.lane.b32.xlu1 %v3072_v45, %s2643_s22 }
 0x5c7   : > { %1128 = vrot.lane.b32.xlu1 %v3065_v40, %s2644_s15 }
 0x5cb   : > { %1130 = vrot.lane.b32.xlu1 %v3067_v43, %s2644_s15 }
 0x5cc   : > { %983 = vrot.lane.b32.xlu0 %v3072_v45, %s2645_s20 }
 0x5cf   : > { %1167 = vrot.lane.b32.xlu1 %v3072_v45, %s2646_s24 }
 0x637   : > { %v806_v32 = vpop.xlane.xlu1 %805 }
 0x638   : > { %2253 = vrcp.f32 %v806_v32 }
 0x639   : > { %v809_v33 = vpop.xlane.xlu0 %808 }
 0x63a   : > { %2255 = vrcp.f32 %v809_v33 }
 0x63f   : > { %v974_v36 = vpop.xlane.xlu1 %973 }
 0x640   : > { %2257 = vrcp.f32 %v974_v36 }
 0x642   : > { %v2254_v38 = vpop.eup %2253 }
 0x643   : > { %v817_v39 = vpop.permute.xlu1 %816  ;;  %v977_v41 = vpop.xlane.xlu0 %976  ;;  %v812_v46 = vmul.f32 %v2254_v38, %v2246_v23 }
 0x644   : > { %v2256_v42 = vpop.eup %2255  ;;  %v825_v44 = vand.u32 %v3103_v37, %v817_v39  ;;  %2259 = vrcp.f32 %v977_v41 }
 0x645   : > { %v813_v47 = vmul.f32 %v2256_v42, %v2248_v26 }
 0x646   : > { %2016 = vmatpush3.bf16.msra.mxu1 %v825_v44 }
 0x647   : > { %v1129_v48 = vpop.permute.xlu1 %1128  ;;  %v984_v49 = vpop.permute.xlu0 %983  ;;  %v814_v50 = vpack.c.bf16 %v813_v47, %v812_v46  ;;  %2027 = vmatprep.subr.bf16.mxu1 %v2638_v17 }
 0x648   : > { %v989_v51 = vand.u32 %v984_v49, %v3103_v37  ;;  %1134 = vxpose.xlu0.b32.start [1/2] (short) (narrow) %v1129_v48, 8 }
 0x649   : > { %2018 = vmatmul.mubr.msk.bf16.vlgmr.msra.gmra.mrb[0].mxu1 %vm790_vm5, %v814_v50 }
 0x64a   : > { %2028 = vmatpush3.bf16.msra.mxu1 %v989_v51  ;;  %2029 = vmatprep.mubr.msk.bf16.mxu1 %vm2639_vm2, %v2638_v17  ;;  %v2258_v53 = vpop.eup %2257 }
 0x64b   : > { %v1131_v52 = vpop.permute.xlu1 %1130  ;;  %2039 = vmatprep.subr.bf16.mxu1 %v2638_v17  ;;  %v980_v55 = vmul.f32 %v2258_v53, %v2250_v28 }
 0x64c   : > { %1135 = vxpose.xlu0.b32.end [2/2] (short) (narrow) %v1131_v52, 8 }
 0x64e   : > { %v2260_v54 = vpop.eup %2259 }
 0x64f   : > { %v981_v56 = vmul.f32 %v2260_v54, %v2252_v30  ;;  %v1168_v15 = vpop.permute.xlu1 %1167 }
 0x651   : > { %v982_v57 = vpack.c.bf16 %v981_v56, %v980_v55 }
 0x653   : > { %2030 = vmatmul.mubr.msk.bf16.vlgmr.msra.gmra.mrb[4].mxu1 %vm790_vm5, %v982_v57 }
 0x654   : > { %2041 = vmatprep.mubr.msk.bf16.mxu1 %vm2639_vm2, %v2638_v17  ;;  %2040 = vmatpush3.bf16.msra.mxu1 %v1085_v60 }
 0x655   : > { %2051 = vmatprep.subr.bf16.mxu1 %v2638_v17 }
 0x6c8   : > { %v1150_v7 = vpop.trf.xlu0 }
 0x6c9   : > { %v1166_v8 = vpack.c.bf16 %v1150_v7, %v1150_v7 }
 0x6cb   : > { %v1173_v14 = vsel %vm743_vm3, %v1166_v8, 0 }
 0x71c   : > { %v861_v2 = vpop.f32.mrb[0].mxu1 }
 0x71d   : > { %v2019_v3 = vpop.f32.mrb[1].mxu1 }
 0x71e   : > { %v864_v4 = vpop.f32.mrb[2].mxu1 }
 0x71f   : > { %v868_v5 = vpack.c.bf16 %v864_v4, %v861_v2  ;;  %v2020_v6 = vpop.f32.mrb[3].mxu1  ;;  %v695_v2 = vld [vmem:[#allocation9 + $0x10] sm:$0xff] }
 0x720   : > { %v1291_v3 = vpack.c.bf16 %v695_v2, %v695_v2 }
 0x721   : > { %2042 = vmatmul.mubr.msk.bf16.vlgmr.msra.gmra.mrb[8].mxu1 %vm739_vm4, %v868_v5 }
 0x722   : > { %2053 = vmatprep.mubr.msk.bf16.mxu1 %vm2639_vm2, %v2638_v17  ;;  %v1296_v4 = vsel %vm743_vm3, %v1291_v3, 0 }
 0x726   : > { %v1025_v9 = vpop.f32.mrb[4].mxu1 }
 0x727   : > { %v2031_v10 = vpop.f32.mrb[5].mxu1 }
 0x728   : > { %v1028_v11 = vpop.f32.mrb[6].mxu1 }
 0x729   : > { %v1032_v12 = vpack.c.bf16 %v1028_v11, %v1025_v9  ;;  %v2032_v13 = vpop.f32.mrb[7].mxu1 }
 0x72b   : > { %2036 = vmatmul.mubr.msk.bf16.vlgmr.msra.gmra.mrb[12].mxu0 %vm739_vm4, %v1032_v12 }
 0x72c   : > { %2046 = vmatpush3.bf16.msra.mxu0 %v1173_v14  ;;  %2047 = vmatprep.mubr.msk.bf16.mxu0 %vm2639_vm2, %v2638_v17 }
 0x72d   : > { %2057 = vmatprep.subr.bf16.mxu0 %v2638_v17 }
 0x733   : > { %2048 = vmatmul.mubr.msk.bf16.vlgmr.msra.gmra.mrb[16].mxu0 %vm739_vm4, %v1168_v15 }
 0x734   : > { %2059 = vmatprep.mubr.msk.bf16.mxu0 %vm2639_vm2, %v2638_v17  ;;  %2058 = vmatpush3.bf16.msra.mxu0 %v1296_v4 }
 0x735   : > { %2069 = vmatprep.subr.bf16.mxu0 %v2638_v17 }
 0x7f4   : > { %v1121_v16 = vpop.f32.mrb[8].mxu1 }
 0x7f5   : > { %v2043_v18 = vpop.f32.mrb[9].mxu1 }
 0x7f6   : > { %v1124_v19 = vpop.f32.mrb[10].mxu1 }
 0x7f7   : > { %v2044_v20 = vpop.f32.mrb[11].mxu1 }
 0x7fe   : > { %v1074_v21 = vpop.f32.mrb[12].mxu0 }
 0x7ff   : > { %v3130_v22 = vadd.f32 %v1121_v16, %v1074_v21  ;;  %v2037_v23 = vpop.f32.mrb[13].mxu0 }
 0x800   : > { %v1077_v24 = vpop.f32.mrb[14].mxu0 }
 0x801   : > { %v3132_v25 = vadd.f32 %v1124_v19, %v1077_v24  ;;  %v2038_v26 = vpop.f32.mrb[15].mxu0 }
 0x806   : > { %v1209_v27 = vpop.f32.mrb[16].mxu0 }
 0x807   : > { %v1216_v28 = vmul.f32 0.35355338, %v1209_v27  ;;  %v2049_v29 = vpop.f32.mrb[17].mxu0 }
 0x808   : > { %v1212_v30 = vpop.f32.mrb[18].mxu0 }
 0x809   : > { %v1217_v31 = vmul.f32 0.35355338, %v1212_v30  ;;  %v2050_v32 = vpop.f32.mrb[19].mxu0  ;;  %v1218_v33 = vsel %vm790_vm5, %v1216_v28, -inf }
 0x80a   : > { %1219 = vmax.xlane.f32.xlu1 %v1218_v33 }
 0x80b   : > { %v1221_v34 = vsel %vm794_vm6, %v1217_v31, -inf }
 0x80c   : > { %1222 = vmax.xlane.f32.xlu0 %v1221_v34 }
 0x81b   : > { %2237 = vrot.lane.b32.xlu1 %v2236_v35, %s2648_s1 }
 0x897   : > { %v1220_v36 = vpop.xlane.xlu1 %1219 }
 0x898   : > { %v1224_v38 = vsub.f32 %v1216_v28, %v1220_v36 }
 0x899   : > { %v1223_v39 = vpop.xlane.xlu0 %1222 }
 0x89a   : > { %v1226_v41 = vmul.f32 1.442695, %v1224_v38  ;;  %v1225_v42 = vsub.f32 %v1217_v31, %v1223_v39 }
 0x89b   : > { %v2238_v40 = vpop.permute.xlu1 %2237 }
 0x89c   : > { %2261 = vpow2.f32 %v1226_v41  ;;  %v1228_v44 = vmul.f32 1.442695, %v1225_v42  ;;  %v2239_v43 = vunpack.i.l.bf16 %v2238_v40  ;;  %v2240_v50 = vunpack.i.h.bf16 %v2238_v40 }
 0x89e   : > { %2263 = vpow2.f32 %v1228_v44 }
 0x8a6   : > { %v2262_v46 = vpop.eup %2261 }
 0x8a7   : > { %v1230_v47 = vsel %vm790_vm5, %v2262_v46, 0.0 }
 0x8a8   : > { %v2264_v48 = vpop.eup %2263  ;;  %1231 = vadd.xlane.f32.xlu1 %v1230_v47 }
 0x8a9   : > { %v1233_v49 = vsel %vm794_vm6, %v2264_v48, 0.0 }
 0x8aa   : > { %1234 = vadd.xlane.f32.xlu0 %v1233_v49 }
 0x8b9   : > { %1380 = vrot.lane.b32.xlu1 %v3072_v45, %s2649_s16 }
 0x8c0   : > { %1241 = vrot.lane.b32.xlu0 %v3072_v45, %s2650_s23 }
 0x8de   : > { %1347 = vxpose.xlu0.b32.start [1/2] (short) (narrow) %v2239_v43, 8 }
 0x8e2   : > { %1348 = vxpose.xlu0.b32.end [2/2] (short) (narrow) %v2240_v50, 8 }
 0x935   : > { %v1232_v51 = vpop.xlane.xlu1 %1231 }
 0x936   : > { %2265 = vrcp.f32 %v1232_v51 }
 0x937   : > { %v1235_v52 = vpop.xlane.xlu0 %1234 }
 0x938   : > { %2267 = vrcp.f32 %v1235_v52 }
 0x939   : > { %v1381_v63 = vpop.permute.xlu1 %1380 }
 0x93b   : > { %v1242_v53 = vpop.permute.xlu0 %1241 }
 0x93c   : > { %v1247_v54 = vand.u32 %v1242_v53, %v3103_v37 }
 0x93e   : > { %2052 = vmatpush3.bf16.msra.mxu1 %v1247_v54 }
 0x93f   : > { %2063 = vmatprep.subr.bf16.mxu1 %v2638_v17 }
 0x940   : > { %v2266_v55 = vpop.eup %2265 }
 0x941   : > { %v1238_v57 = vmul.f32 %v2266_v55, %v2262_v46  ;;  %v1955_v55 = vld [vmem:[#allocation10] ss:$0 sm:$0xff] }
 0x942   : > { %v2268_v56 = vpop.eup %2267 }
 0x943   : > { %v1239_v58 = vmul.f32 %v2268_v56, %v2264_v48 }
 0x945   : > { %v1240_v59 = vpack.c.bf16 %v1239_v58, %v1238_v57 }
 0x947   : > { %2054 = vmatmul.mubr.msk.bf16.vlgmr.msra.gmra.mrb[12].mxu1 %vm790_vm5, %v1240_v59 }
 0x948   : > { %2065 = vmatprep.mubr.msk.bf16.mxu1 %vm2639_vm2, %v2638_v17 }
 0x95e   : > { %v1363_v60 = vpop.trf.xlu0 }
 0x95f   : > { %v1379_v61 = vpack.c.bf16 %v1363_v60, %v1363_v60 }
 0x961   : > { %v1386_v62 = vsel %vm743_vm3, %v1379_v61, 0 }
 0x962   : > { %2064 = vmatpush3.bf16.msra.mxu1 %v1386_v62 }
 0x963   : > { %2075 = vmatprep.subr.bf16.mxu1 %v2638_v17 }
 0x965   : > { %2066 = vmatmul.mubr.msk.bf16.vlgmr.msra.gmra.mrb[16].mxu1 %vm739_vm4, %v1381_v63 }
 0x966   : > { %2077 = vmatprep.mubr.msk.bf16.mxu1 %vm2639_vm2, %v2638_v17 }
 0xa1a   : > { %v1283_v5 = vpop.f32.mrb[12].mxu1 }
 0xa1b   : > { %v2055_v6 = vpop.f32.mrb[13].mxu1 }
 0xa1c   : > { %v1286_v7 = vpop.f32.mrb[14].mxu1 }
 0xa1d   : > { %v1290_v8 = vpack.c.bf16 %v1286_v7, %v1283_v5  ;;  %v2056_v9 = vpop.f32.mrb[15].mxu1 }
 0xa1f   : > { %2060 = vmatmul.mubr.msk.bf16.vlgmr.msra.gmra.mrb[20].mxu0 %vm739_vm4, %v1290_v8 }
 0xa20   : > { %2071 = vmatprep.mubr.msk.bf16.mxu0 %vm2639_vm2, %v2638_v17 }
 0xa38   : > { %v1422_v10 = vpop.f32.mrb[16].mxu1 }
 0xa39   : > { %v1429_v11 = vmul.f32 0.35355338, %v1422_v10  ;;  %v2067_v12 = vpop.f32.mrb[17].mxu1 }
 0xa3a   : > { %v1425_v13 = vpop.f32.mrb[18].mxu1  ;;  %v1610_v12 = vld [vmem:[#allocation15 + $0x8] sm:$0xff] }
 0xa3b   : > { %v1430_v14 = vmul.f32 0.35355338, %v1425_v13  ;;  %v2068_v15 = vpop.f32.mrb[19].mxu1  ;;  %v1431_v16 = vsel %vm790_vm5, %v1429_v11, -inf }
 0xa3c   : > { %1432 = vmax.xlane.f32.xlu1 %v1431_v16  ;;  %v1612_v15 = vld [vmem:[#allocation15 + $0x18] sm:$0xff] }
 0xa3d   : > { %v1434_v18 = vsel %vm794_vm6, %v1430_v14, -inf }
 0xa3e   : > { %1435 = vmax.xlane.f32.xlu0 %v1434_v18 }
 0xac9   : > { %v1433_v19 = vpop.xlane.xlu1 %1432 }
 0xaca   : > { %v1437_v20 = vsub.f32 %v1429_v11, %v1433_v19  ;;  %v1609_v11 = vld [vmem:[#allocation15] sm:$0xff] }
 0xacb   : > { %v1436_v21 = vpop.xlane.xlu0 %1435  ;;  %v1614_v13 = vpack.c.bf16 %v1610_v12, %v1609_v11 }
 0xacc   : > { %v1439_v23 = vmul.f32 1.442695, %v1437_v20  ;;  %v1438_v24 = vsub.f32 %v1430_v14, %v1436_v21  ;;  %v1611_v14 = vld [vmem:[#allocation15 + $0x10] sm:$0xff] }
 0xacd   : > { %v1615_v16 = vpack.c.bf16 %v1612_v15, %v1611_v14 }
 0xace   : > { %2269 = vpow2.f32 %v1439_v23  ;;  %v1441_v26 = vmul.f32 1.442695, %v1438_v24 }
 0xad0   : > { %2271 = vpow2.f32 %v1441_v26 }
 0xad8   : > { %v2270_v27 = vpop.eup %2269 }
 0xad9   : > { %v1443_v28 = vsel %vm790_vm5, %v2270_v27, 0.0 }
 0xada   : > { %v2272_v29 = vpop.eup %2271  ;;  %1444 = vadd.xlane.f32.xlu1 %v1443_v28  ;;  %v1956_v28 = vld [vmem:[#allocation12] ss:$0 sm:$0xff] }
 0xadb   : > { %v1446_v30 = vsel %vm794_vm6, %v2272_v29, 0.0 }
 0xade   : > { %1447 = vadd.xlane.f32.xlu1 %v1446_v30 }
 0xaef   : > { %1454 = vrot.lane.b32.xlu1 %v3072_v45, %s2651_s21 }
 0xaf2   : > { %v1332_v31 = vpop.f32.mrb[20].mxu0 }
 0xaf3   : > { %v1339_v32 = vadd.f32 %v1332_v31, %v3130_v22  ;;  %v2061_v33 = vpop.f32.mrb[21].mxu0 }
 0xaf4   : > { %v1335_v34 = vpop.f32.mrb[22].mxu0 }
 0xaf5   : > { %v1340_v35 = vadd.f32 %v1335_v34, %v3132_v25  ;;  %v2062_v36 = vpop.f32.mrb[23].mxu0  ;;  %v696_v25 = vld [vmem:[#allocation9 + $0x18] sm:$0xff] }
 0xaf6   : > { %v1504_v48 = vpack.c.bf16 %v696_v25, %v696_v25  ;;  %v1683_v25 = vld [vmem:[%s3240_s11 + $0x30] sm:$0xff] }
 0xaf8   : > { %v1509_v49 = vsel %vm743_vm3, %v1504_v48, 0  ;;  %v1684_v48 = vld [vmem:[%s3240_s11 + $0x38] sm:$0xff] }
 0xaf9   : > { %2076 = vmatpush3.bf16.msra.mxu1 %v1509_v49  ;;  %v1689_v49 = vpack.c.bf16 %v1684_v48, %v1683_v25 }
 0xafa   : > { %2089 = vmatprep.subr.bf16.mxu1 %v2638_v17 }
 0xb67   : > { %v1445_v38 = vpop.xlane.xlu1 %1444 }
 0xb68   : > { %2273 = vrcp.f32 %v1445_v38  ;;  %v1677_v38 = vld [vmem:[%s3240_s11] sm:$0xff] }
 0xb6b   : > { %v1448_v39 = vpop.xlane.xlu1 %1447 }
 0xb6c   : > { %2275 = vrcp.f32 %v1448_v39  ;;  %v1678_v39 = vld [vmem:[%s3240_s11 + $0x8] sm:$0xff] }
 0xb6f   : > { %v1455_v41 = vpop.permute.xlu1 %1454 }
 0xb70   : > { %v1460_v42 = vand.u32 %v1455_v41, %v3103_v37  ;;  %v1686_v41 = vpack.c.bf16 %v1678_v39, %v1677_v38 }
 0xb72   : > { %2070 = vmatpush3.bf16.msra.mxu0 %v1460_v42  ;;  %v2274_v44 = vpop.eup %2273  ;;  %v1679_v42 = vld [vmem:[%s3240_s11 + $0x10] sm:$0xff] }
 0xb73   : > { %2081 = vmatprep.subr.bf16.mxu0 %v2638_v17  ;;  %v1451_v46 = vmul.f32 %v2274_v44, %v2270_v27  ;;  %v1680_v44 = vld [vmem:[%s3240_s11 + $0x18] sm:$0xff] }
 0xb76   : > { %v2276_v45 = vpop.eup %2275 }
 0xb77   : > { %v1452_v47 = vmul.f32 %v2276_v45, %v2272_v29  ;;  %v1687_v45 = vpack.c.bf16 %v1680_v44, %v1679_v42 }
 0xb79   : > { %v1453_v22 = vpack.c.bf16 %v1452_v47, %v1451_v46  ;;  %v1681_v46 = vld [vmem:[%s3240_s11 + $0x20] sm:$0xff]  ;;  %v1682_v47 = vld [vmem:[%s3240_s11 + $0x28] sm:$0xff] }
 0xb7b   : > { %2072 = vmatmul.mubr.msk.bf16.vlgmr.msra.gmra.mrb[24].mxu0 %vm790_vm5, %v1453_v22  ;;  %v1688_v22 = vpack.c.bf16 %v1682_v47, %v1681_v46 }
 0xb7c   : > { %2085 = vmatprep.mubr.msk.bf16.mxu0 %vm2639_vm2, %v2638_v17  ;;  %2082 = vmatpush3.bf16.msra.mxu0 %v1614_v13 }
 0xb7d   : > { %2083 = vmatprep.subr.bf16.mxu0 %v2638_v17 }
 0xb80   : > { %2084 = vmatpush3.bf16.msra.mxu0 %v1615_v16 }
 0xc4e   : > { %v1496_v37 = vpop.f32.mrb[24].mxu0 }
 0xc4f   : > { %v2073_v40 = vpop.f32.mrb[25].mxu0 }
 0xc50   : > { %v1499_v43 = vpop.f32.mrb[26].mxu0 }
 0xc51   : > { %v1503_v50 = vpack.c.bf16 %v1499_v43, %v1496_v37  ;;  %v2074_v51 = vpop.f32.mrb[27].mxu0  ;;  %v1958_v37 = vld [vmem:[#allocation16] ss:$0 sm:$0xff] }
 0xc53   : > { %2078 = vmatmul.mubr.msk.bf16.vlgmr.msra.gmra.mrb[20].mxu1 %vm739_vm4, %v1503_v50 }
 0xc54   : > { %2097 = vmatprep.mubr.msk.bf16.mxu1 %vm2639_vm2, %v2638_v17  ;;  %2090 = vmatpush3.bf16.msra.mxu1 %v1686_v41 }
 0xc55   : > { %2091 = vmatprep.subr.bf16.mxu1 %v2638_v17 }
 0xc58   : > { %2092 = vmatpush3.bf16.msra.mxu1 %v1687_v45 }
 0xc59   : > { %2093 = vmatprep.subr.bf16.mxu1 %v2638_v17 }
 0xc5c   : > { %2094 = vmatpush3.bf16.msra.mxu1 %v1688_v22 }
 0xc5d   : > { %2095 = vmatprep.subr.bf16.mxu1 %v2638_v17 }
 0xc60   : > { %2096 = vmatpush3.bf16.msra.mxu1 %v1689_v49 }
 0xd26   : > { %v1545_v52 = vpop.f32.mrb[20].mxu1 }
 0xd27   : > { %v1552_v53 = vadd.f32 %v1545_v52, %v1339_v32  ;;  %v2079_v54 = vpop.f32.mrb[21].mxu1  ;;  %v1957_v32 = vld [vmem:[#allocation13] ss:$0 sm:$0xff] }
 0xd28   : > { %v1548_v56 = vpop.f32.mrb[22].mxu1 }
 0xd29   : > { %v1554_v57 = vadd.f32 %v1552_v53, %v3042_v0  ;;  %v1553_v58 = vadd.f32 %v1548_v56, %v1340_v35  ;;  %v2080_v59 = vpop.f32.mrb[23].mxu1 }
 0xd2b   : > { %v3175_v60 = vadd.f32 %v1955_v55, %v1554_v57  ;;  %v1555_v61 = vadd.f32 %v1553_v58, %v3044_v1 }
 0xd2d   : > { %v3178_v62 = vadd.f32 %v1955_v55, %v1555_v61  ;;  %v1567_v63 = vsel %vm590_vm0, %v3175_v60, 0.0 }
 0xd2e   : > { %1568 = vadd.xlane.f32.xlu1 %v1567_v63 }
 0xd2f   : > { %v1570_v2 = vsel %vm594_vm1, %v3178_v62, 0.0 }
 0xd30   : > { %1571 = vadd.xlane.f32.xlu0 %v1570_v2 }
 0xdbb   : > { %v1569_v3 = vpop.xlane.xlu1 %1568 }
 0xdbc   : > { %v1573_v4 = vmul.f32 0.03125, %v1569_v3 }
 0xdbd   : > { %v1572_v5 = vpop.xlane.xlu0 %1571 }
 0xdbe   : > { %v1575_v0 = vsub.f32 %v3175_v60, %v1573_v4  ;;  %v1574_v6 = vmul.f32 0.03125, %v1572_v5  ;;  %v1960_v4 = vld [vmem:[#allocation18] ss:$0 sm:$0xff] }
 0xdc0   : > { %v1576_v7 = vsub.f32 %v3178_v62, %v1574_v6  ;;  %v1577_v8 = vmul.f32 %v1575_v0, %v1575_v0 }
 0xdc2   : > { %v1579_v1 = vsel %vm590_vm0, %v1577_v8, 0.0  ;;  %v1578_v9 = vmul.f32 %v1576_v7, %v1576_v7 }
 0xdc3   : > { %1580 = vadd.xlane.f32.xlu0 %v1579_v1 }
 0xdc4   : > { %v1582_v10 = vsel %vm594_vm1, %v1578_v9, 0.0 }
 0xdc7   : > { %1583 = vadd.xlane.f32.xlu0 %v1582_v10 }
 0xe50   : > { %v1581_v18 = vpop.xlane.xlu0 %1580 }
 0xe51   : > { %v1585_v19 = vmul.f32 0.03125, %v1581_v18 }
 0xe53   : > { %v1587_v20 = vadd.f32 1e-05, %v1585_v19 }
 0xe54   : > { %v1584_v21 = vpop.xlane.xlu0 %1583 }
 0xe55   : > { %2277 = vrsqrt.f32 %v1587_v20  ;;  %v1586_v23 = vmul.f32 0.03125, %v1584_v21 }
 0xe57   : > { %v1588_v24 = vadd.f32 1e-05, %v1586_v23 }
 0xe59   : > { %2279 = vrsqrt.f32 %v1588_v24 }
 0xe5f   : > { %v2278_v26 = vpop.eup %2277 }
 0xe60   : > { %v1591_v27 = vmul.f32 %v2278_v26, %v1575_v0 }
 0xe62   : > { %v1599_v30 = vmul.f32 %v1956_v28, %v1591_v27 }
 0xe63   : > { %v2280_v29 = vpop.eup %2279 }
 0xe64   : > { %v1592_v31 = vmul.f32 %v2280_v29, %v1576_v7  ;;  %v1607_v34 = vadd.f32 %v1957_v32, %v1599_v30 }
 0xe66   : > { %v1600_v33 = vmul.f32 %v1956_v28, %v1592_v31 }
 0xe68   : > { %v1608_v35 = vadd.f32 %v1957_v32, %v1600_v33 }
 0xe6a   : > { %v1613_v36 = vpack.c.bf16 %v1608_v35, %v1607_v34 }
 0xe6c   : > { %2086 = vmatmul.mubr.msk.bf16.vlgmr.msra.gmra.mrb[28].mxu0 %vm590_vm0, %v1613_v36 }
 0xf3f   : > { %v1660_v40 = vpop.f32.mrb[28].mxu0 }
 0xf40   : > { %v1661_v43 = vadd.f32 %v1958_v37, %v1660_v40  ;;  %v2087_v50 = vpop.f32.mrb[29].mxu0 }
 0xf41   : > { %v1663_v51 = vpop.f32.mrb[30].mxu0 }
 0xf42   : > { %v1669_v52 = vmul.f32 0.70710677, %v1661_v43  ;;  %v1664_v53 = vadd.f32 %v1958_v37, %v1663_v51  ;;  %v2088_v54 = vpop.f32.mrb[31].mxu0  ;;  %v1667_v58 = vmul.f32 0.5, %v1661_v43 }
 0xf44   : > { %2281 = verf.f32 %v1669_v52  ;;  %v1670_v17 = vmul.f32 0.70710677, %v1664_v53  ;;  %v1668_v59 = vmul.f32 0.5, %v1664_v53 }
 0xf46   : > { %2283 = verf.f32 %v1670_v17 }
 0xf4e   : > { %v2282_v55 = vpop.eup %2281 }
 0xf4f   : > { %v1673_v56 = vadd.f32 1.0, %v2282_v55 }
 0xf50   : > { %v2284_v57 = vpop.eup %2283 }
 0xf51   : > { %v1674_v61 = vadd.f32 1.0, %v2284_v57  ;;  %v1675_v63 = vmul.f32 %v1673_v56, %v1667_v58 }
 0xf53   : > { %v1676_v2 = vmul.f32 %v1674_v61, %v1668_v59 }
 0xf55   : > { %v1685_v3 = vpack.c.bf16 %v1676_v2, %v1675_v63 }
 0xf57   : > { %2098 = vmatmul.mubr.msk.bf16.vlgmr.msra.gmra.mrb[24].mxu1 %vm1697_vm8, %v1685_v3 }
0x102a   : > { %v1735_v5 = vpop.f32.mrb[24].mxu1 }
0x102b   : > { %v1736_v0 = vadd.f32 %v1960_v4, %v1735_v5  ;;  %v2099_v6 = vpop.f32.mrb[25].mxu1 }
0x102c   : > { %v1738_v7 = vpop.f32.mrb[26].mxu1 }
0x102d   : > { %v1742_v8 = vadd.f32 %v1736_v0, %v3175_v60  ;;  %v1739_v1 = vadd.f32 %v1960_v4, %v1738_v7  ;;  %v2100_v9 = vpop.f32.mrb[27].mxu1 }
0x102f   : > { %1744 = vst.msk [vmem:[%s584_s17] sm:$0xff] %vm590_vm0, %v1742_v8  ;;  %v1743_v10 = vadd.f32 %v1739_v1, %v3178_v62 }
0x1031   : > { %1745 = vst.msk [vmem:[%s584_s17 + $0x8] sm:$0x1] %vm594_vm1, %v1743_v10 }
0x1032 PF: > { %s3265_s26 = sld [smem:[#allocation25_spill]] }
0x1038   : > { %s29_s25 = sadd.s32 1, %s3265_s26  }
0x1039   : > { %p26_p1 = scmp.ge.s32.totalorder %s29_s25, 4  }
0x103b   :  { %28 = sbr.rel (!%p26_p1) target bundleno = 8 (0x8), region = 147 }
0x1042   :  { %1767 = vsyncpa [#allocation3], 1 }
0x1043   :  { %1769 = vsyncpa [#allocation3 + $0x1], 1 }
0x1044   :  { %1770 = vsyncpa [#allocation5], 1 }
0x1045   :  { %1771 = vsyncpa [#allocation8], 1 }
0x1046   :  { %1772 = vsyncpa [#allocation11], 1 }
0x1047   :  { %1773 = vsyncpa [#allocation14], 1 }
0x1048   :  { %1774 = vsyncpa [#allocation17], 1 }

// kernel: lcter_forward.3
= control target key start
LH: loop header
LB: loop body
LE: loop exit
PB: predicated region body
PF: predicated region fallthrough
CT: control target
= control target key end

     0   :  { %s3615_s0 = inlined_call_operand.hbm [shape: f32[2,64], index: 0, kind: input, shape index: {}]   ;;  %s3616_s1 = inlined_call_operand.vmem [shape: f32[2,32], index: 1, kind: input, shape index: {}]   ;;  %s3617_s2 = inlined_call_operand.vmem [shape: f32[64,32], index: 2, kind: input, shape index: {}]   ;;  %s3618_s3 = inlined_call_operand.hbm [shape: f32[1,32], index: 3, kind: input, shape index: {}]   ;;  %s3619_s4 = inlined_call_operand.hbm [shape: f32[32,32], index: 4, kind: input, shape index: {}]   ;;  %s3620_s5 = inlined_call_operand.hbm [shape: f32[1,32], index: 5, kind: input, shape index: {}]   ;;  %s3621_s6 = inlined_call_operand.hbm [shape: f32[32,32], index: 6, kind: input, shape index: {}]   ;;  %s3622_s7 = inlined_call_operand.hbm [shape: f32[1,32], index: 7, kind: input, shape index: {}]   ;;  %s3623_s8 = inlined_call_operand.hbm [shape: f32[32,32], index: 8, kind: input, shape index: {}]   ;;  %s3624_s9 = inlined_call_operand.hbm [shape: f32[1,32], index: 9, kind: input, shape index: {}]   ;;  %s3625_s10 = inlined_call_operand.hbm [shape: f32[32,1280], index: 10, kind: input, shape index: {}]   ;;  %s3626_s11 = inlined_call_operand.vmem [shape: f32[1,1280], index: 11, kind: input, shape index: {}]   ;;  %s3627_s12 = inlined_call_operand.hbm [shape: f32[1280,512], index: 12, kind: input, shape index: {}]   ;;  %s3628_s13 = inlined_call_operand.hbm [shape: f32[1,512], index: 13, kind: input, shape index: {}]   ;;  %s3629_s14 = inlined_call_operand.hbm [shape: f32[512,128], index: 14, kind: input, shape index: {}]   ;;  %s3630_s15 = inlined_call_operand.hbm [shape: f32[1,128], index: 15, kind: input, shape index: {}]   ;;  %s3631_s16 = inlined_call_operand.vmem [shape: f32[128,1], index: 16, kind: input, shape index: {}]   ;;  %s3632_s17 = inlined_call_operand.<no memory space> [shape: f32[1,1], index: 17, kind: input, shape index: {}]   ;;  %s3633_s18 = inlined_call_operand.vmem [shape: f32[2,1], index: 18, kind: output, shape index: {}]  }
   0x1   :  { %3636 = sst [smem:[#allocation30_spill]] %s3615_s0  ;;  %v23_v0 = vstv %s3632_s17 }
   0x2   :  { %3637 = sst [smem:[#allocation31_spill]] %s3616_s1  ;;  %24 = vst [vmem:[#allocation2] sm:$0x1] %v23_v0 }
   0x3   :  { %3638 = sst [smem:[#allocation32_spill]] %s3617_s2 }
   0x4   :  { %25 = vsyncpa [#allocation4], 0 }
   0x5   :  { %26 = vsyncpa [#allocation6], 0 }
   0x6   :  { %27 = vsyncpa [#allocation9], 0 }
   0x7   :  { %28 = vsyncpa [#allocation12], 0 }
   0x8   :  { %29 = vsyncpa [#allocation15], 0 }
   0x9   :  { %30 = vsyncpa [#allocation18], 0 }
   0xa   :  { %31 = vsyncpa [#allocation21], 0  ;;  %s3102_s29 = smov [#allocation5]   ;;  %s3103_s0 = smov [#allocation8]  }
   0xb   :  { %s52_s30 = sshll.u32 %s3102_s29, 4  ;;  %s74_s19 = sshll.u32 %s3103_s0, 4  ;;  %s53_s30 = int_to_ptr.vmem [resolvable:$true] %s52_s30  ;;  %s75_s19 = int_to_ptr.vmem [resolvable:$true] %s74_s19 }
   0xc   :  { %s2802_s21 = scalar_lea.hbm %s3618_s3, 16 }
   0xd   :  { %p2803_p0 = scmp.ne.s32.totalorder %s3618_s3, %s2802_s21  ;;  %p2806_p1 = scmp.lt.u32.totalorder %s2802_s21, %s3618_s3 }
   0xf   :  { %p2808_p2 = pnand %p2806_p1, %p2803_p0 }
  0x11   :  { %2811 = shalt.err (!%p2808_p2)
}
  0x12   :  { %s2812_s24 = scalar_lea.vmem %s53_s30, 16  ;;  %s2816_s25 = scalar_lea.vmem %s53_s30, 32 }
  0x13   :  { %p2813_p3 = scmp.ne.s32.totalorder %s53_s30, %s2812_s24  ;;  %p2817_p4 = scmp.lt.s32.totalorder %s53_s30, %s53_s30 }
  0x14   :  { %p2818_p5 = scmp.lt.s32.totalorder %s2816_s25, %s2812_s24 }
  0x16   :  { %p2819_p6 = por %p2818_p5, %p2817_p4 }
  0x18   :  { %p2820_p7 = pnand %p2819_p6, %p2813_p3 }
  0x1a   :  { %2823 = shalt.err (!%p2820_p7)
}
  0x1b   :  { %55 = dma.hbm_to_vmem [thread:$0]  %s3618_s3, 16, %s53_s30, [#allocation6]  }
  0x1c   :  { %s2824_s0 = scalar_lea.hbm %s3620_s5, 16 }
  0x1d   :  { %p2825_p8 = scmp.ne.s32.totalorder %s3620_s5, %s2824_s0  ;;  %p2828_p9 = scmp.lt.u32.totalorder %s2824_s0, %s3620_s5 }
  0x1f   :  { %p2830_p10 = pnand %p2828_p9, %p2825_p8 }
  0x21   :  { %2833 = shalt.err (!%p2830_p10)
}
  0x22   :  { %s2834_s17 = scalar_lea.vmem %s75_s19, 16  ;;  %s2838_s2 = scalar_lea.vmem %s75_s19, 32 }
  0x23   :  { %p2835_p11 = scmp.ne.s32.totalorder %s75_s19, %s2834_s17  ;;  %p2839_p12 = scmp.lt.s32.totalorder %s75_s19, %s75_s19 }
  0x24   :  { %p2840_p13 = scmp.lt.s32.totalorder %s2838_s2, %s2834_s17 }
  0x26   :  { %p2841_p0 = por %p2840_p13, %p2839_p12 }
  0x28   :  { %p2842_p1 = pnand %p2841_p0, %p2835_p11 }
  0x2a   :  { %2845 = shalt.err (!%p2842_p1)
}
  0x2b   :  { %77 = dma.hbm_to_vmem [thread:$0]  %s3620_s5, 16, %s75_s19, [#allocation9]  }
  0x2c   :  { %s3104_s23 = smov [#allocation11]   ;;  %s3105_s25 = smov [#allocation14]  }
  0x2d   :  { %s96_s24 = sshll.u32 %s3104_s23, 4  ;;  %s118_s26 = sshll.u32 %s3105_s25, 4  ;;  %s97_s24 = int_to_ptr.vmem [resolvable:$true] %s96_s24  ;;  %s119_s26 = int_to_ptr.vmem [resolvable:$true] %s118_s26 }
  0x2e   :  { %s2846_s29 = scalar_lea.hbm %s3622_s7, 16 }
  0x2f   :  { %p2847_p2 = scmp.ne.s32.totalorder %s3622_s7, %s2846_s29  ;;  %p2850_p3 = scmp.lt.u32.totalorder %s2846_s29, %s3622_s7 }
  0x31   :  { %p2852_p4 = pnand %p2850_p3, %p2847_p2 }
  0x33   :  { %2855 = shalt.err (!%p2852_p4)
}
  0x34   :  { %s2856_s5 = scalar_lea.vmem %s97_s24, 16  ;;  %s2860_s19 = scalar_lea.vmem %s97_s24, 32 }
  0x35   :  { %p2857_p5 = scmp.ne.s32.totalorder %s97_s24, %s2856_s5  ;;  %p2861_p6 = scmp.lt.s32.totalorder %s97_s24, %s97_s24 }
  0x36   :  { %p2862_p7 = scmp.lt.s32.totalorder %s2860_s19, %s2856_s5 }
  0x38   :  { %p2863_p8 = por %p2862_p7, %p2861_p6 }
  0x3a   :  { %p2864_p9 = pnand %p2863_p8, %p2857_p5 }
  0x3c   :  { %2867 = shalt.err (!%p2864_p9)
}
  0x3d   :  { %99 = dma.hbm_to_vmem [thread:$0]  %s3622_s7, 16, %s97_s24, [#allocation12]  }
  0x3e   :  { %s2868_s30 = scalar_lea.hbm %s3624_s9, 16 }
  0x3f   :  { %p2869_p10 = scmp.ne.s32.totalorder %s3624_s9, %s2868_s30  ;;  %p2872_p11 = scmp.lt.u32.totalorder %s2868_s30, %s3624_s9 }
  0x41   :  { %p2874_p12 = pnand %p2872_p11, %p2869_p10 }
  0x43   :  { %2877 = shalt.err (!%p2874_p12)
}
  0x44   :  { %s2878_s29 = scalar_lea.vmem %s119_s26, 16  ;;  %s2882_s0 = scalar_lea.vmem %s119_s26, 32 }
  0x45   :  { %p2879_p13 = scmp.ne.s32.totalorder %s119_s26, %s2878_s29  ;;  %p2883_p0 = scmp.lt.s32.totalorder %s119_s26, %s119_s26 }
  0x46   :  { %p2884_p1 = scmp.lt.s32.totalorder %s2882_s0, %s2878_s29 }
  0x48   :  { %p2885_p2 = por %p2884_p1, %p2883_p0 }
  0x4a   :  { %p2886_p3 = pnand %p2885_p2, %p2879_p13 }
  0x4c   :  { %2889 = shalt.err (!%p2886_p3)
}
  0x4d   :  { %121 = dma.hbm_to_vmem [thread:$0]  %s3624_s9, 16, %s119_s26, [#allocation15]  }
  0x4e   :  { %s3106_s1 = smov [#allocation17]   ;;  %s2890_s19 = scalar_lea.hbm %s3627_s12, 81920 }
  0x4f   :  { %s141_s20 = sshll.u32 %s3106_s1, 4  ;;  %p2891_p4 = scmp.ne.s32.totalorder %s3627_s12, %s2890_s19  ;;  %s142_s20 = int_to_ptr.vmem [resolvable:$true] %s141_s20 }
  0x50   :  { %p2894_p5 = scmp.lt.u32.totalorder %s2890_s19, %s3627_s12 }
  0x52   :  { %p2896_p6 = pnand %p2894_p5, %p2891_p4 }
  0x54   :  { %2899 = shalt.err (!%p2896_p6)
}
  0x55   :  { %s2900_s30 = scalar_lea.vmem %s142_s20, 81920  ;;  %p2905_p8 = scmp.lt.s32.totalorder %s142_s20, %s142_s20 }
  0x56   :  { %p2901_p7 = scmp.ne.s32.totalorder %s142_s20, %s2900_s30  ;;  %p2906_p9 = scmp.lt.s32.totalorder %s2900_s30, %s2900_s30 }
  0x58   :  { %p2907_p10 = por %p2906_p9, %p2905_p8 }
  0x5a   :  { %p2908_p11 = pnand %p2907_p10, %p2901_p7 }
  0x5c   :  { %2911 = shalt.err (!%p2908_p11)
}
  0x5d   :  { %s3107_s9 = smov 512   ;;  %s3108_s26 = smov 32  }
  0x5e   :  { %147 = dma.hbm_to_vmem [thread:$0]  %s3627_s12, 81920, %s142_s20, [#allocation18], %s3107_s9, %s3107_s9, %s3108_s26  }
  0x5f   :  { %s3109_s27 = smov [#allocation20]   ;;  %s3110_s29 = smov [#allocation3]  }
  0x60   :  { %s163_s28 = sshll.u32 %s3109_s27, 4  ;;  %s38_s0 = sshll.u32 %s3110_s29, 4  ;;  %s164_s28 = int_to_ptr.vmem [resolvable:$true] %s163_s28  ;;  %s39_s0 = int_to_ptr.vmem [resolvable:$true] %s38_s0 }
  0x61   :  { %s2912_s1 = scalar_lea.hbm %s3629_s14, 8192 }
  0x62   :  { %p2913_p12 = scmp.ne.s32.totalorder %s3629_s14, %s2912_s1  ;;  %p2916_p13 = scmp.lt.u32.totalorder %s2912_s1, %s3629_s14 }
  0x64   :  { %p2918_p0 = pnand %p2916_p13, %p2913_p12 }
  0x66   :  { %2921 = shalt.err (!%p2918_p0)
}
  0x67   :  { %s2922_s12 = scalar_lea.vmem %s164_s28, 8192  ;;  %p2927_p2 = scmp.lt.s32.totalorder %s164_s28, %s164_s28 }
  0x68   :  { %p2923_p1 = scmp.ne.s32.totalorder %s164_s28, %s2922_s12  ;;  %p2928_p3 = scmp.lt.s32.totalorder %s2922_s12, %s2922_s12 }
  0x6a   :  { %p2929_p4 = por %p2928_p3, %p2927_p2 }
  0x6c   :  { %p2930_p5 = pnand %p2929_p4, %p2923_p1 }
  0x6e   :  { %2933 = shalt.err (!%p2930_p5)
}
  0x6f   :  { %s3111_s20 = smov 128   ;;  %s3112_s17 = smov 8  }
  0x70   :  { %169 = dma.hbm_to_vmem [thread:$0]  %s3629_s14, 8192, %s164_s28, [#allocation21], %s3111_s20, %s3111_s20, %s3112_s17  }
  0x71   :  { %s3639_s26 = sld [smem:[#allocation30_spill]] }
  0x77   :  { %s2934_s23 = scalar_lea.hbm %s3639_s26, 32 }
  0x78   :  { %p2935_p6 = scmp.ne.s32.totalorder %s3639_s26, %s2934_s23  ;;  %p2938_p7 = scmp.lt.u32.totalorder %s2934_s23, %s3639_s26 }
  0x7a   :  { %p2940_p8 = pnand %p2938_p7, %p2935_p6 }
  0x7c   :  { %2943 = shalt.err (!%p2940_p8)
}
  0x7d   :  { %s2944_s24 = scalar_lea.vmem %s39_s0, 32  ;;  %p2949_p10 = scmp.lt.s32.totalorder %s39_s0, %s39_s0 }
  0x7e   :  { %p2945_p9 = scmp.ne.s32.totalorder %s39_s0, %s2944_s24  ;;  %p2950_p11 = scmp.lt.s32.totalorder %s2944_s24, %s2944_s24 }
  0x80   :  { %p2951_p12 = por %p2950_p11, %p2949_p10 }
  0x82   :  { %p2952_p13 = pnand %p2951_p12, %p2945_p9 }
  0x84   :  { %2955 = shalt.err (!%p2952_p13)
}
  0x85   :  { %41 = dma.hbm_to_vmem [thread:$0]  %s3639_s26, 32, %s39_s0, [#allocation4]  }
  0x86   :  { %s3113_s1 = smov [#allocation7]   ;;  %s3114_s5 = smov [#allocation10]  }
  0x87   :  { %s61_s21 = sshll.u32 %s3113_s1, 4  ;;  %s83_s19 = sshll.u32 %s3114_s5, 4  ;;  %s62_s21 = int_to_ptr.vmem [resolvable:$true] %s61_s21  ;;  %s84_s19 = int_to_ptr.vmem [resolvable:$true] %s83_s19 }
  0x88   :  { %s2956_s2 = scalar_lea.hbm %s3619_s4, 512 }
  0x89   :  { %p2957_p0 = scmp.ne.s32.totalorder %s3619_s4, %s2956_s2  ;;  %p2960_p1 = scmp.lt.u32.totalorder %s2956_s2, %s3619_s4 }
  0x8b   :  { %p2962_p2 = pnand %p2960_p1, %p2957_p0 }
  0x8d   :  { %2965 = shalt.err (!%p2962_p2)
}
  0x8e   :  { %s2966_s0 = scalar_lea.vmem %s62_s21, 512  ;;  %p2971_p4 = scmp.lt.s32.totalorder %s62_s21, %s62_s21 }
  0x8f   :  { %p2967_p3 = scmp.ne.s32.totalorder %s62_s21, %s2966_s0  ;;  %p2972_p5 = scmp.lt.s32.totalorder %s2966_s0, %s2966_s0 }
  0x91   :  { %p2973_p6 = por %p2972_p5, %p2971_p4 }
  0x93   :  { %p2974_p7 = pnand %p2973_p6, %p2967_p3 }
  0x95   :  { %2977 = shalt.err (!%p2974_p7)
}
  0x96   :  { %67 = dma.hbm_to_vmem [thread:$0]  %s3619_s4, 512, %s62_s21, [#allocation6], %s3111_s20, %s3111_s20, %s3112_s17  }
  0x97   :  { %s2978_s7 = scalar_lea.hbm %s3621_s6, 512 }
  0x98   :  { %p2979_p8 = scmp.ne.s32.totalorder %s3621_s6, %s2978_s7  ;;  %p2982_p9 = scmp.lt.u32.totalorder %s2978_s7, %s3621_s6 }
  0x9a   :  { %p2984_p10 = pnand %p2982_p9, %p2979_p8 }
  0x9c   :  { %2987 = shalt.err (!%p2984_p10)
}
  0x9d   :  { %s2988_s5 = scalar_lea.vmem %s84_s19, 512  ;;  %p2993_p12 = scmp.lt.s32.totalorder %s84_s19, %s84_s19 }
  0x9e   :  { %p2989_p11 = scmp.ne.s32.totalorder %s84_s19, %s2988_s5  ;;  %p2994_p13 = scmp.lt.s32.totalorder %s2988_s5, %s2988_s5 }
  0xa0   :  { %p2995_p0 = por %p2994_p13, %p2993_p12 }
  0xa2   :  { %p2996_p1 = pnand %p2995_p0, %p2989_p11 }
  0xa4   :  { %2999 = shalt.err (!%p2996_p1)
}
  0xa5   :  { %89 = dma.hbm_to_vmem [thread:$0]  %s3621_s6, 512, %s84_s19, [#allocation9], %s3111_s20, %s3111_s20, %s3112_s17  }
  0xa6   :  { %s3115_s22 = smov [#allocation13]   ;;  %s3116_s2 = smov [#allocation16]  }
  0xa7   :  { %s105_s12 = sshll.u32 %s3115_s22, 4  ;;  %s127_s3 = sshll.u32 %s3116_s2, 4  ;;  %s106_s12 = int_to_ptr.vmem [resolvable:$true] %s105_s12  ;;  %s128_s3 = int_to_ptr.vmem [resolvable:$true] %s127_s3 }
  0xa8   :  { %s3000_s23 = scalar_lea.hbm %s3623_s8, 512 }
  0xa9   :  { %p3001_p2 = scmp.ne.s32.totalorder %s3623_s8, %s3000_s23  ;;  %p3004_p3 = scmp.lt.u32.totalorder %s3000_s23, %s3623_s8 }
  0xab   :  { %p3006_p4 = pnand %p3004_p3, %p3001_p2 }
  0xad   :  { %3009 = shalt.err (!%p3006_p4)
}
  0xae   :  { %s3010_s6 = scalar_lea.vmem %s106_s12, 512  ;;  %p3015_p6 = scmp.lt.s32.totalorder %s106_s12, %s106_s12 }
  0xaf   :  { %p3011_p5 = scmp.ne.s32.totalorder %s106_s12, %s3010_s6  ;;  %p3016_p7 = scmp.lt.s32.totalorder %s3010_s6, %s3010_s6 }
  0xb1   :  { %p3017_p8 = por %p3016_p7, %p3015_p6 }
  0xb3   :  { %p3018_p9 = pnand %p3017_p8, %p3011_p5 }
  0xb5   :  { %3021 = shalt.err (!%p3018_p9)
}
  0xb6   :  { %111 = dma.hbm_to_vmem [thread:$0]  %s3623_s8, 512, %s106_s12, [#allocation12], %s3111_s20, %s3111_s20, %s3112_s17  }
  0xb7   :  { %s3022_s14 = scalar_lea.hbm %s3625_s10, 5120 }
  0xb8   :  { %p3023_p10 = scmp.ne.s32.totalorder %s3625_s10, %s3022_s14  ;;  %p3026_p11 = scmp.lt.u32.totalorder %s3022_s14, %s3625_s10 }
  0xba   :  { %p3028_p12 = pnand %p3026_p11, %p3023_p10 }
  0xbc   :  { %3031 = shalt.err (!%p3028_p12)
}
  0xbd   :  { %s3032_s21 = scalar_lea.vmem %s128_s3, 5120  ;;  %p3037_p0 = scmp.lt.s32.totalorder %s128_s3, %s128_s3 }
  0xbe   :  { %p3033_p13 = scmp.ne.s32.totalorder %s128_s3, %s3032_s21  ;;  %p3038_p1 = scmp.lt.s32.totalorder %s3032_s21, %s3032_s21 }
  0xc0   :  { %p3039_p2 = por %p3038_p1, %p3037_p0 }
  0xc2   :  { %p3040_p3 = pnand %p3039_p2, %p3033_p13 }
  0xc4   :  { %3043 = shalt.err (!%p3040_p3)
}
  0xc5   :  { %s3117_s8 = smov 1280   ;;  %s3118_s20 = smov 80  }
  0xc6   :  { %133 = dma.hbm_to_vmem [thread:$0]  %s3625_s10, 5120, %s128_s3, [#allocation15], %s3117_s8, %s3117_s8, %s3118_s20  }
  0xc7   :  { %s3119_s12 = smov [#allocation19]   ;;  %s3120_s30 = smov [#allocation22]  }
  0xc8   :  { %s154_s2 = sshll.u32 %s3119_s12, 4  ;;  %s176_s9 = sshll.u32 %s3120_s30, 4  ;;  %s155_s2 = int_to_ptr.vmem [resolvable:$true] %s154_s2  ;;  %s177_s9 = int_to_ptr.vmem [resolvable:$true] %s176_s9 }
  0xc9   :  { %s3044_s26 = scalar_lea.hbm %s3628_s13, 64 }
  0xca   :  { %p3045_p4 = scmp.ne.s32.totalorder %s3628_s13, %s3044_s26  ;;  %p3048_p5 = scmp.lt.u32.totalorder %s3044_s26, %s3628_s13 }
  0xcc   :  { %p3050_p6 = pnand %p3048_p5, %p3045_p4 }
  0xce   :  { %3053 = shalt.err (!%p3050_p6)
}
  0xcf   :  { %s3054_s10 = scalar_lea.vmem %s155_s2, 64  ;;  %p3059_p8 = scmp.lt.s32.totalorder %s155_s2, %s155_s2 }
  0xd0   :  { %p3055_p7 = scmp.ne.s32.totalorder %s155_s2, %s3054_s10  ;;  %p3060_p9 = scmp.lt.s32.totalorder %s3054_s10, %s3054_s10 }
  0xd2   :  { %p3061_p10 = por %p3060_p9, %p3059_p8 }
  0xd4   :  { %p3062_p11 = pnand %p3061_p10, %p3055_p7 }
  0xd6   :  { %3065 = shalt.err (!%p3062_p11)
}
  0xd7   :  { %157 = dma.hbm_to_vmem [thread:$0]  %s3628_s13, 64, %s155_s2, [#allocation18]  }
  0xd8   :  { %s3066_s14 = scalar_lea.hbm %s3630_s15, 16 }
  0xd9   :  { %p3067_p12 = scmp.ne.s32.totalorder %s3630_s15, %s3066_s14  ;;  %p3070_p13 = scmp.lt.u32.totalorder %s3066_s14, %s3630_s15 }
  0xdb   :  { %p3072_p0 = pnand %p3070_p13, %p3067_p12 }
  0xdd   :  { %3075 = shalt.err (!%p3072_p0)
}
  0xde   :  { %s3076_s21 = scalar_lea.vmem %s177_s9, 16  ;;  %s3080_s8 = scalar_lea.vmem %s177_s9, 32 }
  0xdf   :  { %p3077_p1 = scmp.ne.s32.totalorder %s177_s9, %s3076_s21  ;;  %p3081_p2 = scmp.lt.s32.totalorder %s177_s9, %s177_s9 }
  0xe0   :  { %p3082_p3 = scmp.lt.s32.totalorder %s3080_s8, %s3076_s21 }
  0xe2   :  { %p3083_p4 = por %p3082_p3, %p3081_p2 }
  0xe4   :  { %p3084_p5 = pnand %p3083_p4, %p3077_p1 }
  0xe6   :  { %3087 = shalt.err (!%p3084_p5)
}
  0xe7   :  { %179 = dma.hbm_to_vmem [thread:$0]  %s3630_s15, 16, %s177_s9, [#allocation21]  }
  0xe8   :  { %3088 = dma.done.wait [#allocation4], 32  }
  0xe9   :  { %3089 = vsyncadd [#allocation4], 4294967264 }
  0xea   :  { %3090 = dma.done.wait [#allocation6], 528  }
  0xeb   :  { %3091 = vsyncadd [#allocation6], 4294966768 }
  0xec   :  { %3092 = dma.done.wait [#allocation9], 528  }
  0xed   :  { %3093 = vsyncadd [#allocation9], 4294966768 }
  0xee   :  { %3094 = dma.done.wait [#allocation12], 528  }
  0xef   :  { %3095 = vsyncadd [#allocation12], 4294966768 }
  0xf0   :  { %3096 = dma.done.wait [#allocation15], 5136  }
  0xf1   :  { %3097 = vsyncadd [#allocation15], 4294962160 }
  0xf2   :  { %3098 = dma.done.wait [#allocation18], 81984  }
  0xf3   :  { %3099 = vsyncadd [#allocation18], 4294885312 }
  0xf4   :  { %3100 = dma.done.wait [#allocation21], 8208  }
  0xf5   :  { %3101 = vsyncadd [#allocation21], 4294959088  ;;  %v3121_v1 = vmov 0.0   ;;  %vm3122_vm0 = vmmov 0   ;;  %s3640_s22 = sld [smem:[#allocation32_spill]]  ;;  %vm245_vm1 = vcmask 523264  }
  0xf6   :  { %2649 = vmatprep.subr.bf16.mxu1 %v3121_v1  ;;  %2657 = vmatprep.mubr.msk.bf16.mxu1 %vm3122_vm0, %v3121_v1  ;;  %v224_v14 = vld [vmem:[#allocation3] sm:$0x3]  ;;  %v294_v16 = vld [vmem:[#allocation7] sm:$0xff]  ;;  %v295_v17 = vld [vmem:[#allocation7 + $0x8] sm:$0xff]  ;;  %vm308_vm2 = vcmask 261120   ;;  %s3641_s14 = sld [smem:[#allocation31_spill]] }
  0xf7   :  { %2677 = vmatprep.subr.bf16.mxu0 %v3121_v1  ;;  %2681 = vmatprep.mubr.msk.bf16.mxu0 %vm3122_vm0, %v3121_v1  ;;  %v233_v15 = vpack.c.bf16 %v224_v14, %v224_v14  ;;  %v299_v18 = vpack.c.bf16 %v295_v17, %v294_v16  ;;  %v296_v19 = vld [vmem:[#allocation7 + $0x10] sm:$0xff]  ;;  %v297_v20 = vld [vmem:[#allocation7 + $0x18] sm:$0xff]  ;;  %v357_v34 = vld [vmem:[#allocation10] sm:$0xff]  ;;  %vm2554_vm3 = vcmask 1024  }
  0xf8   :  { %v300_v21 = vpack.c.bf16 %v297_v20, %v296_v19  ;;  %v2567_v22 = vld [vmem:[#allocation5] ss:$0 sm:$0xff]  ;;  %v358_v35 = vld [vmem:[#allocation10 + $0x8] sm:$0xff]  ;;  %v359_v37 = vld [vmem:[#allocation10 + $0x10] sm:$0xff] }
  0xf9   :  { %v362_v36 = vpack.c.bf16 %v358_v35, %v357_v34  ;;  %v360_v38 = vld [vmem:[#allocation10 + $0x18] sm:$0xff]  ;;  %v414_v40 = vld [vmem:[#allocation13] sm:$0xff]  ;;  %v415_v41 = vld [vmem:[#allocation13 + $0x8] sm:$0xff] }
  0xfa   :  { %v363_v39 = vpack.c.bf16 %v360_v38, %v359_v37  ;;  %v419_v42 = vpack.c.bf16 %v415_v41, %v414_v40  ;;  %v2569_v43 = vld [vmem:[#allocation8] ss:$0 sm:$0xff]  ;;  %v416_v55 = vld [vmem:[#allocation13 + $0x10] sm:$0xff]  ;;  %v473_v60 = vld [vmem:[#allocation16] sm:$0xff] }
  0xfb   :  { %v225_v2 = vld [vmem:[%s3640_s22] sm:$0xff]  ;;  %v226_v3 = vld [vmem:[%s3640_s22 + $0x8] sm:$0xff]  ;;  %v227_v4 = vld [vmem:[%s3640_s22 + $0x10] sm:$0xff] }
  0xfc   :  { %v234_v5 = vpack.c.bf16 %v226_v3, %v225_v2  ;;  %v228_v6 = vld [vmem:[%s3640_s22 + $0x18] sm:$0xff]  ;;  %v229_v8 = vld [vmem:[%s3640_s22 + $0x20] sm:$0xff]  ;;  %v230_v9 = vld [vmem:[%s3640_s22 + $0x28] sm:$0xff]  ;;  %2678 = vmatpush3.bf16.msra.mxu0 %v419_v42 }
  0xfd   :  { %v235_v7 = vpack.c.bf16 %v228_v6, %v227_v4  ;;  %v236_v10 = vpack.c.bf16 %v230_v9, %v229_v8  ;;  %v231_v11 = vld [vmem:[%s3640_s22 + $0x30] sm:$0xff]  ;;  %v232_v12 = vld [vmem:[%s3640_s22 + $0x38] sm:$0xff]  ;;  %2679 = vmatprep.subr.bf16.mxu0 %v3121_v1  ;;  %v417_v56 = vld [vmem:[#allocation13 + $0x18] sm:$0xff] }
  0xfe   :  { %2650 = vmatpush3.bf16.msra.mxu1 %v234_v5  ;;  %v237_v13 = vpack.c.bf16 %v232_v12, %v231_v11  ;;  %v420_v57 = vpack.c.bf16 %v417_v56, %v416_v55  ;;  %v474_v58 = vld [vmem:[#allocation16 + $0x8] sm:$0xff]  ;;  %v484_v59 = vld [vmem:[#allocation16 + $0x58] sm:$0xff]  ;;  %v483_v62 = vld [vmem:[#allocation16 + $0x50] sm:$0xff] }
  0xff   :  { %2651 = vmatprep.subr.bf16.mxu1 %v3121_v1  ;;  %v515_v61 = vpack.c.bf16 %v484_v59, %v474_v58  ;;  %v476_v63 = vld [vmem:[#allocation16 + $0x18] sm:$0xff]  ;;  %v486_v0 = vld [vmem:[#allocation16 + $0x68] sm:$0xff]  ;;  %v514_v2 = vpack.c.bf16 %v483_v62, %v473_v60  ;;  %v475_v11 = vld [vmem:[#allocation16 + $0x10] sm:$0xff] }
 0x100   :  { %2680 = vmatpush3.bf16.msra.mxu0 %v420_v57  ;;  %v517_v3 = vpack.c.bf16 %v486_v0, %v476_v63  ;;  %v2571_v4 = vld [vmem:[#allocation11] ss:$0 sm:$0xff]  ;;  %v485_v12 = vld [vmem:[#allocation16 + $0x60] sm:$0xff]  ;;  %v494_v14 = vld [vmem:[#allocation16 + $0xa8] sm:$0xff] }
 0x101   :  { %v496_v16 = vld [vmem:[#allocation16 + $0xb8] sm:$0xff]  ;;  %v503_v19 = vld [vmem:[#allocation16 + $0xf0] sm:$0xff]  ;;  %v489_v41 = vld [vmem:[#allocation16 + $0x80] sm:$0xff] }
 0x102   :  { %2652 = vmatpush3.bf16.msra.mxu1 %v235_v7  ;;  %632 = vmatprep.subr.bf16.mxu0 %v517_v3  ;;  %v471_v35 = vld [vmem:[%s3641_s14] sm:$0x3]  ;;  %v498_v42 = vld [vmem:[#allocation16 + $0xc8] sm:$0xff]  ;;  %v509_v57 = vld [vmem:[#allocation16 + $0x120] sm:$0xff] }
 0x103   :  { %2653 = vmatprep.subr.bf16.mxu1 %v3121_v1  ;;  %v487_v37 = vld [vmem:[#allocation16 + $0x70] sm:$0xff]  ;;  %v482_v58 = vld [vmem:[#allocation16 + $0x48] sm:$0xff]  ;;  %v492_v59 = vld [vmem:[#allocation16 + $0x98] sm:$0xff] }
 0x104   :  { %v479_v40 = vld [vmem:[#allocation16 + $0x30] sm:$0xff]  ;;  %v857_v60 = vld [vmem:[#allocation17 + $0x8] sm:$0xff]  ;;  %v523_v0 = vpack.c.bf16 %v492_v59, %v482_v58 }
 0x105   :  { %v499_v56 = vld [vmem:[#allocation16 + $0xd0] sm:$0xff]  ;;  %v897_v58 = vld [vmem:[#allocation17 + $0x148] sm:$0xff] }
 0x106   :  { %2654 = vmatpush3.bf16.msra.mxu1 %v236_v10  ;;  %v530_v63 = vpack.c.bf16 %v509_v57, %v499_v56  ;;  %v491_v3 = vld [vmem:[#allocation16 + $0x90] sm:$0xff]  ;;  %v888_v56 = vld [vmem:[#allocation17 + $0x100] sm:$0xff]  ;;  %v901_v59 = vld [vmem:[#allocation17 + $0x168] sm:$0xff] }
 0x107   :  { %2655 = vmatprep.subr.bf16.mxu1 %v3121_v1  ;;  %v892_v57 = vld [vmem:[#allocation17 + $0x120] sm:$0xff] }
 0x10a   :  { %2656 = vmatpush3.bf16.msra.mxu1 %v237_v13  ;;  %v516_v13 = vpack.c.bf16 %v485_v12, %v475_v11 }
 0x10b   :  { %2661 = vmatprep.subr.bf16.mxu1 %v3121_v1 }
 0x10d   :  { %2658 = vmatmul.mubr.msk.bf16.vlgmr.msra.gmra.mrb[0].mxu1 %vm245_vm1, %v233_v15  ;;  %v504_v15 = vld [vmem:[#allocation16 + $0xf8] sm:$0xff] }
 0x10e   :  { %2665 = vmatprep.mubr.msk.bf16.mxu1 %vm3122_vm0, %v3121_v1  ;;  %2662 = vmatpush3.bf16.msra.mxu1 %v299_v18  ;;  %v525_v17 = vpack.c.bf16 %v504_v15, %v494_v14  ;;  %v493_v18 = vld [vmem:[#allocation16 + $0xa0] sm:$0xff]  ;;  %v511_v14 = vld [vmem:[#allocation16 + $0x130] sm:$0xff]  ;;  %v859_v15 = vld [vmem:[#allocation17 + $0x18] sm:$0xff] }
 0x10f   :  { %2663 = vmatprep.subr.bf16.mxu1 %v3121_v1  ;;  %v524_v20 = vpack.c.bf16 %v503_v19, %v493_v18  ;;  %v864_v19 = vld [vmem:[#allocation17 + $0x40] sm:$0xff] }
 0x112   :  { %2664 = vmatpush3.bf16.msra.mxu1 %v300_v21  ;;  %v506_v21 = vld [vmem:[#allocation16 + $0x108] sm:$0xff] }
 0x113   :  { %2669 = vmatprep.subr.bf16.mxu1 %v3121_v1 }
 0x1e0   :  { %v283_v23 = vpop.f32.mrb[0].mxu1 }
 0x1e1   :  { %v284_v24 = vadd.f32 %v2567_v22, %v283_v23  ;;  %v2659_v25 = vpop.f32.mrb[1].mxu1  ;;  %v495_v22 = vld [vmem:[#allocation16 + $0xb0] sm:$0xff]  ;;  %v505_v23 = vld [vmem:[#allocation16 + $0x100] sm:$0xff] }
 0x1e2   :  { %v286_v26 = vpop.f32.mrb[2].mxu1  ;;  %v526_v25 = vpack.c.bf16 %v505_v23, %v495_v22  ;;  %v877_v22 = vld [vmem:[#allocation17 + $0xa8] sm:$0xff] }
 0x1e3   :  { %v290_v27 = vmul.f32 0.70710677, %v284_v24  ;;  %v2660_v28 = vpop.f32.mrb[3].mxu1  ;;  %v289_v30 = vmul.f32 0.5, %v284_v24  ;;  %v527_v24 = vpack.c.bf16 %v506_v21, %v496_v16  ;;  %v478_v26 = vld [vmem:[#allocation16 + $0x28] sm:$0xff] }
 0x1e4   :  { %v480_v28 = vld [vmem:[#allocation16 + $0x38] sm:$0xff]  ;;  %v873_v21 = vld [vmem:[#allocation17 + $0x88] sm:$0xff] }
 0x1e5   :  { %2763 = verf.f32 %v290_v27  ;;  %v488_v27 = vld [vmem:[#allocation16 + $0x78] sm:$0xff] }
 0x1ef   :  { %v2764_v29 = vpop.eup %2763 }
 0x1f0   :  { %v292_v31 = vadd.f32 1.0, %v2764_v29  ;;  %v519_v29 = vpack.c.bf16 %v488_v27, %v478_v26  ;;  %v862_v26 = vld [vmem:[#allocation17 + $0x30] sm:$0xff]  ;;  %v867_v27 = vld [vmem:[#allocation17 + $0x58] sm:$0xff] }
 0x1f2   :  { %v293_v32 = vmul.f32 %v292_v31, %v289_v30  ;;  %v490_v30 = vld [vmem:[#allocation16 + $0x88] sm:$0xff]  ;;  %v3123_v31 = vmov 0  }
 0x1f4   :  { %v298_v33 = vpack.c.bf16 %v293_v32, %v293_v32  ;;  %v521_v32 = vpack.c.bf16 %v490_v30, %v480_v28  ;;  %v1515_v30 = vpack.c.bf16 %v877_v22, %v873_v21  ;;  %v898_v22 = vld [vmem:[#allocation17 + $0x150] sm:$0xff] }
 0x1f6   :  { %2666 = vmatmul.mubr.msk.bf16.vlgmr.msra.gmra.mrb[4].mxu1 %vm308_vm2, %v298_v33  ;;  %v2573_v33 = vld [vmem:[#allocation14] ss:$0 sm:$0xff] }
 0x1f7   :  { %2673 = vmatprep.mubr.msk.bf16.mxu1 %vm3122_vm0, %v3121_v1  ;;  %2670 = vmatpush3.bf16.msra.mxu1 %v362_v36  ;;  %v477_v36 = vld [vmem:[#allocation16 + $0x20] sm:$0xff] }
 0x1f8   :  { %2671 = vmatprep.subr.bf16.mxu1 %v3121_v1 }
 0x1fb   :  { %2672 = vmatpush3.bf16.msra.mxu1 %v363_v39 }
 0x1fc   :  { %591 = vmatprep.subr.bf16.mxu1 %v515_v61  ;;  %v861_v61 = vld [vmem:[#allocation17 + $0x28] sm:$0xff] }
 0x2c9   :  { %v346_v44 = vpop.f32.mrb[4].mxu1 }
 0x2ca   :  { %v347_v45 = vadd.f32 %v2569_v43, %v346_v44  ;;  %v2667_v46 = vpop.f32.mrb[5].mxu1  ;;  %v508_v44 = vld [vmem:[#allocation16 + $0x118] sm:$0xff] }
 0x2cb   :  { %v349_v47 = vpop.f32.mrb[6].mxu1  ;;  %v510_v46 = vld [vmem:[#allocation16 + $0x128] sm:$0xff] }
 0x2cc   :  { %v353_v48 = vmul.f32 0.70710677, %v347_v45  ;;  %v2668_v49 = vpop.f32.mrb[7].mxu1  ;;  %v352_v51 = vmul.f32 0.5, %v347_v45  ;;  %v500_v45 = vld [vmem:[#allocation16 + $0xd8] sm:$0xff] }
 0x2cd   :  { %v518_v49 = vpack.c.bf16 %v487_v37, %v477_v36  ;;  %v531_v55 = vpack.c.bf16 %v510_v46, %v500_v45  ;;  %v889_v45 = vld [vmem:[#allocation17 + $0x108] sm:$0xff] }
 0x2ce   :  { %2765 = verf.f32 %v353_v48  ;;  %v893_v46 = vld [vmem:[#allocation17 + $0x128] sm:$0xff] }
 0x2d8   :  { %v2766_v50 = vpop.eup %2765 }
 0x2d9   :  { %v355_v52 = vadd.f32 1.0, %v2766_v50  ;;  %v520_v50 = vpack.c.bf16 %v489_v41, %v479_v40  ;;  %v879_v41 = vld [vmem:[#allocation17 + $0xb8] sm:$0xff] }
 0x2db   :  { %v356_v53 = vmul.f32 %v355_v52, %v352_v51  ;;  %v497_v51 = vld [vmem:[#allocation16 + $0xc0] sm:$0xff]  ;;  %v507_v52 = vld [vmem:[#allocation16 + $0x110] sm:$0xff] }
 0x2dc   :  { %v528_v62 = vpack.c.bf16 %v507_v52, %v497_v51  ;;  %v883_v51 = vld [vmem:[#allocation17 + $0xd8] sm:$0xff] }
 0x2dd   :  { %v361_v54 = vpack.c.bf16 %v356_v53, %v356_v53 }
 0x2df   :  { %2674 = vmatmul.mubr.msk.bf16.vlgmr.msra.gmra.mrb[8].mxu1 %vm308_vm2, %v361_v54  ;;  %v529_v54 = vpack.c.bf16 %v508_v44, %v498_v42  ;;  %v884_v44 = vld [vmem:[#allocation17 + $0xe0] sm:$0xff] }
 0x2e0   :  { %592 = vmatpush1.bf16.msra.mxu1 %v514_v2  ;;  %623 = vmatprep.mubr.bf16.mxu1 %v3123_v31  ;;  %v481_v2 = vld [vmem:[#allocation16 + $0x40] sm:$0xff] }
 0x2e1   :  { %593 = vmatprep.subr.bf16.mxu1 %v525_v17  ;;  %v522_v11 = vpack.c.bf16 %v491_v3, %v481_v2  ;;  %v863_v17 = vld [vmem:[#allocation17 + $0x38] sm:$0xff]  ;;  %v1527_v3 = vpack.c.bf16 %v901_v59, %v897_v58  ;;  %v926_v58 = vld [vmem:[#allocation17 + $0x230] sm:$0xff] }
 0x2e2   :  { %v895_v2 = vld [vmem:[#allocation17 + $0x138] sm:$0xff] }
 0x2e4   :  { %594 = vmatpush1.bf16.msra.mxu1 %v524_v20  ;;  %v868_v20 = vld [vmem:[#allocation17 + $0x60] sm:$0xff] }
 0x2e5   :  { %673 = vmatprep.subr.bf16.mxu1 %v519_v29  ;;  %v1510_v28 = vpack.c.bf16 %v868_v20, %v864_v19  ;;  %v871_v29 = vld [vmem:[#allocation17 + $0x78] sm:$0xff]  ;;  %v917_v19 = vld [vmem:[#allocation17 + $0x1e8] sm:$0xff] }
 0x2e6   :  { %v1513_v37 = vpack.c.bf16 %v871_v29, %v867_v27  ;;  %v916_v29 = vld [vmem:[#allocation17 + $0x1e0] sm:$0xff] }
 0x3b2   :  { %v408_v5 = vpop.f32.mrb[8].mxu1 }
 0x3b3   :  { %v409_v6 = vadd.f32 %v2571_v4, %v408_v5  ;;  %v2675_v7 = vpop.f32.mrb[9].mxu1  ;;  %v502_v4 = vld [vmem:[#allocation16 + $0xe8] sm:$0xff]  ;;  %v1507_v5 = vpack.c.bf16 %v861_v61, %v857_v60  ;;  %v882_v61 = vld [vmem:[#allocation17 + $0xd0] sm:$0xff] }
 0x3b4   :  { %v411_v8 = vpop.f32.mrb[10].mxu1  ;;  %v856_v7 = vld [vmem:[#allocation17] sm:$0xff] }
 0x3b5   :  { %v418_v9 = vpack.c.bf16 %v409_v6, %v409_v6  ;;  %v2676_v10 = vpop.f32.mrb[11].mxu1  ;;  %v512_v6 = vld [vmem:[#allocation16 + $0x138] sm:$0xff]  ;;  %v860_v8 = vld [vmem:[#allocation17 + $0x20] sm:$0xff] }
 0x3b6   :  { %v869_v10 = vld [vmem:[#allocation17 + $0x68] sm:$0xff]  ;;  %v533_v12 = vpack.c.bf16 %v512_v6, %v502_v4  ;;  %v1506_v16 = vpack.c.bf16 %v860_v8, %v856_v7  ;;  %v896_v4 = vld [vmem:[#allocation17 + $0x140] sm:$0xff] }
 0x3b7   :  { %2682 = vmatmul.mubr.msk.bf16.vlgmr.msra.gmra.mrb[0].mxu0 %vm308_vm2, %v418_v9  ;;  %v865_v9 = vld [vmem:[#allocation17 + $0x48] sm:$0xff] }
 0x3b8   :  { %633 = vmatpush1.bf16.msra.mxu0 %v516_v13  ;;  %664 = vmatprep.mubr.bf16.mxu0 %v3123_v31  ;;  %v501_v13 = vld [vmem:[#allocation16 + $0xe0] sm:$0xff]  ;;  %v1511_v18 = vpack.c.bf16 %v869_v10, %v865_v9  ;;  %v905_v6 = vld [vmem:[#allocation17 + $0x188] sm:$0xff]  ;;  %v890_v10 = vld [vmem:[#allocation17 + $0x110] sm:$0xff] }
 0x3b9   :  { %634 = vmatprep.subr.bf16.mxu0 %v527_v24  ;;  %v532_v23 = vpack.c.bf16 %v511_v14, %v501_v13  ;;  %v1509_v24 = vpack.c.bf16 %v863_v17, %v859_v15  ;;  %v909_v7 = vld [vmem:[#allocation17 + $0x1a8] sm:$0xff]  ;;  %v903_v14 = vld [vmem:[#allocation17 + $0x178] sm:$0xff]  ;;  %v908_v17 = vld [vmem:[#allocation17 + $0x1a0] sm:$0xff] }
 0x3ba   :  { %v1531_v15 = vpack.c.bf16 %v909_v7, %v905_v6  ;;  %v943_v7 = vld [vmem:[#allocation17 + $0x2b8] sm:$0xff] }
 0x3bc   :  { %635 = vmatpush1.bf16.msra.mxu0 %v526_v25  ;;  %v858_v25 = vld [vmem:[#allocation17 + $0x10] sm:$0xff] }
 0x3bd   :  { %714 = vmatprep.subr.bf16.mxu0 %v521_v32  ;;  %v872_v32 = vld [vmem:[#allocation17 + $0x80] sm:$0xff]  ;;  %v1508_v36 = vpack.c.bf16 %v862_v26, %v858_v25  ;;  %v911_v26 = vld [vmem:[#allocation17 + $0x1b8] sm:$0xff] }
 0x48a   :  { %v465_v34 = vpop.f32.mrb[0].mxu0 }
 0x48b   :  { %v466_v38 = vadd.f32 %v2573_v33, %v465_v34  ;;  %v2683_v39 = vpop.f32.mrb[1].mxu0  ;;  %v876_v33 = vld [vmem:[#allocation17 + $0xa0] sm:$0xff]  ;;  %v881_v34 = vld [vmem:[#allocation17 + $0xc8] sm:$0xff] }
 0x48c   :  { %v468_v43 = vpop.f32.mrb[2].mxu0  ;;  %v875_v39 = vld [vmem:[#allocation17 + $0x98] sm:$0xff]  ;;  %v1514_v40 = vpack.c.bf16 %v876_v33, %v872_v32  ;;  %v925_v32 = vld [vmem:[#allocation17 + $0x228] sm:$0xff] }
 0x48d   :  { %v472_v47 = vadd.f32 %v471_v35, %v466_v38  ;;  %v2684_v48 = vpop.f32.mrb[3].mxu0  ;;  %v885_v35 = vld [vmem:[#allocation17 + $0xe8] sm:$0xff]  ;;  %v870_v38 = vld [vmem:[#allocation17 + $0x70] sm:$0xff]  ;;  %v880_v43 = vld [vmem:[#allocation17 + $0xc0] sm:$0xff] }
 0x48e   :  { %v1519_v42 = vpack.c.bf16 %v885_v35, %v881_v34  ;;  %v1517_v48 = vpack.c.bf16 %v879_v41, %v875_v39  ;;  %v1518_v52 = vpack.c.bf16 %v884_v44, %v880_v43  ;;  %v906_v35 = vld [vmem:[#allocation17 + $0x190] sm:$0xff]  ;;  %v924_v41 = vld [vmem:[#allocation17 + $0x220] sm:$0xff]  ;;  %v933_v43 = vld [vmem:[#allocation17 + $0x268] sm:$0xff] }
 0x48f   :  { %v3440_v53 = vpack.c.bf16 %v472_v47, %v472_v47 }
 0x491   :  { %2575 = vmatmul.mubr.msk.bf16.vlgmr.msra.gmra.mrb[12].mxu1 %vm308_vm2, %v3440_v53  ;;  %2576 = vmatmul.mubr.msk.bf16.vlgmr.msra.gmra.mrb[4].mxu0 %vm308_vm2, %v3440_v53 }
 0x492   :  { %674 = vmatpush1.bf16.msra.mxu1 %v518_v49  ;;  %715 = vmatpush1.bf16.msra.mxu0 %v520_v50  ;;  %v874_v49 = vld [vmem:[#allocation17 + $0x90] sm:$0xff] }
 0x493   :  { %675 = vmatprep.subr.bf16.mxu1 %v529_v54  ;;  %716 = vmatprep.subr.bf16.mxu0 %v531_v55  ;;  %v878_v50 = vld [vmem:[#allocation17 + $0xb0] sm:$0xff]  ;;  %v887_v54 = vld [vmem:[#allocation17 + $0xf8] sm:$0xff]  ;;  %v1523_v55 = vpack.c.bf16 %v893_v46, %v889_v45 }
 0x494   :  { %705 = vmatprep.mubr.bf16.mxu1 %v3123_v31  ;;  %746 = vmatprep.mubr.bf16.mxu0 %v3123_v31  ;;  %v1521_v60 = vpack.c.bf16 %v887_v54, %v883_v51  ;;  %v914_v46 = vld [vmem:[#allocation17 + $0x1d0] sm:$0xff]  ;;  %v932_v54 = vld [vmem:[#allocation17 + $0x260] sm:$0xff] }
 0x496   :  { %676 = vmatpush1.bf16.msra.mxu1 %v528_v62  ;;  %717 = vmatpush1.bf16.msra.mxu0 %v530_v63  ;;  %v886_v62 = vld [vmem:[#allocation17 + $0xf0] sm:$0xff]  ;;  %v891_v63 = vld [vmem:[#allocation17 + $0x118] sm:$0xff] }
 0x497   :  { %755 = vmatprep.subr.bf16.mxu1 %v523_v0  ;;  %1848 = vmatprep.subr.bf16.mxu0 %v1507_v5  ;;  %v1522_v0 = vpack.c.bf16 %v892_v57, %v888_v56  ;;  %v900_v5 = vld [vmem:[#allocation17 + $0x160] sm:$0xff]  ;;  %v1520_v8 = vpack.c.bf16 %v886_v62, %v882_v61  ;;  %v1525_v9 = vpack.c.bf16 %v895_v2, %v891_v63  ;;  %v922_v57 = vld [vmem:[#allocation17 + $0x210] sm:$0xff] }
 0x498   :  { %v1526_v13 = vpack.c.bf16 %v900_v5, %v896_v4  ;;  %v1540_v61 = vpack.c.bf16 %v926_v58, %v922_v57  ;;  %v930_v63 = vld [vmem:[#allocation17 + $0x250] sm:$0xff]  ;;  %v941_v4 = vld [vmem:[#allocation17 + $0x2a8] sm:$0xff]  ;;  %v939_v5 = vld [vmem:[#allocation17 + $0x298] sm:$0xff] }
 0x499   :  { %2577 = vmatmul.mubr.msk.bf16.vlgmr.msra.gmra.mrb[16].mxu1 %vm308_vm2, %v3440_v53  ;;  %2578 = vmatmul.mubr.msk.bf16.vlgmr.msra.gmra.mrb[8].mxu0 %vm308_vm2, %v3440_v53  ;;  %v968_v57 = vld [vmem:[#allocation17 + $0x380] sm:$0xff] }
 0x49a   :  { %756 = vmatpush1.bf16.msra.mxu1 %v522_v11  ;;  %787 = vmatprep.mubr.bf16.mxu1 %v3123_v31  ;;  %v866_v31 = vld [vmem:[#allocation17 + $0x50] sm:$0xff] }
 0x49b   :  { %757 = vmatprep.subr.bf16.mxu1 %v533_v12  ;;  %1849 = vmatpush1.bf16.msra.mxu0 %v1506_v16  ;;  %v1512_v47 = vpack.c.bf16 %v870_v38, %v866_v31  ;;  %v894_v11 = vld [vmem:[#allocation17 + $0x130] sm:$0xff]  ;;  %v899_v12 = vld [vmem:[#allocation17 + $0x158] sm:$0xff]  ;;  %v904_v16 = vld [vmem:[#allocation17 + $0x180] sm:$0xff] }
 0x49c   :  { %1850 = vmatprep.subr.bf16.mxu0 %v1511_v18  ;;  %v913_v18 = vld [vmem:[#allocation17 + $0x1c8] sm:$0xff]  ;;  %v1524_v20 = vpack.c.bf16 %v894_v11, %v890_v10  ;;  %v1529_v21 = vpack.c.bf16 %v903_v14, %v899_v12  ;;  %v1530_v25 = vpack.c.bf16 %v908_v17, %v904_v16  ;;  %v919_v38 = vld [vmem:[#allocation17 + $0x1f8] sm:$0xff]  ;;  %v1549_v10 = vpack.c.bf16 %v943_v7, %v939_v5  ;;  %v938_v12 = vld [vmem:[#allocation17 + $0x290] sm:$0xff] }
 0x49d   :  { %v1535_v27 = vpack.c.bf16 %v917_v19, %v913_v18  ;;  %v949_v16 = vld [vmem:[#allocation17 + $0x2e8] sm:$0xff]  ;;  %v947_v17 = vld [vmem:[#allocation17 + $0x2d8] sm:$0xff]  ;;  %v976_v5 = vld [vmem:[#allocation17 + $0x3c0] sm:$0xff] }
 0x49e   :  { %758 = vmatpush1.bf16.msra.mxu1 %v532_v23  ;;  %v902_v23 = vld [vmem:[#allocation17 + $0x170] sm:$0xff]  ;;  %v951_v19 = vld [vmem:[#allocation17 + $0x2f8] sm:$0xff] }
 0x49f   :  { %2053 = vmatprep.subr.bf16.mxu1 %v1509_v24  ;;  %1851 = vmatpush1.bf16.msra.mxu0 %v1510_v28  ;;  %v907_v24 = vld [vmem:[#allocation17 + $0x198] sm:$0xff]  ;;  %v912_v28 = vld [vmem:[#allocation17 + $0x1c0] sm:$0xff]  ;;  %v1528_v33 = vpack.c.bf16 %v902_v23, %v898_v22  ;;  %v1553_v22 = vpack.c.bf16 %v951_v19, %v947_v17 }
 0x4a0   :  { %1852 = vmatprep.subr.bf16.mxu0 %v1515_v30  ;;  %v921_v30 = vld [vmem:[#allocation17 + $0x208] sm:$0xff]  ;;  %v1533_v34 = vpack.c.bf16 %v911_v26, %v907_v24  ;;  %v1534_v31 = vpack.c.bf16 %v916_v29, %v912_v28  ;;  %v946_v24 = vld [vmem:[#allocation17 + $0x2d0] sm:$0xff]  ;;  %v955_v29 = vld [vmem:[#allocation17 + $0x318] sm:$0xff] }
 0x4a1   :  { %2579 = vmatmul.mubr.msk.bf16.vlgmr.msra.gmra.mrb[20].mxu1 %vm308_vm2, %v3440_v53  ;;  %v1516_v53 = vpack.c.bf16 %v878_v50, %v874_v49  ;;  %v1539_v39 = vpack.c.bf16 %v925_v32, %v921_v30  ;;  %v927_v50 = vld [vmem:[#allocation17 + $0x238] sm:$0xff]  ;;  %v957_v28 = vld [vmem:[#allocation17 + $0x328] sm:$0xff] }
 0x4a2   :  { %2054 = vmatpush1.bf16.msra.mxu1 %v1508_v36  ;;  %v910_v36 = vld [vmem:[#allocation17 + $0x1b0] sm:$0xff]  ;;  %v959_v32 = vld [vmem:[#allocation17 + $0x338] sm:$0xff] }
 0x4a3   :  { %2055 = vmatprep.subr.bf16.mxu1 %v1513_v37  ;;  %1853 = vmatpush1.bf16.msra.mxu0 %v1514_v40  ;;  %v915_v37 = vld [vmem:[#allocation17 + $0x1d8] sm:$0xff]  ;;  %v920_v40 = vld [vmem:[#allocation17 + $0x200] sm:$0xff]  ;;  %v1532_v44 = vpack.c.bf16 %v910_v36, %v906_v35  ;;  %v1557_v35 = vpack.c.bf16 %v959_v32, %v955_v29 }
 0x4a4   :  { %1854 = vmatprep.subr.bf16.mxu0 %v1519_v42  ;;  %v929_v42 = vld [vmem:[#allocation17 + $0x248] sm:$0xff]  ;;  %v1537_v45 = vpack.c.bf16 %v919_v38, %v915_v37  ;;  %v1538_v49 = vpack.c.bf16 %v924_v41, %v920_v40  ;;  %v954_v37 = vld [vmem:[#allocation17 + $0x310] sm:$0xff]  ;;  %v963_v41 = vld [vmem:[#allocation17 + $0x358] sm:$0xff] }
 0x4a5   :  { %v1543_v51 = vpack.c.bf16 %v933_v43, %v929_v42  ;;  %v965_v40 = vld [vmem:[#allocation17 + $0x368] sm:$0xff]  ;;  %v967_v43 = vld [vmem:[#allocation17 + $0x378] sm:$0xff] }
 0x4a6   :  { %2056 = vmatpush1.bf16.msra.mxu1 %v1512_v47  ;;  %v918_v47 = vld [vmem:[#allocation17 + $0x1f0] sm:$0xff] }
 0x4a7   :  { %2057 = vmatprep.subr.bf16.mxu1 %v1517_v48  ;;  %1855 = vmatpush1.bf16.msra.mxu0 %v1518_v52  ;;  %v923_v48 = vld [vmem:[#allocation17 + $0x218] sm:$0xff]  ;;  %v928_v52 = vld [vmem:[#allocation17 + $0x240] sm:$0xff] }
 0x4a8   :  { %1856 = vmatprep.subr.bf16.mxu0 %v1523_v55  ;;  %v1536_v55 = vpack.c.bf16 %v918_v47, %v914_v46  ;;  %v1541_v56 = vpack.c.bf16 %v927_v50, %v923_v48  ;;  %v1542_v59 = vpack.c.bf16 %v932_v54, %v928_v52  ;;  %v1561_v46 = vpack.c.bf16 %v967_v43, %v963_v41  ;;  %v962_v48 = vld [vmem:[#allocation17 + $0x350] sm:$0xff]  ;;  %v973_v52 = vld [vmem:[#allocation17 + $0x3a8] sm:$0xff] }
 0x4aa   :  { %2058 = vmatpush1.bf16.msra.mxu1 %v1516_v53  ;;  %v931_v53 = vld [vmem:[#allocation17 + $0x258] sm:$0xff] }
 0x4ab   :  { %2059 = vmatprep.subr.bf16.mxu1 %v1521_v60  ;;  %1857 = vmatpush1.bf16.msra.mxu0 %v1522_v0  ;;  %v935_v60 = vld [vmem:[#allocation17 + $0x278] sm:$0xff]  ;;  %v934_v0 = vld [vmem:[#allocation17 + $0x270] sm:$0xff] }
 0x4ac   :  { %1858 = vmatprep.subr.bf16.mxu0 %v1527_v3  ;;  %v1545_v62 = vpack.c.bf16 %v935_v60, %v931_v53  ;;  %v1544_v2 = vpack.c.bf16 %v934_v0, %v930_v63  ;;  %v937_v3 = vld [vmem:[#allocation17 + $0x288] sm:$0xff]  ;;  %v970_v53 = vld [vmem:[#allocation17 + $0x390] sm:$0xff] }
 0x4ad   :  { %v1547_v6 = vpack.c.bf16 %v941_v4, %v937_v3  ;;  %v974_v60 = vld [vmem:[#allocation17 + $0x3b0] sm:$0xff]  ;;  %v977_v63 = vld [vmem:[#allocation17 + $0x3c8] sm:$0xff]  ;;  %v983_v4 = vld [vmem:[#allocation17 + $0x3f8] sm:$0xff] }
 0x4ae   :  { %2060 = vmatpush1.bf16.msra.mxu1 %v1520_v8  ;;  %v936_v8 = vld [vmem:[#allocation17 + $0x280] sm:$0xff]  ;;  %v981_v0 = vld [vmem:[#allocation17 + $0x3e8] sm:$0xff] }
 0x4af   :  { %2061 = vmatprep.subr.bf16.mxu1 %v1525_v9  ;;  %1859 = vmatpush1.bf16.msra.mxu0 %v1526_v13  ;;  %v940_v9 = vld [vmem:[#allocation17 + $0x2a0] sm:$0xff]  ;;  %v942_v13 = vld [vmem:[#allocation17 + $0x2b0] sm:$0xff]  ;;  %v1567_v3 = vpack.c.bf16 %v981_v0, %v977_v63 }
 0x4b0   :  { %1860 = vmatprep.subr.bf16.mxu0 %v1531_v15  ;;  %v1546_v11 = vpack.c.bf16 %v940_v9, %v936_v8  ;;  %v1548_v14 = vpack.c.bf16 %v942_v13, %v938_v12  ;;  %v945_v15 = vld [vmem:[#allocation17 + $0x2c8] sm:$0xff]  ;;  %v978_v9 = vld [vmem:[#allocation17 + $0x3d0] sm:$0xff]  ;;  %v984_v63 = vld [vmem:[#allocation17 + $0x400] sm:$0xff] }
 0x4b1   :  { %v1551_v18 = vpack.c.bf16 %v949_v16, %v945_v15  ;;  %v985_v12 = vld [vmem:[#allocation17 + $0x408] sm:$0xff]  ;;  %v991_v16 = vld [vmem:[#allocation17 + $0x438] sm:$0xff] }
 0x4b2   :  { %2062 = vmatpush1.bf16.msra.mxu1 %v1524_v20  ;;  %v944_v20 = vld [vmem:[#allocation17 + $0x2c0] sm:$0xff]  ;;  %v989_v13 = vld [vmem:[#allocation17 + $0x428] sm:$0xff] }
 0x4b3   :  { %2063 = vmatprep.subr.bf16.mxu1 %v1529_v21  ;;  %1861 = vmatpush1.bf16.msra.mxu0 %v1530_v25  ;;  %v948_v21 = vld [vmem:[#allocation17 + $0x2e0] sm:$0xff]  ;;  %v950_v25 = vld [vmem:[#allocation17 + $0x2f0] sm:$0xff]  ;;  %v1571_v15 = vpack.c.bf16 %v989_v13, %v985_v12  ;;  %v999_v12 = vld [vmem:[#allocation17 + $0x478] sm:$0xff] }
 0x4b4   :  { %1862 = vmatprep.subr.bf16.mxu0 %v1535_v27  ;;  %v1550_v23 = vpack.c.bf16 %v948_v21, %v944_v20  ;;  %v1552_v26 = vpack.c.bf16 %v950_v25, %v946_v24  ;;  %v953_v27 = vld [vmem:[#allocation17 + $0x308] sm:$0xff]  ;;  %v3463_v21 = vld [vmem:[%s3626_s11] sm:$0xff] }
 0x4b5   :  { %v1555_v30 = vpack.c.bf16 %v957_v28, %v953_v27 }
 0x4b6   :  { %2064 = vmatpush1.bf16.msra.mxu1 %v1528_v33  ;;  %v952_v33 = vld [vmem:[#allocation17 + $0x300] sm:$0xff] }
 0x4b7   :  { %2065 = vmatprep.subr.bf16.mxu1 %v1533_v34  ;;  %1863 = vmatpush1.bf16.msra.mxu0 %v1534_v31  ;;  %v956_v34 = vld [vmem:[#allocation17 + $0x320] sm:$0xff]  ;;  %v958_v31 = vld [vmem:[#allocation17 + $0x330] sm:$0xff] }
 0x4b8   :  { %1864 = vmatprep.subr.bf16.mxu0 %v1539_v39  ;;  %v1554_v36 = vpack.c.bf16 %v956_v34, %v952_v33  ;;  %v1556_v38 = vpack.c.bf16 %v958_v31, %v954_v37  ;;  %v961_v39 = vld [vmem:[#allocation17 + $0x348] sm:$0xff] }
 0x4b9   :  { %v1559_v42 = vpack.c.bf16 %v965_v40, %v961_v39 }
 0x4ba   :  { %2066 = vmatpush1.bf16.msra.mxu1 %v1532_v44  ;;  %v960_v44 = vld [vmem:[#allocation17 + $0x340] sm:$0xff] }
 0x4bb   :  { %2067 = vmatprep.subr.bf16.mxu1 %v1537_v45  ;;  %1865 = vmatpush1.bf16.msra.mxu0 %v1538_v49  ;;  %v964_v45 = vld [vmem:[#allocation17 + $0x360] sm:$0xff]  ;;  %v966_v49 = vld [vmem:[#allocation17 + $0x370] sm:$0xff] }
 0x4bc   :  { %1866 = vmatprep.subr.bf16.mxu0 %v1543_v51  ;;  %v1558_v47 = vpack.c.bf16 %v964_v45, %v960_v44  ;;  %v1560_v50 = vpack.c.bf16 %v966_v49, %v962_v48  ;;  %v969_v51 = vld [vmem:[#allocation17 + $0x388] sm:$0xff] }
 0x4bd   :  { %v1563_v54 = vpack.c.bf16 %v973_v52, %v969_v51 }
 0x4be   :  { %2068 = vmatpush1.bf16.msra.mxu1 %v1536_v55  ;;  %v971_v55 = vld [vmem:[#allocation17 + $0x398] sm:$0xff] }
 0x4bf   :  { %2069 = vmatprep.subr.bf16.mxu1 %v1541_v56  ;;  %1867 = vmatpush1.bf16.msra.mxu0 %v1542_v59  ;;  %v975_v56 = vld [vmem:[#allocation17 + $0x3b8] sm:$0xff]  ;;  %v972_v59 = vld [vmem:[#allocation17 + $0x3a0] sm:$0xff] }
 0x4c0   :  { %1868 = vmatprep.subr.bf16.mxu0 %v1547_v6  ;;  %v1565_v58 = vpack.c.bf16 %v975_v56, %v971_v55  ;;  %v980_v6 = vld [vmem:[#allocation17 + $0x3e0] sm:$0xff] }
 0x4c1   :  { %v1566_v8 = vpack.c.bf16 %v980_v6, %v976_v5  ;;  %v986_v5 = vld [vmem:[#allocation17 + $0x410] sm:$0xff] }
 0x4c2   :  { %2070 = vmatpush1.bf16.msra.mxu1 %v1540_v61  ;;  %v1562_v61 = vpack.c.bf16 %v972_v59, %v968_v57  ;;  %v990_v6 = vld [vmem:[#allocation17 + $0x430] sm:$0xff] }
 0x4c3   :  { %2071 = vmatprep.subr.bf16.mxu1 %v1545_v62  ;;  %1869 = vmatpush1.bf16.msra.mxu0 %v1546_v11  ;;  %v1564_v62 = vpack.c.bf16 %v974_v60, %v970_v53 }
 0x4c4   :  { %1870 = vmatprep.subr.bf16.mxu0 %v1551_v18  ;;  %v538_v18 = vlaneseq }
 0x4c6   :  { %2072 = vmatpush1.bf16.msra.mxu1 %v1544_v2  ;;  %v979_v2 = vld [vmem:[#allocation17 + $0x3d8] sm:$0xff]  ;;  %v3455_v19 = vshrl.u32 %v538_v18, 7 }
 0x4c7   :  { %2073 = vmatprep.subr.bf16.mxu1 %v1549_v10  ;;  %1871 = vmatpush1.bf16.msra.mxu0 %v1550_v23  ;;  %v1569_v7 = vpack.c.bf16 %v983_v4, %v979_v2  ;;  %v982_v10 = vld [vmem:[#allocation17 + $0x3f0] sm:$0xff]  ;;  %v988_v4 = vld [vmem:[#allocation17 + $0x420] sm:$0xff] }
 0x4c8   :  { %1872 = vmatprep.subr.bf16.mxu0 %v1555_v30  ;;  %v1568_v11 = vpack.c.bf16 %v982_v10, %v978_v9  ;;  %v3458_v20 = vsub.s32 0, %v3455_v19  ;;  %v552_v23 = vsub.s32 3, %v3455_v19  ;;  %v997_v10 = vld [vmem:[#allocation17 + $0x468] sm:$0xff] }
 0x4ca   :  { %2074 = vmatpush1.bf16.msra.mxu1 %v1548_v14  ;;  %v987_v14 = vld [vmem:[#allocation17 + $0x418] sm:$0xff]  ;;  %v541_v24 = vrot.slane %v3463_v21, %v3458_v20 }
 0x4cb   :  { %2075 = vmatprep.subr.bf16.mxu1 %v1553_v22  ;;  %1873 = vmatpush1.bf16.msra.mxu0 %v1554_v36  ;;  %v1573_v17 = vpack.c.bf16 %v991_v16, %v987_v14  ;;  %v3466_v22 = vsub.s32 1, %v3455_v19  ;;  %v1570_v14 = vpack.c.bf16 %v988_v4, %v984_v63  ;;  %v992_v16 = vld [vmem:[#allocation17 + $0x440] sm:$0xff]  ;;  %v1023_v63 = vld [vmem:[#allocation17 + $0x538] sm:$0xff] }
 0x4cc   :  { %1874 = vmatprep.subr.bf16.mxu0 %v1559_v42  ;;  %v1020_v4 = vld [vmem:[#allocation17 + $0x520] sm:$0xff] }
 0x4cd   :  { %v545_v25 = vrot.slane %v3463_v21, %v3466_v22 }
 0x4ce   :  { %2076 = vmatpush1.bf16.msra.mxu1 %v1552_v26  ;;  %v553_v26 = vrot.slane %v3463_v21, %v552_v23 }
 0x4cf   :  { %2077 = vmatprep.subr.bf16.mxu1 %v1557_v35  ;;  %1875 = vmatpush1.bf16.msra.mxu0 %v1558_v47 }
 0x4d0   :  { %1876 = vmatprep.subr.bf16.mxu0 %v1563_v54 }
 0x4d2   :  { %2078 = vmatpush1.bf16.msra.mxu1 %v1556_v38 }
 0x4d3   :  { %2079 = vmatprep.subr.bf16.mxu1 %v1561_v46  ;;  %1877 = vmatpush1.bf16.msra.mxu0 %v1562_v61 }
 0x4d4   :  { %1878 = vmatprep.subr.bf16.mxu0 %v1567_v3 }
 0x4d6   :  { %2080 = vmatpush1.bf16.msra.mxu1 %v1560_v50 }
 0x4d7   :  { %2081 = vmatprep.subr.bf16.mxu1 %v1565_v58  ;;  %1879 = vmatpush1.bf16.msra.mxu0 %v1566_v8  ;;  %v993_v8 = vld [vmem:[#allocation17 + $0x448] sm:$0xff] }
 0x4d8   :  { %1889 = vmatprep.subr.bf16.mxu0 %v1571_v15  ;;  %v1572_v15 = vpack.c.bf16 %v990_v6, %v986_v5 }
 0x4da   :  { %2082 = vmatpush1.bf16.msra.mxu1 %v1564_v62 }
 0x4db   :  { %2083 = vmatprep.subr.bf16.mxu1 %v1569_v7 }
 0x4de   :  { %2084 = vmatpush1.bf16.msra.mxu1 %v1568_v11  ;;  %v995_v11 = vld [vmem:[#allocation17 + $0x458] sm:$0xff] }
 0x4df   :  { %2094 = vmatprep.subr.bf16.mxu1 %v1573_v17  ;;  %v996_v17 = vld [vmem:[#allocation17 + $0x460] sm:$0xff] }
 0x564   :  { %v625_v27 = vpop.f32.mrb[12].mxu1  ;;  %v3476_v28 = vpop.f32.mrb[4].mxu0 }
 0x565   :  { %v626_v29 = vadd.f32 %v625_v27, %v541_v24  ;;  %v627_v30 = vpop.f32.mrb[13].mxu1  ;;  %v668_v32 = vpop.f32.mrb[5].mxu0  ;;  %v994_v24 = vld [vmem:[#allocation17 + $0x450] sm:$0xff]  ;;  %v1575_v27 = vpack.c.bf16 %v997_v10, %v993_v8  ;;  %v1029_v10 = vld [vmem:[#allocation17 + $0x568] sm:$0xff] }
 0x566   :  { %v628_v33 = vadd.f32 %v627_v30, %v545_v25  ;;  %v669_v34 = vadd.f32 %v668_v32, %v553_v26  ;;  %v629_v35 = vpop.f32.mrb[14].mxu1  ;;  %v670_v36 = vpop.f32.mrb[6].mxu0  ;;  %v998_v25 = vld [vmem:[#allocation17 + $0x470] sm:$0xff]  ;;  %v1001_v26 = vld [vmem:[#allocation17 + $0x488] sm:$0xff]  ;;  %v1003_v32 = vld [vmem:[#allocation17 + $0x498] sm:$0xff] }
 0x567   :  { %v796_v37 = vmul.f32 0.999995, %v626_v29  ;;  %v630_v31 = vpop.f32.mrb[15].mxu1  ;;  %v671_v38 = vpop.f32.mrb[7].mxu0  ;;  %v1577_v29 = vpack.c.bf16 %v999_v12, %v995_v11  ;;  %v1005_v30 = vld [vmem:[#allocation17 + $0x4a8] sm:$0xff]  ;;  %v1574_v35 = vpack.c.bf16 %v996_v17, %v992_v16  ;;  %v1576_v36 = vpack.c.bf16 %v998_v25, %v994_v24  ;;  %v1022_v8 = vld [vmem:[#allocation17 + $0x530] sm:$0xff] }
 0x568   :  { %v797_v39 = vmul.f32 0.999995, %v628_v33  ;;  %v799_v40 = vmul.f32 0.999995, %v669_v34  ;;  %v1007_v33 = vld [vmem:[#allocation17 + $0x4b8] sm:$0xff]  ;;  %v1004_v31 = vld [vmem:[#allocation17 + $0x4a0] sm:$0xff]  ;;  %v1579_v38 = vpack.c.bf16 %v1005_v30, %v1001_v26 }
 0x569   :  { %v816_v41 = vmul.f32 0.70710677, %v796_v37  ;;  %v806_v59 = vmul.f32 0.5, %v796_v37  ;;  %v1000_v37 = vld [vmem:[#allocation17 + $0x480] sm:$0xff]  ;;  %v1027_v11 = vld [vmem:[#allocation17 + $0x558] sm:$0xff]  ;;  %v1026_v24 = vld [vmem:[#allocation17 + $0x550] sm:$0xff] }
 0x56a   :  { %v817_v42 = vmul.f32 0.70710677, %v797_v39  ;;  %v819_v43 = vmul.f32 0.70710677, %v799_v40  ;;  %v807_v61 = vmul.f32 0.5, %v797_v39  ;;  %v809_v2 = vmul.f32 0.5, %v799_v40 }
 0x56b   :  { %2767 = verf.f32 %v816_v41  ;;  %v1581_v39 = vpack.c.bf16 %v1007_v33, %v1003_v32  ;;  %v1002_v40 = vld [vmem:[#allocation17 + $0x490] sm:$0xff]  ;;  %v1031_v12 = vld [vmem:[#allocation17 + $0x578] sm:$0xff]  ;;  %v1028_v16 = vld [vmem:[#allocation17 + $0x560] sm:$0xff] }
 0x56c   :  { %v3478_v44 = vpop.f32.mrb[16].mxu1  ;;  %v3480_v45 = vpop.f32.mrb[8].mxu0  ;;  %2769 = verf.f32 %v817_v42  ;;  %v1006_v41 = vld [vmem:[#allocation17 + $0x4b0] sm:$0xff]  ;;  %v1009_v42 = vld [vmem:[#allocation17 + $0x4c8] sm:$0xff]  ;;  %v1039_v30 = vld [vmem:[#allocation17 + $0x5b8] sm:$0xff] }
 0x56d   :  { %v3482_v46 = vpop.f32.mrb[17].mxu1  ;;  %v3484_v47 = vpop.f32.mrb[9].mxu0  ;;  %2771 = verf.f32 %v819_v43  ;;  %v1013_v43 = vld [vmem:[#allocation17 + $0x4e8] sm:$0xff]  ;;  %v1030_v25 = vld [vmem:[#allocation17 + $0x570] sm:$0xff] }
 0x56e   :  { %v711_v48 = vpop.f32.mrb[18].mxu1  ;;  %v752_v49 = vpop.f32.mrb[10].mxu0  ;;  %v1033_v26 = vld [vmem:[#allocation17 + $0x588] sm:$0xff]  ;;  %v1592_v33 = vpack.c.bf16 %v1030_v25, %v1026_v24 }
 0x56f   :  { %v712_v50 = vpop.f32.mrb[19].mxu1  ;;  %v753_v51 = vpop.f32.mrb[11].mxu0  ;;  %v1011_v48 = vld [vmem:[#allocation17 + $0x4d8] sm:$0xff] }
 0x570   :  { %v1015_v49 = vld [vmem:[#allocation17 + $0x4f8] sm:$0xff]  ;;  %v1578_v50 = vpack.c.bf16 %v1004_v31, %v1000_v37  ;;  %v1580_v51 = vpack.c.bf16 %v1006_v41, %v1002_v40  ;;  %v1034_v31 = vld [vmem:[#allocation17 + $0x590] sm:$0xff]  ;;  %v1045_v40 = vld [vmem:[#allocation17 + $0x5e8] sm:$0xff] }
 0x571   :  { %v1043_v41 = vld [vmem:[#allocation17 + $0x5d8] sm:$0xff] }
 0x574   :  { %v3486_v52 = vpop.f32.mrb[20].mxu1 }
 0x575   :  { %v2768_v54 = vpop.eup %2767  ;;  %v3488_v55 = vpop.f32.mrb[21].mxu1 }
 0x576   :  { %v836_v56 = vadd.f32 1.0, %v2768_v54  ;;  %v793_v57 = vpop.f32.mrb[22].mxu1  ;;  %v2770_v58 = vpop.eup %2769  ;;  %v1008_v54 = vld [vmem:[#allocation17 + $0x4c0] sm:$0xff] }
 0x577   :  { %v794_v53 = vpop.f32.mrb[23].mxu1  ;;  %v2772_v60 = vpop.eup %2771  ;;  %v837_v62 = vadd.f32 1.0, %v2770_v58  ;;  %v1583_v57 = vpack.c.bf16 %v1013_v43, %v1009_v42  ;;  %v1585_v58 = vpack.c.bf16 %v1015_v49, %v1011_v48  ;;  %v1047_v42 = vld [vmem:[#allocation17 + $0x5f8] sm:$0xff]  ;;  %v548_v43 = vsub.s32 2, %v3455_v19 }
 0x578   :  { %v846_v0 = vmul.f32 %v836_v56, %v806_v59  ;;  %v839_v3 = vadd.f32 1.0, %v2772_v60  ;;  %v1012_v56 = vld [vmem:[#allocation17 + $0x4e0] sm:$0xff]  ;;  %v1010_v59 = vld [vmem:[#allocation17 + $0x4d0] sm:$0xff]  ;;  %v1017_v60 = vld [vmem:[#allocation17 + $0x508] sm:$0xff] }
 0x579   :  { %v847_v7 = vmul.f32 %v837_v62, %v807_v61  ;;  %v1014_v53 = vld [vmem:[#allocation17 + $0x4f0] sm:$0xff]  ;;  %v1021_v61 = vld [vmem:[#allocation17 + $0x528] sm:$0xff]  ;;  %v1019_v62 = vld [vmem:[#allocation17 + $0x518] sm:$0xff] }
 0x57a   :  { %v849_v9 = vmul.f32 %v839_v3, %v809_v2  ;;  %v1496_v18 = vpack.c.bf16 %v846_v0, %v846_v0  ;;  %v1582_v0 = vpack.c.bf16 %v1012_v56, %v1008_v54  ;;  %v1584_v2 = vpack.c.bf16 %v1014_v53, %v1010_v59  ;;  %v1016_v3 = vld [vmem:[#allocation17 + $0x500] sm:$0xff]  ;;  %v1046_v59 = vld [vmem:[#allocation17 + $0x5f0] sm:$0xff]  ;;  %v1049_v53 = vld [vmem:[#allocation17 + $0x608] sm:$0xff] }
 0x57b   :  { %v1497_v13 = vpack.c.bf16 %v847_v7, %v847_v7  ;;  %v1587_v5 = vpack.c.bf16 %v1021_v61, %v1017_v60  ;;  %v1589_v6 = vpack.c.bf16 %v1023_v63, %v1019_v62  ;;  %v1018_v7 = vld [vmem:[#allocation17 + $0x510] sm:$0xff]  ;;  %v560_v54 = vsub.s32 5, %v3455_v19  ;;  %v1053_v60 = vld [vmem:[#allocation17 + $0x628] sm:$0xff]  ;;  %v1051_v61 = vld [vmem:[#allocation17 + $0x618] sm:$0xff] }
 0x57c   :  { %v1499_v34 = vpack.c.bf16 %v849_v9, %v849_v9  ;;  %v1025_v9 = vld [vmem:[#allocation17 + $0x548] sm:$0xff]  ;;  %v1055_v62 = vld [vmem:[#allocation17 + $0x638] sm:$0xff]  ;;  %v549_v63 = vrot.slane %v3463_v21, %v548_v43 }
 0x57d   :  { %1880 = vmatprep.mubr.bf16.mxu0 %v1497_v13  ;;  %2085 = vmatprep.mubr.bf16.mxu1 %v1497_v13  ;;  %v1586_v13 = vpack.c.bf16 %v1020_v4, %v1016_v3  ;;  %v1591_v17 = vpack.c.bf16 %v1029_v10, %v1025_v9  ;;  %v1048_v3 = vld [vmem:[#allocation17 + $0x600] sm:$0xff]  ;;  %v1054_v9 = vld [vmem:[#allocation17 + $0x630] sm:$0xff]  ;;  %v1057_v10 = vld [vmem:[#allocation17 + $0x648] sm:$0xff] }
 0x57e   :  { %1881 = vmatmul.mubr.bf16.vlgmr.msra.gmra.mrb[12].mxu0 %v1496_v18  ;;  %2086 = vmatmul.mubr.bf16.vlgmr.msra.gmra.mrb[24].mxu1 %v1496_v18  ;;  %v1593_v18 = vpack.c.bf16 %v1031_v12, %v1027_v11  ;;  %v1052_v4 = vld [vmem:[#allocation17 + $0x620] sm:$0xff]  ;;  %v1061_v11 = vld [vmem:[#allocation17 + $0x668] sm:$0xff]  ;;  %v1059_v12 = vld [vmem:[#allocation17 + $0x658] sm:$0xff] }
 0x57f   :  { %1890 = vmatpush1.bf16.msra.mxu0 %v1570_v14  ;;  %2095 = vmatpush1.bf16.msra.mxu1 %v1572_v15  ;;  %v1588_v14 = vpack.c.bf16 %v1022_v8, %v1018_v7  ;;  %v1024_v15 = vld [vmem:[#allocation17 + $0x540] sm:$0xff]  ;;  %v1605_v7 = vpack.c.bf16 %v1055_v62, %v1051_v61  ;;  %v1050_v8 = vld [vmem:[#allocation17 + $0x610] sm:$0xff]  ;;  %v1607_v25 = vpack.c.bf16 %v1061_v11, %v1057_v10 }
 0x580   :  { %1921 = vmatprep.mubr.bf16.mxu0 %v1499_v34  ;;  %2126 = vmatprep.mubr.bf16.mxu1 %v1499_v34  ;;  %v1590_v32 = vpack.c.bf16 %v1028_v16, %v1024_v15  ;;  %v1032_v34 = vld [vmem:[#allocation17 + $0x580] sm:$0xff]  ;;  %v1602_v15 = vpack.c.bf16 %v1052_v4, %v1048_v3  ;;  %v1604_v16 = vpack.c.bf16 %v1054_v9, %v1050_v8  ;;  %v1074_v61 = vld [vmem:[#allocation17 + $0x6d0] sm:$0xff]  ;;  %v1087_v3 = vld [vmem:[#allocation17 + $0x738] sm:$0xff] }
 0x581   :  { %1891 = vmatprep.subr.bf16.mxu0 %v1575_v27  ;;  %2096 = vmatprep.subr.bf16.mxu1 %v1577_v29  ;;  %v1037_v27 = vld [vmem:[#allocation17 + $0x5a8] sm:$0xff]  ;;  %v1035_v29 = vld [vmem:[#allocation17 + $0x598] sm:$0xff]  ;;  %v1078_v62 = vld [vmem:[#allocation17 + $0x6f0] sm:$0xff] }
 0x582   :  { %v1597_v37 = vpack.c.bf16 %v1039_v30, %v1035_v29  ;;  %v1062_v29 = vld [vmem:[#allocation17 + $0x670] sm:$0xff]  ;;  %v1065_v30 = vld [vmem:[#allocation17 + $0x688] sm:$0xff] }
 0x583   :  { %1892 = vmatpush1.bf16.msra.mxu0 %v1574_v35  ;;  %2097 = vmatpush1.bf16.msra.mxu1 %v1576_v36  ;;  %v1036_v35 = vld [vmem:[#allocation17 + $0x5a0] sm:$0xff]  ;;  %v1595_v36 = vpack.c.bf16 %v1037_v27, %v1033_v26  ;;  %v1058_v27 = vld [vmem:[#allocation17 + $0x650] sm:$0xff] }
 0x584   :  { %1893 = vmatprep.subr.bf16.mxu0 %v1579_v38  ;;  %2098 = vmatprep.subr.bf16.mxu1 %v1581_v39  ;;  %v1038_v38 = vld [vmem:[#allocation17 + $0x5b0] sm:$0xff]  ;;  %v1041_v39 = vld [vmem:[#allocation17 + $0x5c8] sm:$0xff]  ;;  %v1594_v48 = vpack.c.bf16 %v1036_v35, %v1032_v34  ;;  %v1071_v34 = vld [vmem:[#allocation17 + $0x6b8] sm:$0xff] }
 0x585   :  { %v1596_v49 = vpack.c.bf16 %v1038_v38, %v1034_v31  ;;  %v1599_v56 = vpack.c.bf16 %v1045_v40, %v1041_v39  ;;  %v1068_v31 = vld [vmem:[#allocation17 + $0x6a0] sm:$0xff]  ;;  %v1066_v40 = vld [vmem:[#allocation17 + $0x690] sm:$0xff] }
 0x586   :  { %v1082_v10 = vld [vmem:[#allocation17 + $0x710] sm:$0xff] }
 0x587   :  { %1894 = vmatpush1.bf16.msra.mxu0 %v1578_v50  ;;  %2099 = vmatpush1.bf16.msra.mxu1 %v1580_v51  ;;  %v1040_v50 = vld [vmem:[#allocation17 + $0x5c0] sm:$0xff]  ;;  %v1086_v11 = vld [vmem:[#allocation17 + $0x730] sm:$0xff] }
 0x588   :  { %1895 = vmatprep.subr.bf16.mxu0 %v1583_v57  ;;  %2100 = vmatprep.subr.bf16.mxu1 %v1585_v58  ;;  %v1044_v51 = vld [vmem:[#allocation17 + $0x5e0] sm:$0xff]  ;;  %v1601_v57 = vpack.c.bf16 %v1047_v42, %v1043_v41  ;;  %v1042_v58 = vld [vmem:[#allocation17 + $0x5d0] sm:$0xff]  ;;  %v1073_v42 = vld [vmem:[#allocation17 + $0x6c8] sm:$0xff] }
 0x589   :  { %v1070_v41 = vld [vmem:[#allocation17 + $0x6b0] sm:$0xff] }
 0x58b   :  { %1896 = vmatpush1.bf16.msra.mxu0 %v1582_v0  ;;  %2101 = vmatpush1.bf16.msra.mxu1 %v1584_v2  ;;  %v1598_v0 = vpack.c.bf16 %v1044_v51, %v1040_v50  ;;  %v1600_v2 = vpack.c.bf16 %v1046_v59, %v1042_v58  ;;  %v1079_v50 = vld [vmem:[#allocation17 + $0x6f8] sm:$0xff]  ;;  %v1076_v58 = vld [vmem:[#allocation17 + $0x6e0] sm:$0xff] }
 0x58c   :  { %1897 = vmatprep.subr.bf16.mxu0 %v1587_v5  ;;  %2102 = vmatprep.subr.bf16.mxu1 %v1589_v6  ;;  %v561_v5 = vrot.slane %v3463_v21, %v560_v54  ;;  %v1603_v6 = vpack.c.bf16 %v1053_v60, %v1049_v53 }
 0x58e   :  { %v710_v24 = vadd.f32 %v3482_v46, %v561_v5  ;;  %v1616_v5 = vpack.c.bf16 %v1078_v62, %v1074_v61  ;;  %v1106_v62 = vld [vmem:[#allocation17 + $0x7d0] sm:$0xff] }
 0x58f   :  { %1898 = vmatpush1.bf16.msra.mxu0 %v1586_v13  ;;  %2103 = vmatpush1.bf16.msra.mxu1 %v1588_v14  ;;  %v1063_v13 = vld [vmem:[#allocation17 + $0x678] sm:$0xff]  ;;  %v667_v14 = vadd.f32 %v3476_v28, %v549_v63  ;;  %v1081_v63 = vld [vmem:[#allocation17 + $0x708] sm:$0xff] }
 0x590   :  { %1899 = vmatprep.subr.bf16.mxu0 %v1591_v17  ;;  %2104 = vmatprep.subr.bf16.mxu1 %v1593_v18  ;;  %v1056_v17 = vld [vmem:[#allocation17 + $0x640] sm:$0xff]  ;;  %v1609_v26 = vpack.c.bf16 %v1063_v13, %v1059_v12  ;;  %v3500_v38 = vmul.f32 0.999995, %v710_v24  ;;  %v1089_v12 = vld [vmem:[#allocation17 + $0x748] sm:$0xff] }
 0x591   :  { %v1060_v18 = vld [vmem:[#allocation17 + $0x660] sm:$0xff]  ;;  %v3498_v35 = vmul.f32 0.999995, %v667_v14  ;;  %v1093_v13 = vld [vmem:[#allocation17 + $0x768] sm:$0xff]  ;;  %v1091_v14 = vld [vmem:[#allocation17 + $0x758] sm:$0xff] }
 0x592   :  { %v1606_v28 = vpack.c.bf16 %v1060_v18, %v1056_v17  ;;  %v821_v59 = vmul.f32 0.70710677, %v3500_v38  ;;  %v1620_v17 = vpack.c.bf16 %v1086_v11, %v1082_v10  ;;  %v1088_v18 = vld [vmem:[#allocation17 + $0x740] sm:$0xff] }
 0x593   :  { %1900 = vmatpush1.bf16.msra.mxu0 %v1590_v32  ;;  %2105 = vmatpush1.bf16.msra.mxu1 %v1592_v33  ;;  %v1069_v32 = vld [vmem:[#allocation17 + $0x6a8] sm:$0xff]  ;;  %v1067_v33 = vld [vmem:[#allocation17 + $0x698] sm:$0xff]  ;;  %v818_v51 = vmul.f32 0.70710677, %v3498_v35  ;;  %v1092_v24 = vld [vmem:[#allocation17 + $0x760] sm:$0xff] }
 0x594   :  { %1901 = vmatprep.subr.bf16.mxu0 %v1595_v36  ;;  %2106 = vmatprep.subr.bf16.mxu1 %v1597_v37  ;;  %v1608_v36 = vpack.c.bf16 %v1062_v29, %v1058_v27  ;;  %v1064_v37 = vld [vmem:[#allocation17 + $0x680] sm:$0xff]  ;;  %v1611_v46 = vpack.c.bf16 %v1069_v32, %v1065_v30  ;;  %v1613_v39 = vpack.c.bf16 %v1071_v34, %v1067_v33  ;;  %v1090_v27 = vld [vmem:[#allocation17 + $0x750] sm:$0xff]  ;;  %v1097_v30 = vld [vmem:[#allocation17 + $0x788] sm:$0xff] }
 0x595   :  { %v1610_v54 = vpack.c.bf16 %v1068_v31, %v1064_v37  ;;  %2773 = verf.f32 %v818_v51  ;;  %v1094_v29 = vld [vmem:[#allocation17 + $0x770] sm:$0xff]  ;;  %v1101_v32 = vld [vmem:[#allocation17 + $0x7a8] sm:$0xff]  ;;  %v1099_v33 = vld [vmem:[#allocation17 + $0x798] sm:$0xff] }
 0x596   :  { %2775 = verf.f32 %v821_v59  ;;  %v1103_v34 = vld [vmem:[#allocation17 + $0x7b8] sm:$0xff]  ;;  %v1096_v37 = vld [vmem:[#allocation17 + $0x780] sm:$0xff] }
 0x597   :  { %1902 = vmatpush1.bf16.msra.mxu0 %v1594_v48  ;;  %2107 = vmatpush1.bf16.msra.mxu1 %v1596_v49  ;;  %v1077_v48 = vld [vmem:[#allocation17 + $0x6e8] sm:$0xff]  ;;  %v1075_v49 = vld [vmem:[#allocation17 + $0x6d8] sm:$0xff]  ;;  %v1100_v31 = vld [vmem:[#allocation17 + $0x7a0] sm:$0xff] }
 0x598   :  { %1903 = vmatprep.subr.bf16.mxu0 %v1599_v56  ;;  %2108 = vmatprep.subr.bf16.mxu1 %v1601_v57  ;;  %v1612_v56 = vpack.c.bf16 %v1070_v41, %v1066_v40  ;;  %v1072_v57 = vld [vmem:[#allocation17 + $0x6c0] sm:$0xff]  ;;  %v1615_v53 = vpack.c.bf16 %v1077_v48, %v1073_v42  ;;  %v1617_v60 = vpack.c.bf16 %v1079_v50, %v1075_v49  ;;  %v1098_v40 = vld [vmem:[#allocation17 + $0x790] sm:$0xff]  ;;  %v1105_v42 = vld [vmem:[#allocation17 + $0x7c8] sm:$0xff] }
 0x599   :  { %v1614_v4 = vpack.c.bf16 %v1076_v58, %v1072_v57  ;;  %v1102_v41 = vld [vmem:[#allocation17 + $0x7b0] sm:$0xff]  ;;  %v1109_v49 = vld [vmem:[#allocation17 + $0x7e8] sm:$0xff]  ;;  %v1107_v50 = vld [vmem:[#allocation17 + $0x7d8] sm:$0xff] }
 0x59a   :  { %v1111_v51 = vld [vmem:[#allocation17 + $0x7f8] sm:$0xff]  ;;  %v1628_v57 = vpack.c.bf16 %v1102_v41, %v1098_v40  ;;  %v1104_v58 = vld [vmem:[#allocation17 + $0x7c0] sm:$0xff] }
 0x59b   :  { %1904 = vmatpush1.bf16.msra.mxu0 %v1598_v0  ;;  %2109 = vmatpush1.bf16.msra.mxu1 %v1600_v2  ;;  %v1085_v0 = vld [vmem:[#allocation17 + $0x728] sm:$0xff]  ;;  %v1083_v2 = vld [vmem:[#allocation17 + $0x718] sm:$0xff]  ;;  %v1108_v59 = vld [vmem:[#allocation17 + $0x7e0] sm:$0xff]  ;;  %v1633_v61 = vpack.c.bf16 %v1111_v51, %v1107_v50 }
 0x59c   :  { %1905 = vmatprep.subr.bf16.mxu0 %v1603_v6  ;;  %2110 = vmatprep.subr.bf16.mxu1 %v1605_v7  ;;  %v1080_v6 = vld [vmem:[#allocation17 + $0x700] sm:$0xff]  ;;  %v1619_v8 = vpack.c.bf16 %v1085_v0, %v1081_v63  ;;  %v1621_v9 = vpack.c.bf16 %v1087_v3, %v1083_v2  ;;  %v1110_v63 = vld [vmem:[#allocation17 + $0x7f0] sm:$0xff]  ;;  %v1113_v0 = vld [vmem:[#allocation17 + $0x808] sm:$0xff] }
 0x59d   :  { %v1084_v7 = vld [vmem:[#allocation17 + $0x720] sm:$0xff]  ;;  %v1117_v3 = vld [vmem:[#allocation17 + $0x828] sm:$0xff]  ;;  %v1130_v50 = vld [vmem:[#allocation17 + $0x890] sm:$0xff] }
 0x59e   :  { %v1635_v11 = vpack.c.bf16 %v1117_v3, %v1113_v0  ;;  %v1138_v0 = vld [vmem:[#allocation17 + $0x8d0] sm:$0xff] }
 0x59f   :  { %1906 = vmatpush1.bf16.msra.mxu0 %v1602_v15  ;;  %2111 = vmatpush1.bf16.msra.mxu1 %v1604_v16  ;;  %v1095_v15 = vld [vmem:[#allocation17 + $0x778] sm:$0xff]  ;;  %v1618_v16 = vpack.c.bf16 %v1084_v7, %v1080_v6  ;;  %v2774_v48 = vpop.eup %2773  ;;  %v808_v6 = vmul.f32 0.5, %v3498_v35  ;;  %v811_v7 = vmul.f32 0.5, %v3500_v38  ;;  %v1142_v3 = vld [vmem:[#allocation17 + $0x8f0] sm:$0xff] }
 0x5a0   :  { %1907 = vmatprep.subr.bf16.mxu0 %v1607_v25  ;;  %2112 = vmatprep.subr.bf16.mxu1 %v1609_v26  ;;  %v1623_v25 = vpack.c.bf16 %v1093_v13, %v1089_v12  ;;  %v1625_v26 = vpack.c.bf16 %v1095_v15, %v1091_v14  ;;  %v1112_v13 = vld [vmem:[#allocation17 + $0x800] sm:$0xff]  ;;  %v1127_v35 = vld [vmem:[#allocation17 + $0x878] sm:$0xff] }
 0x5a1   :  { %v1116_v14 = vld [vmem:[#allocation17 + $0x820] sm:$0xff] }
 0x5a2   :  { %v1634_v38 = vpack.c.bf16 %v1116_v14, %v1112_v13  ;;  %v1146_v13 = vld [vmem:[#allocation17 + $0x910] sm:$0xff] }
 0x5a3   :  { %1908 = vmatpush1.bf16.msra.mxu0 %v1606_v28  ;;  %2113 = vmatpush1.bf16.msra.mxu1 %v1608_v36  ;;  %v1622_v28 = vpack.c.bf16 %v1092_v24, %v1088_v18  ;;  %v1624_v36 = vpack.c.bf16 %v1094_v29, %v1090_v27  ;;  %v1121_v18 = vld [vmem:[#allocation17 + $0x848] sm:$0xff]  ;;  %v1120_v29 = vld [vmem:[#allocation17 + $0x840] sm:$0xff] }
 0x5a4   :  { %1909 = vmatprep.subr.bf16.mxu0 %v1611_v46  ;;  %2114 = vmatprep.subr.bf16.mxu1 %v1613_v39  ;;  %v1627_v46 = vpack.c.bf16 %v1101_v32, %v1097_v30  ;;  %v1629_v39 = vpack.c.bf16 %v1103_v34, %v1099_v33  ;;  %v1125_v24 = vld [vmem:[#allocation17 + $0x868] sm:$0xff]  ;;  %v1124_v30 = vld [vmem:[#allocation17 + $0x860] sm:$0xff]  ;;  %v1122_v32 = vld [vmem:[#allocation17 + $0x850] sm:$0xff] }
 0x5a5   :  { %v1639_v34 = vpack.c.bf16 %v1125_v24, %v1121_v18  ;;  %v1638_v40 = vpack.c.bf16 %v1124_v30, %v1120_v29  ;;  %v1155_v18 = vld [vmem:[#allocation17 + $0x958] sm:$0xff]  ;;  %v1154_v29 = vld [vmem:[#allocation17 + $0x950] sm:$0xff] }
 0x5a6   :  { %v1159_v24 = vld [vmem:[#allocation17 + $0x978] sm:$0xff] }
 0x5a7   :  { %1910 = vmatpush1.bf16.msra.mxu0 %v1610_v54  ;;  %2115 = vmatpush1.bf16.msra.mxu1 %v1612_v56  ;;  %v2776_v54 = vpop.eup %2775  ;;  %v1626_v56 = vpack.c.bf16 %v1100_v31, %v1096_v37  ;;  %v1129_v37 = vld [vmem:[#allocation17 + $0x888] sm:$0xff]  ;;  %v1657_v30 = vpack.c.bf16 %v1159_v24, %v1155_v18  ;;  %v1187_v18 = vld [vmem:[#allocation17 + $0xa58] sm:$0xff] }
 0x5a8   :  { %1911 = vmatprep.subr.bf16.mxu0 %v1615_v53  ;;  %2116 = vmatprep.subr.bf16.mxu1 %v1617_v60  ;;  %v838_v53 = vadd.f32 1.0, %v2774_v48  ;;  %v1631_v60 = vpack.c.bf16 %v1109_v49, %v1105_v42  ;;  %v841_v2 = vadd.f32 1.0, %v2776_v54  ;;  %v1133_v31 = vld [vmem:[#allocation17 + $0x8a8] sm:$0xff]  ;;  %v1128_v48 = vld [vmem:[#allocation17 + $0x880] sm:$0xff]  ;;  %v1134_v54 = vld [vmem:[#allocation17 + $0x8b0] sm:$0xff] }
 0x5a9   :  { %v1643_v42 = vpack.c.bf16 %v1133_v31, %v1129_v37  ;;  %v1132_v49 = vld [vmem:[#allocation17 + $0x8a0] sm:$0xff]  ;;  %v1191_v24 = vld [vmem:[#allocation17 + $0xa78] sm:$0xff] }
 0x5aa   :  { %v848_v10 = vmul.f32 %v838_v53, %v808_v6  ;;  %v851_v15 = vmul.f32 %v841_v2, %v811_v7  ;;  %v1642_v53 = vpack.c.bf16 %v1132_v49, %v1128_v48  ;;  %v1147_v6 = vld [vmem:[#allocation17 + $0x918] sm:$0xff]  ;;  %v1166_v48 = vld [vmem:[#allocation17 + $0x9b0] sm:$0xff]  ;;  %v1169_v49 = vld [vmem:[#allocation17 + $0x9c8] sm:$0xff] }
 0x5ab   :  { %1912 = vmatpush1.bf16.msra.mxu0 %v1614_v4  ;;  %2117 = vmatpush1.bf16.msra.mxu1 %v1616_v5  ;;  %v1115_v4 = vld [vmem:[#allocation17 + $0x818] sm:$0xff] }
 0x5ac   :  { %1913 = vmatprep.subr.bf16.mxu0 %v1619_v8  ;;  %2118 = vmatprep.subr.bf16.mxu1 %v1621_v9  ;;  %v1119_v5 = vld [vmem:[#allocation17 + $0x838] sm:$0xff]  ;;  %v1630_v8 = vpack.c.bf16 %v1108_v59, %v1104_v58  ;;  %v1632_v9 = vpack.c.bf16 %v1110_v63, %v1106_v62  ;;  %v1501_v33 = vpack.c.bf16 %v851_v15, %v851_v15  ;;  %v1136_v62 = vld [vmem:[#allocation17 + $0x8c0] sm:$0xff]  ;;  %v1150_v15 = vld [vmem:[#allocation17 + $0x930] sm:$0xff] }
 0x5ad   :  { %v1637_v12 = vpack.c.bf16 %v1119_v5, %v1115_v4  ;;  %v1139_v58 = vld [vmem:[#allocation17 + $0x8d8] sm:$0xff]  ;;  %v1140_v63 = vld [vmem:[#allocation17 + $0x8e0] sm:$0xff]  ;;  %v1145_v4 = vld [vmem:[#allocation17 + $0x908] sm:$0xff] }
 0x5ae   :  { %v1143_v59 = vld [vmem:[#allocation17 + $0x8f8] sm:$0xff]  ;;  %v1149_v5 = vld [vmem:[#allocation17 + $0x928] sm:$0xff] }
 0x5af   :  { %1914 = vmatpush1.bf16.msra.mxu0 %v1618_v16  ;;  %2119 = vmatpush1.bf16.msra.mxu1 %v1620_v17  ;;  %v1114_v16 = vld [vmem:[#allocation17 + $0x810] sm:$0xff]  ;;  %v1649_v2 = vpack.c.bf16 %v1143_v59, %v1139_v58  ;;  %v1151_v7 = vld [vmem:[#allocation17 + $0x938] sm:$0xff] }
 0x5b0   :  { %1915 = vmatprep.subr.bf16.mxu0 %v1623_v25  ;;  %2120 = vmatprep.subr.bf16.mxu1 %v1625_v26  ;;  %v1118_v17 = vld [vmem:[#allocation17 + $0x830] sm:$0xff]  ;;  %v1123_v25 = vld [vmem:[#allocation17 + $0x858] sm:$0xff]  ;;  %v1498_v26 = vpack.c.bf16 %v848_v10, %v848_v10  ;;  %v1651_v10 = vpack.c.bf16 %v1149_v5, %v1145_v4  ;;  %v1653_v14 = vpack.c.bf16 %v1151_v7, %v1147_v6 }
 0x5b1   :  { %v1636_v27 = vpack.c.bf16 %v1118_v17, %v1114_v16  ;;  %v1153_v16 = vld [vmem:[#allocation17 + $0x948] sm:$0xff]  ;;  %v1179_v4 = vld [vmem:[#allocation17 + $0xa18] sm:$0xff] }
 0x5b2   :  { %v1157_v17 = vld [vmem:[#allocation17 + $0x968] sm:$0xff]  ;;  %v1183_v5 = vld [vmem:[#allocation17 + $0xa38] sm:$0xff] }
 0x5b3   :  { %1916 = vmatpush1.bf16.msra.mxu0 %v1622_v28  ;;  %2121 = vmatpush1.bf16.msra.mxu1 %v1624_v36  ;;  %v1641_v28 = vpack.c.bf16 %v1127_v35, %v1123_v25  ;;  %v1126_v36 = vld [vmem:[#allocation17 + $0x870] sm:$0xff]  ;;  %v1652_v35 = vpack.c.bf16 %v1150_v15, %v1146_v13 }
 0x5b4   :  { %1917 = vmatprep.subr.bf16.mxu0 %v1627_v46  ;;  %2122 = vmatprep.subr.bf16.mxu1 %v1629_v39  ;;  %v1131_v46 = vld [vmem:[#allocation17 + $0x898] sm:$0xff]  ;;  %v1640_v41 = vpack.c.bf16 %v1126_v36, %v1122_v32  ;;  %v1158_v32 = vld [vmem:[#allocation17 + $0x970] sm:$0xff] }
 0x5b5   :  { %v1135_v39 = vld [vmem:[#allocation17 + $0x8b8] sm:$0xff]  ;;  %v1656_v31 = vpack.c.bf16 %v1158_v32, %v1154_v29  ;;  %v1182_v15 = vld [vmem:[#allocation17 + $0xa30] sm:$0xff]  ;;  %v1188_v29 = vld [vmem:[#allocation17 + $0xa60] sm:$0xff]  ;;  %v1673_v32 = vpack.c.bf16 %v1191_v24, %v1187_v18 }
 0x5b6   :  { %v1645_v51 = vpack.c.bf16 %v1135_v39, %v1131_v46  ;;  %v1167_v36 = vld [vmem:[#allocation17 + $0x9b8] sm:$0xff]  ;;  %v1160_v39 = vld [vmem:[#allocation17 + $0x980] sm:$0xff] }
 0x5b7   :  { %1918 = vmatpush1.bf16.msra.mxu0 %v1626_v56  ;;  %2123 = vmatpush1.bf16.msra.mxu1 %v1628_v57  ;;  %v1137_v56 = vld [vmem:[#allocation17 + $0x8c8] sm:$0xff]  ;;  %v1223_v18 = vld [vmem:[#allocation17 + $0xb78] sm:$0xff] }
 0x5b8   :  { %1919 = vmatprep.subr.bf16.mxu0 %v1631_v60  ;;  %2124 = vmatprep.subr.bf16.mxu1 %v1633_v61  ;;  %v1141_v57 = vld [vmem:[#allocation17 + $0x8e8] sm:$0xff]  ;;  %v1644_v60 = vpack.c.bf16 %v1134_v54, %v1130_v50  ;;  %v1175_v54 = vld [vmem:[#allocation17 + $0x9f8] sm:$0xff] }
 0x5b9   :  { %v1647_v61 = vpack.c.bf16 %v1141_v57, %v1137_v56  ;;  %v1173_v50 = vld [vmem:[#allocation17 + $0x9e8] sm:$0xff]  ;;  %v556_v56 = vsub.s32 4, %v3455_v19 }
 0x5ba   :  { %v1663_v59 = vpack.c.bf16 %v1173_v50, %v1169_v49  ;;  %v1198_v49 = vld [vmem:[#allocation17 + $0xab0] sm:$0xff]  ;;  %v1201_v50 = vld [vmem:[#allocation17 + $0xac8] sm:$0xff] }
 0x5bb   :  { %1920 = vmatpush1.bf16.msra.mxu0 %v1630_v8  ;;  %2125 = vmatpush1.bf16.msra.mxu1 %v1632_v9  ;;  %v1646_v8 = vpack.c.bf16 %v1140_v63, %v1136_v62  ;;  %v1648_v9 = vpack.c.bf16 %v1142_v3, %v1138_v0  ;;  %v568_v62 = vsub.s32 7, %v3455_v19  ;;  %v1174_v0 = vld [vmem:[#allocation17 + $0x9f0] sm:$0xff]  ;;  %v1181_v3 = vld [vmem:[#allocation17 + $0xa28] sm:$0xff]  ;;  %v557_v6 = vrot.slane %v3463_v21, %v556_v56  ;;  %v1207_v56 = vld [vmem:[#allocation17 + $0xaf8] sm:$0xff] }
 0x5bc   :  { %1930 = vmatprep.subr.bf16.mxu0 %v1635_v11  ;;  %2135 = vmatprep.subr.bf16.mxu1 %v1637_v12  ;;  %v1144_v11 = vld [vmem:[#allocation17 + $0x900] sm:$0xff] }
 0x5bd   :  { %v1148_v12 = vld [vmem:[#allocation17 + $0x920] sm:$0xff]  ;;  %v569_v13 = vrot.slane %v3463_v21, %v568_v62  ;;  %v1202_v62 = vld [vmem:[#allocation17 + $0xad0] sm:$0xff] }
 0x5be   :  { %1922 = vmatmul.mubr.bf16.vlgmr.msra.gmra.mrb[12].mxu0 %v1498_v26  ;;  %2127 = vmatmul.mubr.bf16.vlgmr.msra.gmra.mrb[24].mxu1 %v1498_v26  ;;  %v1650_v25 = vpack.c.bf16 %v1148_v12, %v1144_v11  ;;  %v1152_v26 = vld [vmem:[#allocation17 + $0x940] sm:$0xff]  ;;  %v1178_v12 = vld [vmem:[#allocation17 + $0xa10] sm:$0xff] }
 0x5bf   :  { %1931 = vmatpush1.bf16.msra.mxu0 %v1634_v38  ;;  %1962 = vmatprep.mubr.bf16.mxu0 %v1501_v33  ;;  %v1655_v38 = vpack.c.bf16 %v1157_v17, %v1153_v16  ;;  %v1180_v11 = vld [vmem:[#allocation17 + $0xa20] sm:$0xff]  ;;  %v1185_v16 = vld [vmem:[#allocation17 + $0xa48] sm:$0xff]  ;;  %v751_v21 = vadd.f32 %v3484_v47, %v569_v13 }
 0x5c0   :  { %2136 = vmatpush1.bf16.msra.mxu1 %v1636_v27  ;;  %2167 = vmatprep.mubr.bf16.mxu1 %v1501_v33  ;;  %v1156_v27 = vld [vmem:[#allocation17 + $0x960] sm:$0xff]  ;;  %v1161_v33 = vld [vmem:[#allocation17 + $0x988] sm:$0xff] }
 0x5c1   :  { %1932 = vmatprep.subr.bf16.mxu0 %v1639_v34  ;;  %2137 = vmatprep.subr.bf16.mxu1 %v1641_v28  ;;  %v1165_v34 = vld [vmem:[#allocation17 + $0x9a8] sm:$0xff]  ;;  %v1163_v28 = vld [vmem:[#allocation17 + $0x998] sm:$0xff]  ;;  %v1654_v37 = vpack.c.bf16 %v1156_v27, %v1152_v26  ;;  %v1184_v27 = vld [vmem:[#allocation17 + $0xa40] sm:$0xff] }
 0x5c2   :  { %v1659_v46 = vpack.c.bf16 %v1165_v34, %v1161_v33  ;;  %v1189_v17 = vld [vmem:[#allocation17 + $0xa68] sm:$0xff]  ;;  %v1190_v33 = vld [vmem:[#allocation17 + $0xa70] sm:$0xff] }
 0x5c3   :  { %1933 = vmatpush1.bf16.msra.mxu0 %v1638_v40  ;;  %v1164_v40 = vld [vmem:[#allocation17 + $0x9a0] sm:$0xff]  ;;  %v1671_v26 = vpack.c.bf16 %v1189_v17, %v1185_v16  ;;  %v1193_v34 = vld [vmem:[#allocation17 + $0xa88] sm:$0xff]  ;;  %v1219_v17 = vld [vmem:[#allocation17 + $0xb58] sm:$0xff] }
 0x5c4   :  { %2138 = vmatpush1.bf16.msra.mxu1 %v1640_v41  ;;  %1934 = vmatprep.subr.bf16.mxu0 %v1643_v42  ;;  %v1162_v41 = vld [vmem:[#allocation17 + $0x990] sm:$0xff]  ;;  %v1661_v42 = vpack.c.bf16 %v1167_v36, %v1163_v28  ;;  %v1658_v57 = vpack.c.bf16 %v1164_v40, %v1160_v39  ;;  %v1197_v28 = vld [vmem:[#allocation17 + $0xaa8] sm:$0xff]  ;;  %v1195_v36 = vld [vmem:[#allocation17 + $0xa98] sm:$0xff] }
 0x5c5   :  { %2139 = vmatprep.subr.bf16.mxu1 %v1645_v51  ;;  %v1171_v51 = vld [vmem:[#allocation17 + $0x9d8] sm:$0xff]  ;;  %v1660_v58 = vpack.c.bf16 %v1166_v48, %v1162_v41  ;;  %v1675_v39 = vpack.c.bf16 %v1197_v28, %v1193_v34  ;;  %v1192_v40 = vld [vmem:[#allocation17 + $0xa80] sm:$0xff]  ;;  %v3514_v48 = vmul.f32 0.999995, %v751_v21  ;;  %v1221_v16 = vld [vmem:[#allocation17 + $0xb68] sm:$0xff] }
 0x5c6   :  { %v1665_v63 = vpack.c.bf16 %v1175_v54, %v1171_v51  ;;  %v1196_v41 = vld [vmem:[#allocation17 + $0xaa0] sm:$0xff]  ;;  %v1205_v51 = vld [vmem:[#allocation17 + $0xae8] sm:$0xff]  ;;  %v1203_v54 = vld [vmem:[#allocation17 + $0xad8] sm:$0xff] }
 0x5c7   :  { %1935 = vmatpush1.bf16.msra.mxu0 %v1642_v53  ;;  %v1168_v53 = vld [vmem:[#allocation17 + $0x9c0] sm:$0xff]  ;;  %v1225_v21 = vld [vmem:[#allocation17 + $0xb88] sm:$0xff]  ;;  %v1231_v34 = vld [vmem:[#allocation17 + $0xbb8] sm:$0xff] }
 0x5c8   :  { %2140 = vmatpush1.bf16.msra.mxu1 %v1644_v60  ;;  %1936 = vmatprep.subr.bf16.mxu0 %v1647_v61  ;;  %v1172_v60 = vld [vmem:[#allocation17 + $0x9e0] sm:$0xff]  ;;  %v1170_v61 = vld [vmem:[#allocation17 + $0x9d0] sm:$0xff] }
 0x5c9   :  { %2141 = vmatprep.subr.bf16.mxu1 %v1649_v2  ;;  %v1177_v2 = vld [vmem:[#allocation17 + $0xa08] sm:$0xff]  ;;  %v1662_v7 = vpack.c.bf16 %v1172_v60, %v1168_v53  ;;  %v1679_v53 = vpack.c.bf16 %v1205_v51, %v1201_v50  ;;  %v1200_v60 = vld [vmem:[#allocation17 + $0xac0] sm:$0xff]  ;;  %v1235_v50 = vld [vmem:[#allocation17 + $0xbd8] sm:$0xff] }
 0x5ca   :  { %v1239_v51 = vld [vmem:[#allocation17 + $0xbf8] sm:$0xff] }
 0x5cb   :  { %1937 = vmatpush1.bf16.msra.mxu0 %v1646_v8  ;;  %v1664_v8 = vpack.c.bf16 %v1174_v0, %v1170_v61  ;;  %v1204_v61 = vld [vmem:[#allocation17 + $0xae0] sm:$0xff]  ;;  %v1681_v0 = vpack.c.bf16 %v1207_v56, %v1203_v54 }
 0x5cc   :  { %2142 = vmatpush1.bf16.msra.mxu1 %v1648_v9  ;;  %1938 = vmatprep.subr.bf16.mxu0 %v1651_v10  ;;  %v1667_v9 = vpack.c.bf16 %v1181_v3, %v1177_v2  ;;  %v1176_v10 = vld [vmem:[#allocation17 + $0xa00] sm:$0xff]  ;;  %v1206_v2 = vld [vmem:[#allocation17 + $0xaf0] sm:$0xff]  ;;  %v1209_v3 = vld [vmem:[#allocation17 + $0xb08] sm:$0xff] }
 0x5cd   :  { %2143 = vmatprep.subr.bf16.mxu1 %v1653_v14  ;;  %v1669_v14 = vpack.c.bf16 %v1183_v5, %v1179_v4  ;;  %v1213_v4 = vld [vmem:[#allocation17 + $0xb28] sm:$0xff]  ;;  %v1211_v5 = vld [vmem:[#allocation17 + $0xb18] sm:$0xff] }
 0x5cf   :  { %1939 = vmatpush1.bf16.msra.mxu0 %v1650_v25  ;;  %v708_v25 = vadd.f32 %v3478_v44, %v557_v6  ;;  %v1670_v44 = vpack.c.bf16 %v1188_v29, %v1184_v27  ;;  %v1215_v6 = vld [vmem:[#allocation17 + $0xb38] sm:$0xff]  ;;  %v1218_v27 = vld [vmem:[#allocation17 + $0xb50] sm:$0xff]  ;;  %v1689_v29 = vpack.c.bf16 %v1223_v18, %v1219_v17  ;;  %v1253_v18 = vld [vmem:[#allocation17 + $0xc68] sm:$0xff] }
 0x5d0   :  { %2144 = vmatpush1.bf16.msra.mxu1 %v1652_v35  ;;  %1940 = vmatprep.subr.bf16.mxu0 %v1655_v38  ;;  %v1666_v35 = vpack.c.bf16 %v1180_v11, %v1176_v10  ;;  %v1668_v38 = vpack.c.bf16 %v1182_v15, %v1178_v12  ;;  %v1208_v10 = vld [vmem:[#allocation17 + $0xb00] sm:$0xff]  ;;  %v1210_v12 = vld [vmem:[#allocation17 + $0xb10] sm:$0xff]  ;;  %v1685_v13 = vpack.c.bf16 %v1215_v6, %v1211_v5  ;;  %v1217_v15 = vld [vmem:[#allocation17 + $0xb48] sm:$0xff] }
 0x5d1   :  { %2145 = vmatprep.subr.bf16.mxu1 %v1657_v30  ;;  %v1186_v30 = vld [vmem:[#allocation17 + $0xa50] sm:$0xff]  ;;  %v1212_v11 = vld [vmem:[#allocation17 + $0xb20] sm:$0xff]  ;;  %v1243_v5 = vld [vmem:[#allocation17 + $0xc18] sm:$0xff] }
 0x5d2   :  { %v1682_v24 = vpack.c.bf16 %v1212_v11, %v1208_v10  ;;  %v1247_v6 = vld [vmem:[#allocation17 + $0xc38] sm:$0xff] }
 0x5d3   :  { %1941 = vmatpush1.bf16.msra.mxu0 %v1654_v37  ;;  %v1199_v37 = vld [vmem:[#allocation17 + $0xab8] sm:$0xff] }
 0x5d4   :  { %2146 = vmatpush1.bf16.msra.mxu1 %v1656_v31  ;;  %1942 = vmatprep.subr.bf16.mxu0 %v1659_v46  ;;  %v3512_v31 = vmul.f32 0.999995, %v708_v25  ;;  %v1672_v46 = vpack.c.bf16 %v1190_v33, %v1186_v30  ;;  %v1677_v47 = vpack.c.bf16 %v1199_v37, %v1195_v36  ;;  %v1222_v30 = vld [vmem:[#allocation17 + $0xb70] sm:$0xff]  ;;  %v1227_v33 = vld [vmem:[#allocation17 + $0xb98] sm:$0xff] }
 0x5d5   :  { %2147 = vmatprep.subr.bf16.mxu1 %v1661_v42  ;;  %v1194_v42 = vld [vmem:[#allocation17 + $0xa90] sm:$0xff]  ;;  %v1688_v36 = vpack.c.bf16 %v1222_v30, %v1218_v27  ;;  %v1252_v27 = vld [vmem:[#allocation17 + $0xc60] sm:$0xff] }
 0x5d7   :  { %1943 = vmatpush1.bf16.msra.mxu0 %v1658_v57  ;;  %v820_v57 = vmul.f32 0.70710677, %v3512_v31 }
 0x5d8   :  { %2148 = vmatpush1.bf16.msra.mxu1 %v1660_v58  ;;  %1944 = vmatprep.subr.bf16.mxu0 %v1663_v59  ;;  %v1674_v58 = vpack.c.bf16 %v1196_v41, %v1192_v40  ;;  %v1676_v59 = vpack.c.bf16 %v1198_v49, %v1194_v42  ;;  %v1693_v41 = vpack.c.bf16 %v1231_v34, %v1227_v33  ;;  %v1230_v42 = vld [vmem:[#allocation17 + $0xbb0] sm:$0xff]  ;;  %v1237_v49 = vld [vmem:[#allocation17 + $0xbe8] sm:$0xff] }
 0x5d9   :  { %2149 = vmatprep.subr.bf16.mxu1 %v1665_v63  ;;  %v823_v63 = vmul.f32 0.70710677, %v3514_v48  ;;  %2777 = verf.f32 %v820_v57  ;;  %v1261_v33 = vld [vmem:[#allocation17 + $0xca8] sm:$0xff] }
 0x5db   :  { %1945 = vmatpush1.bf16.msra.mxu0 %v1662_v7  ;;  %v1678_v7 = vpack.c.bf16 %v1204_v61, %v1200_v60  ;;  %2779 = verf.f32 %v823_v63  ;;  %v1236_v60 = vld [vmem:[#allocation17 + $0xbe0] sm:$0xff]  ;;  %v1234_v61 = vld [vmem:[#allocation17 + $0xbd0] sm:$0xff] }
 0x5dc   :  { %2150 = vmatpush1.bf16.msra.mxu1 %v1664_v8  ;;  %1946 = vmatprep.subr.bf16.mxu0 %v1667_v9  ;;  %v1680_v8 = vpack.c.bf16 %v1206_v2, %v1202_v62  ;;  %v1683_v9 = vpack.c.bf16 %v1213_v4, %v1209_v3  ;;  %v1697_v62 = vpack.c.bf16 %v1239_v51, %v1235_v50  ;;  %v1238_v63 = vld [vmem:[#allocation17 + $0xbf0] sm:$0xff]  ;;  %v1245_v2 = vld [vmem:[#allocation17 + $0xc28] sm:$0xff]  ;;  %v810_v3 = vmul.f32 0.5, %v3512_v31 }
 0x5dd   :  { %2151 = vmatprep.subr.bf16.mxu1 %v1669_v14  ;;  %v1214_v14 = vld [vmem:[#allocation17 + $0xb30] sm:$0xff]  ;;  %v1696_v10 = vpack.c.bf16 %v1238_v63, %v1234_v61  ;;  %v1249_v31 = vld [vmem:[#allocation17 + $0xc48] sm:$0xff] }
 0x5de   :  { %v1684_v25 = vpack.c.bf16 %v1214_v14, %v1210_v12  ;;  %v1240_v12 = vld [vmem:[#allocation17 + $0xc00] sm:$0xff]  ;;  %v1701_v14 = vpack.c.bf16 %v1247_v6, %v1243_v5  ;;  %v1703_v30 = vpack.c.bf16 %v1253_v18, %v1249_v31  ;;  %v1265_v50 = vld [vmem:[#allocation17 + $0xcc8] sm:$0xff]  ;;  %v1266_v61 = vld [vmem:[#allocation17 + $0xcd0] sm:$0xff] }
 0x5df   :  { %1947 = vmatpush1.bf16.msra.mxu0 %v1666_v35  ;;  %v1687_v35 = vpack.c.bf16 %v1221_v16, %v1217_v15  ;;  %v1242_v15 = vld [vmem:[#allocation17 + $0xc10] sm:$0xff]  ;;  %v1269_v51 = vld [vmem:[#allocation17 + $0xce8] sm:$0xff] }
 0x5e0   :  { %2152 = vmatpush1.bf16.msra.mxu1 %v1668_v38  ;;  %1948 = vmatprep.subr.bf16.mxu0 %v1671_v26  ;;  %v1216_v38 = vld [vmem:[#allocation17 + $0xb40] sm:$0xff]  ;;  %v1246_v16 = vld [vmem:[#allocation17 + $0xc30] sm:$0xff] }
 0x5e1   :  { %2153 = vmatprep.subr.bf16.mxu1 %v1673_v32  ;;  %v1220_v26 = vld [vmem:[#allocation17 + $0xb60] sm:$0xff]  ;;  %v1229_v32 = vld [vmem:[#allocation17 + $0xba8] sm:$0xff]  ;;  %v1270_v63 = vld [vmem:[#allocation17 + $0xcf0] sm:$0xff] }
 0x5e2   :  { %v1686_v28 = vpack.c.bf16 %v1220_v26, %v1216_v38  ;;  %v1691_v37 = vpack.c.bf16 %v1229_v32, %v1225_v21  ;;  %v1248_v26 = vld [vmem:[#allocation17 + $0xc40] sm:$0xff]  ;;  %v1254_v21 = vld [vmem:[#allocation17 + $0xc70] sm:$0xff]  ;;  %v1257_v32 = vld [vmem:[#allocation17 + $0xc88] sm:$0xff]  ;;  %v1712_v6 = vpack.c.bf16 %v1270_v63, %v1266_v61 }
 0x5e3   :  { %1949 = vmatpush1.bf16.msra.mxu0 %v1670_v44  ;;  %v1224_v44 = vld [vmem:[#allocation17 + $0xb80] sm:$0xff]  ;;  %v2778_v40 = vpop.eup %2777  ;;  %v1307_v61 = vld [vmem:[#allocation17 + $0xe18] sm:$0xff] }
 0x5e4   :  { %2154 = vmatpush1.bf16.msra.mxu1 %v1672_v46  ;;  %1950 = vmatprep.subr.bf16.mxu0 %v1675_v39  ;;  %v1228_v46 = vld [vmem:[#allocation17 + $0xba0] sm:$0xff]  ;;  %v1226_v39 = vld [vmem:[#allocation17 + $0xb90] sm:$0xff]  ;;  %v840_v57 = vadd.f32 1.0, %v2778_v40 }
 0x5e5   :  { %2155 = vmatprep.subr.bf16.mxu1 %v1677_v47  ;;  %v1233_v47 = vld [vmem:[#allocation17 + $0xbc8] sm:$0xff]  ;;  %v2780_v54 = vpop.eup %2779  ;;  %v1690_v56 = vpack.c.bf16 %v1228_v46, %v1224_v44  ;;  %v1702_v44 = vpack.c.bf16 %v1252_v27, %v1248_v26  ;;  %v1256_v40 = vld [vmem:[#allocation17 + $0xc80] sm:$0xff]  ;;  %v2801_v63 = vld [vmem:[%s3626_s11] sm:$0xff] }
 0x5e6   :  { %v843_v4 = vadd.f32 1.0, %v2780_v54  ;;  %v1267_v54 = vld [vmem:[#allocation17 + $0xcd8] sm:$0xff]  ;;  %v1289_v26 = vld [vmem:[#allocation17 + $0xd88] sm:$0xff] }
 0x5e7   :  { %1951 = vmatpush1.bf16.msra.mxu0 %v1674_v58  ;;  %v1692_v58 = vpack.c.bf16 %v1230_v42, %v1226_v39  ;;  %v1707_v39 = vpack.c.bf16 %v1261_v33, %v1257_v32  ;;  %v1258_v42 = vld [vmem:[#allocation17 + $0xc90] sm:$0xff]  ;;  %v1293_v27 = vld [vmem:[#allocation17 + $0xda8] sm:$0xff] }
 0x5e8   :  { %2156 = vmatpush1.bf16.msra.mxu1 %v1676_v59  ;;  %1952 = vmatprep.subr.bf16.mxu0 %v1679_v53  ;;  %v1695_v59 = vpack.c.bf16 %v1237_v49, %v1233_v47  ;;  %v1232_v53 = vld [vmem:[#allocation17 + $0xbc0] sm:$0xff]  ;;  %v1262_v49 = vld [vmem:[#allocation17 + $0xcb0] sm:$0xff]  ;;  %v1723_v33 = vpack.c.bf16 %v1293_v27, %v1289_v26  ;;  %v1321_v26 = vld [vmem:[#allocation17 + $0xe88] sm:$0xff] }
 0x5e9   :  { %2157 = vmatprep.subr.bf16.mxu1 %v1681_v0  ;;  %v1241_v0 = vld [vmem:[#allocation17 + $0xc08] sm:$0xff] }
 0x5ea   :  { %v1699_v11 = vpack.c.bf16 %v1245_v2, %v1241_v0  ;;  %v1273_v0 = vld [vmem:[#allocation17 + $0xd08] sm:$0xff] }
 0x5eb   :  { %1953 = vmatpush1.bf16.msra.mxu0 %v1678_v7  ;;  %v1694_v7 = vpack.c.bf16 %v1236_v60, %v1232_v53  ;;  %v1264_v53 = vld [vmem:[#allocation17 + $0xcc0] sm:$0xff]  ;;  %v1277_v2 = vld [vmem:[#allocation17 + $0xd28] sm:$0xff] }
 0x5ec   :  { %2158 = vmatpush1.bf16.msra.mxu1 %v1680_v8  ;;  %1954 = vmatprep.subr.bf16.mxu0 %v1683_v9  ;;  %v850_v8 = vmul.f32 %v840_v57, %v810_v3  ;;  %v813_v9 = vmul.f32 0.5, %v3514_v48  ;;  %v1700_v48 = vpack.c.bf16 %v1246_v16, %v1242_v15  ;;  %v1268_v60 = vld [vmem:[#allocation17 + $0xce0] sm:$0xff]  ;;  %v1275_v3 = vld [vmem:[#allocation17 + $0xd18] sm:$0xff]  ;;  %v1325_v27 = vld [vmem:[#allocation17 + $0xea8] sm:$0xff] }
 0x5ed   :  { %2159 = vmatprep.subr.bf16.mxu1 %v1685_v13  ;;  %v1244_v13 = vld [vmem:[#allocation17 + $0xc20] sm:$0xff]  ;;  %v1710_v5 = vpack.c.bf16 %v1268_v60, %v1264_v53  ;;  %v1283_v15 = vld [vmem:[#allocation17 + $0xd58] sm:$0xff]  ;;  %v1309_v53 = vld [vmem:[#allocation17 + $0xe28] sm:$0xff] }
 0x5ee   :  { %v853_v17 = vmul.f32 %v843_v4, %v813_v9  ;;  %v1500_v38 = vpack.c.bf16 %v850_v8, %v850_v8  ;;  %v1279_v4 = vld [vmem:[#allocation17 + $0xd38] sm:$0xff]  ;;  %v1272_v8 = vld [vmem:[#allocation17 + $0xd00] sm:$0xff] }
 0x5ef   :  { %1955 = vmatpush1.bf16.msra.mxu0 %v1682_v24  ;;  %v1698_v24 = vpack.c.bf16 %v1244_v13, %v1240_v12  ;;  %v1276_v9 = vld [vmem:[#allocation17 + $0xd20] sm:$0xff]  ;;  %v1278_v12 = vld [vmem:[#allocation17 + $0xd30] sm:$0xff]  ;;  %v1281_v13 = vld [vmem:[#allocation17 + $0xd48] sm:$0xff] }
 0x5f0   :  { %2160 = vmatpush1.bf16.msra.mxu1 %v1684_v25  ;;  %1956 = vmatprep.subr.bf16.mxu0 %v1687_v35  ;;  %v1251_v25 = vld [vmem:[#allocation17 + $0xc58] sm:$0xff]  ;;  %v1503_v34 = vpack.c.bf16 %v853_v17, %v853_v17  ;;  %v1714_v17 = vpack.c.bf16 %v1276_v9, %v1272_v8 }
 0x5f1   :  { %2161 = vmatprep.subr.bf16.mxu1 %v1689_v29  ;;  %v1255_v35 = vld [vmem:[#allocation17 + $0xc78] sm:$0xff]  ;;  %v1250_v29 = vld [vmem:[#allocation17 + $0xc50] sm:$0xff] }
 0x5f2   :  { %v1704_v46 = vpack.c.bf16 %v1254_v21, %v1250_v29  ;;  %v1287_v16 = vld [vmem:[#allocation17 + $0xd78] sm:$0xff] }
 0x5f3   :  { %1957 = vmatpush1.bf16.msra.mxu0 %v1686_v28  ;;  %v1705_v28 = vpack.c.bf16 %v1255_v35, %v1251_v25  ;;  %v1284_v25 = vld [vmem:[#allocation17 + $0xd60] sm:$0xff]  ;;  %v1282_v35 = vld [vmem:[#allocation17 + $0xd50] sm:$0xff]  ;;  %v1291_v29 = vld [vmem:[#allocation17 + $0xd98] sm:$0xff] }
 0x5f4   :  { %2162 = vmatpush1.bf16.msra.mxu1 %v1688_v36  ;;  %1958 = vmatprep.subr.bf16.mxu0 %v1691_v37  ;;  %v1259_v36 = vld [vmem:[#allocation17 + $0xc98] sm:$0xff] }
 0x5f5   :  { %2163 = vmatprep.subr.bf16.mxu1 %v1693_v41  ;;  %v1263_v37 = vld [vmem:[#allocation17 + $0xcb8] sm:$0xff]  ;;  %v1260_v41 = vld [vmem:[#allocation17 + $0xca0] sm:$0xff] }
 0x5f6   :  { %v1709_v47 = vpack.c.bf16 %v1263_v37, %v1259_v36  ;;  %v1706_v57 = vpack.c.bf16 %v1260_v41, %v1256_v40  ;;  %v1290_v36 = vld [vmem:[#allocation17 + $0xd90] sm:$0xff]  ;;  %v1299_v40 = vld [vmem:[#allocation17 + $0xdd8] sm:$0xff] }
 0x5f7   :  { %1959 = vmatpush1.bf16.msra.mxu0 %v1690_v56  ;;  %v1271_v56 = vld [vmem:[#allocation17 + $0xcf8] sm:$0xff] }
 0x5f8   :  { %2164 = vmatpush1.bf16.msra.mxu1 %v1692_v58  ;;  %1960 = vmatprep.subr.bf16.mxu0 %v1695_v59  ;;  %v1708_v58 = vpack.c.bf16 %v1262_v49, %v1258_v42  ;;  %v1711_v59 = vpack.c.bf16 %v1269_v51, %v1265_v50  ;;  %v1303_v41 = vld [vmem:[#allocation17 + $0xdf8] sm:$0xff]  ;;  %v564_v42 = vsub.s32 6, %v3455_v19  ;;  %v1296_v51 = vld [vmem:[#allocation17 + $0xdc0] sm:$0xff] }
 0x5f9   :  { %2165 = vmatprep.subr.bf16.mxu1 %v1697_v62  ;;  %v1713_v62 = vpack.c.bf16 %v1271_v56, %v1267_v54  ;;  %v1300_v54 = vld [vmem:[#allocation17 + $0xde0] sm:$0xff]  ;;  %v1298_v56 = vld [vmem:[#allocation17 + $0xdd0] sm:$0xff]  ;;  %v3524_v60 = vld [vmem:[%s3626_s11 + $0x8] sm:$0x3] }
 0x5fa   :  { %v577_v8 = vrot.slane %v3524_v60, %v3466_v22 }
 0x5fb   :  { %1961 = vmatpush1.bf16.msra.mxu0 %v1694_v7  ;;  %v1715_v7 = vpack.c.bf16 %v1277_v2, %v1273_v0  ;;  %v565_v0 = vrot.slane %v2801_v63, %v564_v42  ;;  %v1726_v2 = vpack.c.bf16 %v1300_v54, %v1296_v51  ;;  %v1328_v51 = vld [vmem:[#allocation17 + $0xec0] sm:$0xff]  ;;  %v1343_v63 = vld [vmem:[#allocation17 + $0xf38] sm:$0xff] }
 0x5fc   :  { %2166 = vmatpush1.bf16.msra.mxu1 %v1696_v10  ;;  %1971 = vmatprep.subr.bf16.mxu0 %v1699_v11  ;;  %v1274_v10 = vld [vmem:[#allocation17 + $0xd10] sm:$0xff]  ;;  %v1717_v11 = vpack.c.bf16 %v1279_v4, %v1275_v3  ;;  %v1332_v54 = vld [vmem:[#allocation17 + $0xee0] sm:$0xff] }
 0x5fd   :  { %2176 = vmatprep.subr.bf16.mxu1 %v1701_v14  ;;  %v1285_v14 = vld [vmem:[#allocation17 + $0xd68] sm:$0xff]  ;;  %v1716_v31 = vpack.c.bf16 %v1278_v12, %v1274_v10  ;;  %v1310_v10 = vld [vmem:[#allocation17 + $0xe30] sm:$0xff] }
 0x5fe   :  { %1963 = vmatmul.mubr.bf16.vlgmr.msra.gmra.mrb[12].mxu0 %v1500_v38  ;;  %v1719_v18 = vpack.c.bf16 %v1285_v14, %v1281_v13  ;;  %v1317_v12 = vld [vmem:[#allocation17 + $0xe68] sm:$0xff]  ;;  %v1315_v13 = vld [vmem:[#allocation17 + $0xe58] sm:$0xff] }
 0x5ff   :  { %2168 = vmatmul.mubr.bf16.vlgmr.msra.gmra.mrb[24].mxu1 %v1500_v38  ;;  %1972 = vmatpush1.bf16.msra.mxu0 %v1698_v24  ;;  %v1280_v24 = vld [vmem:[#allocation17 + $0xd40] sm:$0xff]  ;;  %v1721_v38 = vpack.c.bf16 %v1287_v16, %v1283_v15  ;;  %v1319_v14 = vld [vmem:[#allocation17 + $0xe78] sm:$0xff]  ;;  %v749_v15 = vadd.f32 %v3480_v45, %v565_v0  ;;  %v1742_v0 = vpack.c.bf16 %v1332_v54, %v1328_v51  ;;  %v1362_v51 = vld [vmem:[#allocation17 + $0xfd0] sm:$0xff] }
 0x600   :  { %2003 = vmatprep.mubr.bf16.mxu0 %v1503_v34  ;;  %2177 = vmatpush1.bf16.msra.mxu1 %v1700_v48  ;;  %v1286_v48 = vld [vmem:[#allocation17 + $0xd70] sm:$0xff]  ;;  %v1718_v21 = vpack.c.bf16 %v1284_v25, %v1280_v24  ;;  %v1316_v24 = vld [vmem:[#allocation17 + $0xe60] sm:$0xff] }
 0x601   :  { %2208 = vmatprep.mubr.bf16.mxu1 %v1503_v34  ;;  %1973 = vmatprep.subr.bf16.mxu0 %v1703_v30  ;;  %v1295_v30 = vld [vmem:[#allocation17 + $0xdb8] sm:$0xff]  ;;  %v1720_v32 = vpack.c.bf16 %v1286_v48, %v1282_v35  ;;  %v1288_v34 = vld [vmem:[#allocation17 + $0xd80] sm:$0xff]  ;;  %v1314_v25 = vld [vmem:[#allocation17 + $0xe50] sm:$0xff]  ;;  %v792_v35 = vadd.f32 %v3488_v55, %v577_v8 }
 0x602   :  { %2178 = vmatprep.subr.bf16.mxu1 %v1705_v28  ;;  %v1292_v28 = vld [vmem:[#allocation17 + $0xda0] sm:$0xff]  ;;  %v1725_v37 = vpack.c.bf16 %v1295_v30, %v1291_v29  ;;  %v1318_v48 = vld [vmem:[#allocation17 + $0xe70] sm:$0xff]  ;;  %v1323_v29 = vld [vmem:[#allocation17 + $0xe98] sm:$0xff] }
 0x603   :  { %1974 = vmatpush1.bf16.msra.mxu0 %v1702_v44  ;;  %v1294_v44 = vld [vmem:[#allocation17 + $0xdb0] sm:$0xff]  ;;  %v1327_v30 = vld [vmem:[#allocation17 + $0xeb8] sm:$0xff] }
 0x604   :  { %2179 = vmatpush1.bf16.msra.mxu1 %v1704_v46  ;;  %1975 = vmatprep.subr.bf16.mxu0 %v1707_v39  ;;  %v1297_v46 = vld [vmem:[#allocation17 + $0xdc8] sm:$0xff]  ;;  %v1724_v49 = vpack.c.bf16 %v1294_v44, %v1290_v36  ;;  %v1322_v36 = vld [vmem:[#allocation17 + $0xe90] sm:$0xff]  ;;  %v1741_v55 = vpack.c.bf16 %v1327_v30, %v1323_v29  ;;  %v1352_v30 = vld [vmem:[#allocation17 + $0xf80] sm:$0xff] }
 0x605   :  { %2180 = vmatprep.subr.bf16.mxu1 %v1709_v47  ;;  %v1301_v39 = vld [vmem:[#allocation17 + $0xde8] sm:$0xff]  ;;  %v1722_v47 = vpack.c.bf16 %v1292_v28, %v1288_v34  ;;  %v1320_v34 = vld [vmem:[#allocation17 + $0xe80] sm:$0xff]  ;;  %v1326_v44 = vld [vmem:[#allocation17 + $0xeb0] sm:$0xff] }
 0x606   :  { %v1727_v50 = vpack.c.bf16 %v1301_v39, %v1297_v46  ;;  %v1324_v28 = vld [vmem:[#allocation17 + $0xea0] sm:$0xff]  ;;  %v1329_v46 = vld [vmem:[#allocation17 + $0xec8] sm:$0xff]  ;;  %v1342_v8 = vld [vmem:[#allocation17 + $0xf30] sm:$0xff] }
 0x607   :  { %1976 = vmatpush1.bf16.msra.mxu0 %v1706_v57  ;;  %v1729_v57 = vpack.c.bf16 %v1303_v41, %v1299_v40  ;;  %v1333_v39 = vld [vmem:[#allocation17 + $0xee8] sm:$0xff]  ;;  %v1331_v40 = vld [vmem:[#allocation17 + $0xed8] sm:$0xff] }
 0x608   :  { %2181 = vmatpush1.bf16.msra.mxu1 %v1708_v58  ;;  %1977 = vmatprep.subr.bf16.mxu0 %v1711_v59  ;;  %v1302_v58 = vld [vmem:[#allocation17 + $0xdf0] sm:$0xff]  ;;  %v1305_v59 = vld [vmem:[#allocation17 + $0xe08] sm:$0xff]  ;;  %v1335_v41 = vld [vmem:[#allocation17 + $0xef8] sm:$0xff] }
 0x609   :  { %2182 = vmatprep.subr.bf16.mxu1 %v1713_v62  ;;  %v1311_v62 = vld [vmem:[#allocation17 + $0xe38] sm:$0xff]  ;;  %v1728_v3 = vpack.c.bf16 %v1302_v58, %v1298_v56  ;;  %v1731_v4 = vpack.c.bf16 %v1309_v53, %v1305_v59  ;;  %v1330_v56 = vld [vmem:[#allocation17 + $0xed0] sm:$0xff]  ;;  %v1745_v58 = vpack.c.bf16 %v1335_v41, %v1331_v40  ;;  %v1337_v53 = vld [vmem:[#allocation17 + $0xf08] sm:$0xff] }
 0x60a   :  { %v1733_v9 = vpack.c.bf16 %v1311_v62, %v1307_v61  ;;  %v1334_v59 = vld [vmem:[#allocation17 + $0xef0] sm:$0xff]  ;;  %v1341_v61 = vld [vmem:[#allocation17 + $0xf28] sm:$0xff]  ;;  %v1339_v62 = vld [vmem:[#allocation17 + $0xf18] sm:$0xff] }
 0x60b   :  { %1978 = vmatpush1.bf16.msra.mxu0 %v1710_v5  ;;  %v1304_v5 = vld [vmem:[#allocation17 + $0xe00] sm:$0xff] }
 0x60c   :  { %2183 = vmatpush1.bf16.msra.mxu1 %v1712_v6  ;;  %1979 = vmatprep.subr.bf16.mxu0 %v1715_v7  ;;  %v1308_v6 = vld [vmem:[#allocation17 + $0xe20] sm:$0xff]  ;;  %v1306_v7 = vld [vmem:[#allocation17 + $0xe10] sm:$0xff] }
 0x60d   :  { %2184 = vmatprep.subr.bf16.mxu1 %v1717_v11  ;;  %v1313_v11 = vld [vmem:[#allocation17 + $0xe48] sm:$0xff]  ;;  %v1730_v16 = vpack.c.bf16 %v1308_v6, %v1304_v5  ;;  %v1340_v5 = vld [vmem:[#allocation17 + $0xf20] sm:$0xff]  ;;  %v1338_v6 = vld [vmem:[#allocation17 + $0xf10] sm:$0xff] }
 0x60f   :  { %1980 = vmatpush1.bf16.msra.mxu0 %v1714_v17  ;;  %v1732_v17 = vpack.c.bf16 %v1310_v10, %v1306_v7  ;;  %v1749_v7 = vpack.c.bf16 %v1343_v63, %v1339_v62  ;;  %v1349_v10 = vld [vmem:[#allocation17 + $0xf68] sm:$0xff]  ;;  %v1375_v62 = vld [vmem:[#allocation17 + $0x1038] sm:$0xff] }
 0x610   :  { %2185 = vmatpush1.bf16.msra.mxu1 %v1716_v31  ;;  %1981 = vmatprep.subr.bf16.mxu0 %v1719_v18  ;;  %v1735_v31 = vpack.c.bf16 %v1317_v12, %v1313_v11  ;;  %v1312_v18 = vld [vmem:[#allocation17 + $0xe40] sm:$0xff]  ;;  %v1347_v11 = vld [vmem:[#allocation17 + $0xf58] sm:$0xff] }
 0x611   :  { %2186 = vmatprep.subr.bf16.mxu1 %v1721_v38  ;;  %v1737_v38 = vpack.c.bf16 %v1319_v14, %v1315_v13  ;;  %v1734_v45 = vpack.c.bf16 %v1316_v24, %v1312_v18  ;;  %v1351_v12 = vld [vmem:[#allocation17 + $0xf78] sm:$0xff]  ;;  %v1748_v14 = vpack.c.bf16 %v1342_v8, %v1338_v6  ;;  %v1350_v24 = vld [vmem:[#allocation17 + $0xf70] sm:$0xff]  ;;  %v1372_v6 = vld [vmem:[#allocation17 + $0x1020] sm:$0xff] }
 0x612   :  { %v1753_v18 = vpack.c.bf16 %v1351_v12, %v1347_v11  ;;  %v1370_v8 = vld [vmem:[#allocation17 + $0x1010] sm:$0xff]  ;;  %v1381_v11 = vld [vmem:[#allocation17 + $0x1068] sm:$0xff] }
 0x613   :  { %1982 = vmatpush1.bf16.msra.mxu0 %v1718_v21  ;;  %v3533_v21 = vmul.f32 0.999995, %v749_v15 }
 0x614   :  { %2187 = vmatpush1.bf16.msra.mxu1 %v1720_v32  ;;  %1983 = vmatprep.subr.bf16.mxu0 %v1723_v33  ;;  %v1736_v32 = vpack.c.bf16 %v1318_v48, %v1314_v25  ;;  %v1739_v33 = vpack.c.bf16 %v1325_v27, %v1321_v26  ;;  %v1353_v25 = vld [vmem:[#allocation17 + $0xf88] sm:$0xff]  ;;  %v1359_v48 = vld [vmem:[#allocation17 + $0xfb8] sm:$0xff] }
 0x615   :  { %2188 = vmatprep.subr.bf16.mxu1 %v1725_v37  ;;  %v3535_v37 = vmul.f32 0.999995, %v792_v35  ;;  %v822_v42 = vmul.f32 0.70710677, %v3533_v21  ;;  %v1357_v35 = vld [vmem:[#allocation17 + $0xfa8] sm:$0xff] }
 0x616   :  { %v1755_v29 = vpack.c.bf16 %v1357_v35, %v1353_v25  ;;  %v1385_v25 = vld [vmem:[#allocation17 + $0x1088] sm:$0xff] }
 0x617   :  { %1984 = vmatpush1.bf16.msra.mxu0 %v1722_v47  ;;  %v1738_v47 = vpack.c.bf16 %v1324_v28, %v1320_v34  ;;  %2781 = verf.f32 %v822_v42  ;;  %v1358_v28 = vld [vmem:[#allocation17 + $0xfb0] sm:$0xff]  ;;  %v1389_v35 = vld [vmem:[#allocation17 + $0x10a8] sm:$0xff] }
 0x618   :  { %2189 = vmatpush1.bf16.msra.mxu1 %v1724_v49  ;;  %1985 = vmatprep.subr.bf16.mxu0 %v1727_v50  ;;  %v1740_v49 = vpack.c.bf16 %v1326_v44, %v1322_v36  ;;  %v1743_v50 = vpack.c.bf16 %v1333_v39, %v1329_v46  ;;  %v1361_v36 = vld [vmem:[#allocation17 + $0xfc8] sm:$0xff]  ;;  %v1363_v44 = vld [vmem:[#allocation17 + $0xfd8] sm:$0xff] }
 0x619   :  { %2190 = vmatprep.subr.bf16.mxu1 %v1729_v57  ;;  %v825_v57 = vmul.f32 0.70710677, %v3535_v37  ;;  %v1367_v46 = vld [vmem:[#allocation17 + $0xff8] sm:$0xff] }
 0x61a   :  { %v1761_v54 = vpack.c.bf16 %v1367_v46, %v1363_v44  ;;  %v1397_v44 = vld [vmem:[#allocation17 + $0x10e8] sm:$0xff]  ;;  %v1395_v46 = vld [vmem:[#allocation17 + $0x10d8] sm:$0xff] }
 0x61b   :  { %1986 = vmatpush1.bf16.msra.mxu0 %v1726_v2  ;;  %v1744_v2 = vpack.c.bf16 %v1334_v59, %v1330_v56  ;;  %2783 = verf.f32 %v825_v57  ;;  %v1366_v56 = vld [vmem:[#allocation17 + $0xff0] sm:$0xff]  ;;  %v1369_v57 = vld [vmem:[#allocation17 + $0x1008] sm:$0xff]  ;;  %v812_v59 = vmul.f32 0.5, %v3533_v21 }
 0x61c   :  { %2191 = vmatpush1.bf16.msra.mxu1 %v1728_v3  ;;  %1987 = vmatprep.subr.bf16.mxu0 %v1731_v4  ;;  %v1747_v3 = vpack.c.bf16 %v1341_v61, %v1337_v53  ;;  %v1336_v4 = vld [vmem:[#allocation17 + $0xf00] sm:$0xff]  ;;  %v1371_v61 = vld [vmem:[#allocation17 + $0x1018] sm:$0xff]  ;;  %v1377_v21 = vld [vmem:[#allocation17 + $0x1048] sm:$0xff] }
 0x61d   :  { %2192 = vmatprep.subr.bf16.mxu1 %v1733_v9  ;;  %v1345_v9 = vld [vmem:[#allocation17 + $0xf48] sm:$0xff]  ;;  %v1746_v13 = vpack.c.bf16 %v1340_v5, %v1336_v4  ;;  %v1368_v5 = vld [vmem:[#allocation17 + $0x1000] sm:$0xff] }
 0x61e   :  { %v1751_v15 = vpack.c.bf16 %v1349_v10, %v1345_v9  ;;  %v1374_v9 = vld [vmem:[#allocation17 + $0x1030] sm:$0xff]  ;;  %v1762_v12 = vpack.c.bf16 %v1372_v6, %v1368_v5  ;;  %v1409_v5 = vld [vmem:[#allocation17 + $0x1148] sm:$0xff] }
 0x61f   :  { %1988 = vmatpush1.bf16.msra.mxu0 %v1730_v16  ;;  %v1344_v16 = vld [vmem:[#allocation17 + $0xf40] sm:$0xff]  ;;  %v1413_v6 = vld [vmem:[#allocation17 + $0x1168] sm:$0xff] }
 0x620   :  { %2193 = vmatpush1.bf16.msra.mxu1 %v1732_v17  ;;  %1989 = vmatprep.subr.bf16.mxu0 %v1735_v31  ;;  %v1348_v17 = vld [vmem:[#allocation17 + $0xf60] sm:$0xff]  ;;  %v1346_v31 = vld [vmem:[#allocation17 + $0xf50] sm:$0xff] }
 0x621   :  { %2194 = vmatprep.subr.bf16.mxu1 %v1737_v38  ;;  %v1355_v38 = vld [vmem:[#allocation17 + $0xf98] sm:$0xff]  ;;  %v1750_v26 = vpack.c.bf16 %v1348_v17, %v1344_v16  ;;  %v1752_v27 = vpack.c.bf16 %v1350_v24, %v1346_v31  ;;  %v1376_v16 = vld [vmem:[#allocation17 + $0x1040] sm:$0xff]  ;;  %v1378_v31 = vld [vmem:[#allocation17 + $0x1050] sm:$0xff] }
 0x622   :  { %v1757_v34 = vpack.c.bf16 %v1359_v48, %v1355_v38  ;;  %v1380_v17 = vld [vmem:[#allocation17 + $0x1060] sm:$0xff]  ;;  %v1382_v24 = vld [vmem:[#allocation17 + $0x1070] sm:$0xff] }
 0x623   :  { %1990 = vmatpush1.bf16.msra.mxu0 %v1734_v45  ;;  %v1356_v45 = vld [vmem:[#allocation17 + $0xfa0] sm:$0xff] }
 0x624   :  { %2195 = vmatpush1.bf16.msra.mxu1 %v1736_v32  ;;  %1991 = vmatprep.subr.bf16.mxu0 %v1739_v33  ;;  %v1354_v32 = vld [vmem:[#allocation17 + $0xf90] sm:$0xff]  ;;  %v2782_v33 = vpop.eup %2781  ;;  %v1754_v40 = vpack.c.bf16 %v1356_v45, %v1352_v30  ;;  %v1768_v30 = vpack.c.bf16 %v1382_v24, %v1378_v31  ;;  %v1771_v45 = vpack.c.bf16 %v1389_v35, %v1385_v25  ;;  %v1423_v31 = vld [vmem:[#allocation17 + $0x11b8] sm:$0xff]  ;;  %v1416_v35 = vld [vmem:[#allocation17 + $0x1180] sm:$0xff] }
 0x625   :  { %2196 = vmatprep.subr.bf16.mxu1 %v1741_v55  ;;  %v1365_v55 = vld [vmem:[#allocation17 + $0xfe8] sm:$0xff]  ;;  %v2784_v39 = vpop.eup %2783  ;;  %v842_v41 = vadd.f32 1.0, %v2782_v33  ;;  %v1756_v42 = vpack.c.bf16 %v1358_v28, %v1354_v32  ;;  %v1384_v32 = vld [vmem:[#allocation17 + $0x1080] sm:$0xff] }
 0x626   :  { %v845_v53 = vadd.f32 1.0, %v2784_v39  ;;  %v1388_v33 = vld [vmem:[#allocation17 + $0x10a0] sm:$0xff]  ;;  %v1399_v39 = vld [vmem:[#allocation17 + $0x10f8] sm:$0xff] }
 0x627   :  { %1992 = vmatpush1.bf16.msra.mxu0 %v1738_v47  ;;  %v1759_v47 = vpack.c.bf16 %v1365_v55, %v1361_v36  ;;  %v1390_v36 = vld [vmem:[#allocation17 + $0x10b0] sm:$0xff]  ;;  %v1393_v55 = vld [vmem:[#allocation17 + $0x10c8] sm:$0xff] }
 0x628   :  { %2197 = vmatpush1.bf16.msra.mxu1 %v1740_v49  ;;  %1993 = vmatprep.subr.bf16.mxu0 %v1743_v50  ;;  %v1360_v49 = vld [vmem:[#allocation17 + $0xfc0] sm:$0xff] }
 0x629   :  { %2198 = vmatprep.subr.bf16.mxu1 %v1745_v58  ;;  %v1364_v50 = vld [vmem:[#allocation17 + $0xfe0] sm:$0xff]  ;;  %v1373_v58 = vld [vmem:[#allocation17 + $0x1028] sm:$0xff] }
 0x62a   :  { %v1758_v63 = vpack.c.bf16 %v1364_v50, %v1360_v49  ;;  %v1763_v4 = vpack.c.bf16 %v1373_v58, %v1369_v57  ;;  %v1396_v49 = vld [vmem:[#allocation17 + $0x10e0] sm:$0xff]  ;;  %v1394_v50 = vld [vmem:[#allocation17 + $0x10d0] sm:$0xff]  ;;  %v1405_v57 = vld [vmem:[#allocation17 + $0x1128] sm:$0xff] }
 0x62b   :  { %1994 = vmatpush1.bf16.msra.mxu0 %v1742_v0  ;;  %v852_v0 = vmul.f32 %v842_v41, %v812_v59  ;;  %v1403_v58 = vld [vmem:[#allocation17 + $0x1118] sm:$0xff] }
 0x62c   :  { %2199 = vmatpush1.bf16.msra.mxu1 %v1744_v2  ;;  %1995 = vmatprep.subr.bf16.mxu0 %v1747_v3  ;;  %v815_v2 = vmul.f32 0.5, %v3535_v37  ;;  %v1760_v3 = vpack.c.bf16 %v1366_v56, %v1362_v51  ;;  %v1764_v37 = vpack.c.bf16 %v1374_v9, %v1370_v8  ;;  %v1777_v51 = vpack.c.bf16 %v1399_v39, %v1395_v46  ;;  %v1401_v56 = vld [vmem:[#allocation17 + $0x1108] sm:$0xff]  ;;  %v1407_v59 = vld [vmem:[#allocation17 + $0x1138] sm:$0xff]  ;;  %v1430_v39 = vld [vmem:[#allocation17 + $0x11f0] sm:$0xff] }
 0x62d   :  { %2200 = vmatprep.subr.bf16.mxu1 %v1749_v7  ;;  %v1765_v7 = vpack.c.bf16 %v1375_v62, %v1371_v61  ;;  %v1779_v62 = vpack.c.bf16 %v1405_v57, %v1401_v56  ;;  %v1415_v8 = vld [vmem:[#allocation17 + $0x1178] sm:$0xff]  ;;  %v1432_v56 = vld [vmem:[#allocation17 + $0x1200] sm:$0xff] }
 0x62e   :  { %v855_v10 = vmul.f32 %v845_v53, %v815_v2  ;;  %v1402_v2 = vld [vmem:[#allocation17 + $0x1110] sm:$0xff]  ;;  %v1436_v57 = vld [vmem:[#allocation17 + $0x1220] sm:$0xff] }
 0x62f   :  { %1996 = vmatpush1.bf16.msra.mxu0 %v1746_v13  ;;  %v1379_v13 = vld [vmem:[#allocation17 + $0x1058] sm:$0xff] }
 0x630   :  { %2201 = vmatpush1.bf16.msra.mxu1 %v1748_v14  ;;  %1997 = vmatprep.subr.bf16.mxu0 %v1751_v15  ;;  %v1383_v14 = vld [vmem:[#allocation17 + $0x1078] sm:$0xff]  ;;  %v1502_v15 = vpack.c.bf16 %v852_v0, %v852_v0  ;;  %v1505_v38 = vpack.c.bf16 %v855_v10, %v855_v10  ;;  %v1404_v0 = vld [vmem:[#allocation17 + $0x1120] sm:$0xff] }
 0x631   :  { %2202 = vmatprep.subr.bf16.mxu1 %v1753_v18  ;;  %v1767_v18 = vpack.c.bf16 %v1381_v11, %v1377_v21  ;;  %v1769_v48 = vpack.c.bf16 %v1383_v14, %v1379_v13  ;;  %v1783_v21 = vpack.c.bf16 %v1413_v6, %v1409_v5  ;;  %v1408_v11 = vld [vmem:[#allocation17 + $0x1140] sm:$0xff]  ;;  %v1410_v13 = vld [vmem:[#allocation17 + $0x1150] sm:$0xff] }
 0x632   :  { %v1440_v5 = vld [vmem:[#allocation17 + $0x1240] sm:$0xff] }
 0x633   :  { %1998 = vmatpush1.bf16.msra.mxu0 %v1750_v26  ;;  %v1387_v26 = vld [vmem:[#allocation17 + $0x1098] sm:$0xff]  ;;  %v1444_v6 = vld [vmem:[#allocation17 + $0x1260] sm:$0xff] }
 0x634   :  { %2203 = vmatpush1.bf16.msra.mxu1 %v1752_v27  ;;  %1999 = vmatprep.subr.bf16.mxu0 %v1755_v29  ;;  %v1391_v27 = vld [vmem:[#allocation17 + $0x10b8] sm:$0xff]  ;;  %v1766_v29 = vpack.c.bf16 %v1380_v17, %v1376_v16  ;;  %v1421_v16 = vld [vmem:[#allocation17 + $0x11a8] sm:$0xff] }
 0x635   :  { %2204 = vmatprep.subr.bf16.mxu1 %v1757_v34  ;;  %v1386_v34 = vld [vmem:[#allocation17 + $0x1090] sm:$0xff]  ;;  %v1773_v28 = vpack.c.bf16 %v1391_v27, %v1387_v26  ;;  %v1419_v17 = vld [vmem:[#allocation17 + $0x1198] sm:$0xff] }
 0x636   :  { %v1772_v41 = vpack.c.bf16 %v1390_v36, %v1386_v34  ;;  %v1789_v26 = vpack.c.bf16 %v1423_v31, %v1419_v17  ;;  %v1422_v27 = vld [vmem:[#allocation17 + $0x11b0] sm:$0xff]  ;;  %v1424_v36 = vld [vmem:[#allocation17 + $0x11c0] sm:$0xff] }
 0x637   :  { %2000 = vmatpush1.bf16.msra.mxu0 %v1754_v40  ;;  %v1770_v40 = vpack.c.bf16 %v1388_v33, %v1384_v32  ;;  %v1431_v32 = vld [vmem:[#allocation17 + $0x11f8] sm:$0xff]  ;;  %v1450_v17 = vld [vmem:[#allocation17 + $0x1290] sm:$0xff] }
 0x638   :  { %2205 = vmatpush1.bf16.msra.mxu1 %v1756_v42  ;;  %2001 = vmatprep.subr.bf16.mxu0 %v1759_v47  ;;  %v1775_v42 = vpack.c.bf16 %v1397_v44, %v1393_v55  ;;  %v1392_v47 = vld [vmem:[#allocation17 + $0x10c0] sm:$0xff]  ;;  %v1426_v44 = vld [vmem:[#allocation17 + $0x11d0] sm:$0xff] }
 0x639   :  { %2206 = vmatprep.subr.bf16.mxu1 %v1761_v54  ;;  %v1398_v54 = vld [vmem:[#allocation17 + $0x10f0] sm:$0xff]  ;;  %v1774_v53 = vpack.c.bf16 %v1396_v49, %v1392_v47  ;;  %v1428_v55 = vld [vmem:[#allocation17 + $0x11e0] sm:$0xff]  ;;  %v1439_v47 = vld [vmem:[#allocation17 + $0x1238] sm:$0xff]  ;;  %v573_v49 = vrot.slane %v3524_v60, %v3458_v20  ;;  %v1794_v60 = vpack.c.bf16 %v1436_v57, %v1432_v56 }
 0x63a   :  { %v1776_v61 = vpack.c.bf16 %v1398_v54, %v1394_v50  ;;  %v1790_v50 = vpack.c.bf16 %v1428_v55, %v1424_v36  ;;  %v1469_v36 = vld [vmem:[#allocation17 + $0x1328] sm:$0xff]  ;;  %v1467_v55 = vld [vmem:[#allocation17 + $0x1318] sm:$0xff] }
 0x63b   :  { %2002 = vmatpush1.bf16.msra.mxu0 %v1758_v63  ;;  %v1400_v63 = vld [vmem:[#allocation17 + $0x1100] sm:$0xff]  ;;  %v1475_v56 = vld [vmem:[#allocation17 + $0x1358] sm:$0xff] }
 0x63c   :  { %2207 = vmatpush1.bf16.msra.mxu1 %v1760_v3  ;;  %2012 = vmatprep.subr.bf16.mxu0 %v1763_v4  ;;  %v1781_v3 = vpack.c.bf16 %v1407_v59, %v1403_v58  ;;  %v1406_v4 = vld [vmem:[#allocation17 + $0x1130] sm:$0xff]  ;;  %v1778_v9 = vpack.c.bf16 %v1404_v0, %v1400_v63  ;;  %v1443_v63 = vld [vmem:[#allocation17 + $0x1258] sm:$0xff] }
 0x63d   :  { %2217 = vmatprep.subr.bf16.mxu1 %v1765_v7  ;;  %v1411_v7 = vld [vmem:[#allocation17 + $0x1158] sm:$0xff]  ;;  %v1780_v10 = vpack.c.bf16 %v1406_v4, %v1402_v2  ;;  %v1434_v58 = vld [vmem:[#allocation17 + $0x1210] sm:$0xff]  ;;  %v790_v2 = vadd.f32 %v3486_v52, %v573_v49  ;;  %v1798_v52 = vpack.c.bf16 %v1444_v6, %v1440_v5 }
 0x63e   :  { %2004 = vmatmul.mubr.bf16.vlgmr.msra.gmra.mrb[12].mxu0 %v1502_v15  ;;  %v1785_v14 = vpack.c.bf16 %v1415_v8, %v1411_v7  ;;  %v1447_v0 = vld [vmem:[#allocation17 + $0x1278] sm:$0xff]  ;;  %v1442_v7 = vld [vmem:[#allocation17 + $0x1250] sm:$0xff] }
 0x63f   :  { %2209 = vmatmul.mubr.bf16.vlgmr.msra.gmra.mrb[24].mxu1 %v1502_v15  ;;  %2013 = vmatpush1.bf16.msra.mxu0 %v1762_v12  ;;  %v1412_v12 = vld [vmem:[#allocation17 + $0x1160] sm:$0xff]  ;;  %v1414_v15 = vld [vmem:[#allocation17 + $0x1170] sm:$0xff]  ;;  %v1801_v8 = vpack.c.bf16 %v1447_v0, %v1443_v63  ;;  %v1479_v57 = vld [vmem:[#allocation17 + $0x1378] sm:$0xff] }
 0x640   :  { %2044 = vmatprep.mubr.bf16.mxu0 %v1505_v38  ;;  %2218 = vmatpush1.bf16.msra.mxu1 %v1764_v37  ;;  %v1417_v37 = vld [vmem:[#allocation17 + $0x1188] sm:$0xff]  ;;  %v1784_v24 = vpack.c.bf16 %v1414_v15, %v1410_v13  ;;  %v3544_v13 = vmul.f32 0.999995, %v790_v2  ;;  %v1474_v63 = vld [vmem:[#allocation17 + $0x1350] sm:$0xff]  ;;  %v1817_v0 = vpack.c.bf16 %v1479_v57, %v1475_v56  ;;  %v1487_v5 = vld [vmem:[#allocation17 + $0x13b8] sm:$0xff] }
 0x641   :  { %2249 = vmatprep.mubr.bf16.mxu1 %v1505_v38  ;;  %2014 = vmatprep.subr.bf16.mxu0 %v1767_v18  ;;  %v1782_v18 = vpack.c.bf16 %v1412_v12, %v1408_v11  ;;  %v1787_v25 = vpack.c.bf16 %v1421_v16, %v1417_v37  ;;  %v1420_v38 = vld [vmem:[#allocation17 + $0x11a0] sm:$0xff]  ;;  %v1451_v11 = vld [vmem:[#allocation17 + $0x1298] sm:$0xff]  ;;  %v1478_v2 = vld [vmem:[#allocation17 + $0x1370] sm:$0xff] }
 0x642   :  { %2219 = vmatprep.subr.bf16.mxu1 %v1769_v48  ;;  %v1418_v48 = vld [vmem:[#allocation17 + $0x1190] sm:$0xff]  ;;  %v1786_v33 = vpack.c.bf16 %v1420_v38, %v1416_v35  ;;  %v1455_v12 = vld [vmem:[#allocation17 + $0x12b8] sm:$0xff]  ;;  %v1448_v37 = vld [vmem:[#allocation17 + $0x1280] sm:$0xff] }
 0x643   :  { %2015 = vmatpush1.bf16.msra.mxu0 %v1766_v29  ;;  %v1425_v29 = vld [vmem:[#allocation17 + $0x11c8] sm:$0xff]  ;;  %v1788_v34 = vpack.c.bf16 %v1422_v27, %v1418_v48  ;;  %v1452_v16 = vld [vmem:[#allocation17 + $0x12a0] sm:$0xff]  ;;  %v1805_v31 = vpack.c.bf16 %v1455_v12, %v1451_v11  ;;  %v1459_v35 = vld [vmem:[#allocation17 + $0x12d8] sm:$0xff]  ;;  %v824_v48 = vmul.f32 0.70710677, %v3544_v13 }
 0x644   :  { %2220 = vmatpush1.bf16.msra.mxu1 %v1768_v30  ;;  %2016 = vmatprep.subr.bf16.mxu0 %v1771_v45  ;;  %v1429_v30 = vld [vmem:[#allocation17 + $0x11e8] sm:$0xff]  ;;  %v1427_v45 = vld [vmem:[#allocation17 + $0x11d8] sm:$0xff] }
 0x645   :  { %2221 = vmatprep.subr.bf16.mxu1 %v1773_v28  ;;  %v1791_v28 = vpack.c.bf16 %v1429_v30, %v1425_v29  ;;  %v1793_v46 = vpack.c.bf16 %v1431_v32, %v1427_v45  ;;  %v1463_v38 = vld [vmem:[#allocation17 + $0x12f8] sm:$0xff]  ;;  %v1456_v30 = vld [vmem:[#allocation17 + $0x12c0] sm:$0xff]  ;;  %v1458_v32 = vld [vmem:[#allocation17 + $0x12d0] sm:$0xff]  ;;  %2785 = verf.f32 %v824_v48 }
 0x646   :  { %v1460_v45 = vld [vmem:[#allocation17 + $0x12e0] sm:$0xff]  ;;  %v2284_v56 = vld [vmem:[#allocation20 + $0x10] sm:$0xff] }
 0x647   :  { %2017 = vmatpush1.bf16.msra.mxu0 %v1770_v40  ;;  %v1433_v40 = vld [vmem:[#allocation17 + $0x1208] sm:$0xff]  ;;  %v2285_v57 = vld [vmem:[#allocation20 + $0x18] sm:$0xff] }
 0x648   :  { %2222 = vmatpush1.bf16.msra.mxu1 %v1772_v41  ;;  %2018 = vmatprep.subr.bf16.mxu0 %v1775_v42  ;;  %v1437_v41 = vld [vmem:[#allocation17 + $0x1228] sm:$0xff]  ;;  %v1435_v42 = vld [vmem:[#allocation17 + $0x1218] sm:$0xff] }
 0x649   :  { %2223 = vmatprep.subr.bf16.mxu1 %v1777_v51  ;;  %v1792_v51 = vpack.c.bf16 %v1430_v39, %v1426_v44  ;;  %v1795_v54 = vpack.c.bf16 %v1437_v41, %v1433_v40  ;;  %v1797_v59 = vpack.c.bf16 %v1439_v47, %v1435_v42  ;;  %v1471_v44 = vld [vmem:[#allocation17 + $0x1338] sm:$0xff]  ;;  %v1464_v41 = vld [vmem:[#allocation17 + $0x1300] sm:$0xff]  ;;  %v1466_v47 = vld [vmem:[#allocation17 + $0x1310] sm:$0xff] }
 0x64a   :  { %v1468_v42 = vld [vmem:[#allocation17 + $0x1320] sm:$0xff]  ;;  %v1813_v49 = vpack.c.bf16 %v1471_v44, %v1467_v55  ;;  %v2283_v44 = vld [vmem:[#allocation20 + $0x8] sm:$0xff] }
 0x64b   :  { %2019 = vmatpush1.bf16.msra.mxu0 %v1774_v53  ;;  %v1438_v53 = vld [vmem:[#allocation17 + $0x1230] sm:$0xff]  ;;  %v2282_v55 = vld [vmem:[#allocation20] sm:$0xff] }
 0x64c   :  { %2224 = vmatpush1.bf16.msra.mxu1 %v1776_v61  ;;  %2020 = vmatprep.subr.bf16.mxu0 %v1779_v62  ;;  %v1441_v61 = vld [vmem:[#allocation17 + $0x1248] sm:$0xff] }
 0x64d   :  { %2225 = vmatprep.subr.bf16.mxu1 %v1781_v3  ;;  %v1445_v62 = vld [vmem:[#allocation17 + $0x1268] sm:$0xff]  ;;  %v1796_v3 = vpack.c.bf16 %v1438_v53, %v1434_v58  ;;  %v1810_v58 = vpack.c.bf16 %v1468_v42, %v1464_v41  ;;  %v2300_v41 = vld [vmem:[#allocation20 + $0x90] sm:$0xff]  ;;  %v2301_v42 = vld [vmem:[#allocation20 + $0x98] sm:$0xff] }
 0x64e   :  { %v1799_v4 = vpack.c.bf16 %v1445_v62, %v1441_v61  ;;  %v1472_v61 = vld [vmem:[#allocation17 + $0x1340] sm:$0xff] }
 0x64f   :  { %2021 = vmatpush1.bf16.msra.mxu0 %v1778_v9  ;;  %v1446_v9 = vld [vmem:[#allocation17 + $0x1270] sm:$0xff]  ;;  %v1476_v62 = vld [vmem:[#allocation17 + $0x1360] sm:$0xff]  ;;  %v2786_v11 = vpop.eup %2785 }
 0x650   :  { %2226 = vmatpush1.bf16.msra.mxu1 %v1780_v10  ;;  %2022 = vmatprep.subr.bf16.mxu0 %v1783_v21  ;;  %v1449_v10 = vld [vmem:[#allocation17 + $0x1288] sm:$0xff]  ;;  %v1814_v6 = vpack.c.bf16 %v1476_v62, %v1472_v61  ;;  %v2351_v61 = vpack.c.bf16 %v2285_v57, %v2284_v56 }
 0x651   :  { %2227 = vmatprep.subr.bf16.mxu1 %v1785_v14  ;;  %v1453_v21 = vld [vmem:[#allocation17 + $0x12a8] sm:$0xff]  ;;  %v1800_v14 = vpack.c.bf16 %v1446_v9, %v1442_v7  ;;  %v1816_v7 = vpack.c.bf16 %v1478_v2, %v1474_v63  ;;  %v1480_v9 = vld [vmem:[#allocation17 + $0x1380] sm:$0xff] }
 0x652   :  { %v1803_v15 = vpack.c.bf16 %v1453_v21, %v1449_v10  ;;  %v1484_v10 = vld [vmem:[#allocation17 + $0x13a0] sm:$0xff]  ;;  %v1482_v21 = vld [vmem:[#allocation17 + $0x1390] sm:$0xff] }
 0x653   :  { %2023 = vmatpush1.bf16.msra.mxu0 %v1782_v18  ;;  %v1454_v18 = vld [vmem:[#allocation17 + $0x12b0] sm:$0xff]  ;;  %v2302_v63 = vld [vmem:[#allocation20 + $0xa0] sm:$0xff] }
 0x654   :  { %2228 = vmatpush1.bf16.msra.mxu1 %v1784_v24  ;;  %2024 = vmatprep.subr.bf16.mxu0 %v1787_v25  ;;  %v1457_v24 = vld [vmem:[#allocation17 + $0x12c8] sm:$0xff]  ;;  %v1804_v27 = vpack.c.bf16 %v1454_v18, %v1450_v17  ;;  %v1818_v17 = vpack.c.bf16 %v1484_v10, %v1480_v9 }
 0x655   :  { %2229 = vmatprep.subr.bf16.mxu1 %v1789_v26  ;;  %v1461_v25 = vld [vmem:[#allocation17 + $0x12e8] sm:$0xff]  ;;  %v1802_v26 = vpack.c.bf16 %v1452_v16, %v1448_v37  ;;  %v1491_v37 = vld [vmem:[#allocation17 + $0x13d8] sm:$0xff] }
 0x656   :  { %v1807_v29 = vpack.c.bf16 %v1461_v25, %v1457_v24  ;;  %v1495_v16 = vld [vmem:[#allocation17 + $0x13f8] sm:$0xff]  ;;  %v1488_v25 = vld [vmem:[#allocation17 + $0x13c0] sm:$0xff]  ;;  %v2319_v9 = vld [vmem:[#allocation20 + $0x128] sm:$0xff] }
 0x657   :  { %2025 = vmatpush1.bf16.msra.mxu0 %v1786_v33  ;;  %v1809_v33 = vpack.c.bf16 %v1463_v38, %v1459_v35  ;;  %v1492_v35 = vld [vmem:[#allocation17 + $0x13e0] sm:$0xff]  ;;  %v1490_v38 = vld [vmem:[#allocation17 + $0x13d0] sm:$0xff]  ;;  %v1825_v48 = vpack.c.bf16 %v1495_v16, %v1491_v37 }
 0x658   :  { %2230 = vmatpush1.bf16.msra.mxu1 %v1788_v34  ;;  %2026 = vmatprep.subr.bf16.mxu0 %v1791_v28  ;;  %v1462_v34 = vld [vmem:[#allocation17 + $0x12f0] sm:$0xff]  ;;  %v1465_v28 = vld [vmem:[#allocation17 + $0x1308] sm:$0xff]  ;;  %v2289_v37 = vld [vmem:[#allocation20 + $0x38] sm:$0xff] }
 0x659   :  { %2231 = vmatprep.subr.bf16.mxu1 %v1793_v46  ;;  %v1806_v46 = vpack.c.bf16 %v1460_v45, %v1456_v30  ;;  %v1808_v39 = vpack.c.bf16 %v1462_v34, %v1458_v32  ;;  %v1811_v40 = vpack.c.bf16 %v1469_v36, %v1465_v28  ;;  %v814_v30 = vmul.f32 0.5, %v3544_v13  ;;  %v2330_v45 = vld [vmem:[#allocation20 + $0x180] sm:$0xff]  ;;  %v2331_v32 = vld [vmem:[#allocation20 + $0x188] sm:$0xff] }
 0x65a   :  { %v2350_v13 = vpack.c.bf16 %v2283_v44, %v2282_v55  ;;  %v2334_v2 = vld [vmem:[#allocation20 + $0x1a0] sm:$0xff]  ;;  %v2340_v55 = vld [vmem:[#allocation20 + $0x1d0] sm:$0xff]  ;;  %v2343_v57 = vld [vmem:[#allocation20 + $0x1e8] sm:$0xff] }
 0x65b   :  { %2027 = vmatpush1.bf16.msra.mxu0 %v1790_v50  ;;  %v1470_v50 = vld [vmem:[#allocation17 + $0x1330] sm:$0xff] }
 0x65c   :  { %2232 = vmatpush1.bf16.msra.mxu1 %v1792_v51  ;;  %2028 = vmatprep.subr.bf16.mxu0 %v1795_v54  ;;  %v1473_v51 = vld [vmem:[#allocation17 + $0x1348] sm:$0xff] }
 0x65d   :  { %2233 = vmatprep.subr.bf16.mxu1 %v1797_v59  ;;  %v1477_v54 = vld [vmem:[#allocation17 + $0x1368] sm:$0xff]  ;;  %v1812_v59 = vpack.c.bf16 %v1470_v50, %v1466_v47  ;;  %v2332_v47 = vld [vmem:[#allocation20 + $0x190] sm:$0xff] }
 0x65e   :  { %v1815_v53 = vpack.c.bf16 %v1477_v54, %v1473_v51  ;;  %v2359_v54 = vpack.c.bf16 %v2301_v42, %v2300_v41 }
 0x65f   :  { %2029 = vmatpush1.bf16.msra.mxu0 %v1794_v60  ;;  %v1481_v60 = vld [vmem:[#allocation17 + $0x1388] sm:$0xff] }
 0x660   :  { %2234 = vmatpush1.bf16.msra.mxu1 %v1796_v3  ;;  %2030 = vmatprep.subr.bf16.mxu0 %v1799_v4  ;;  %v1485_v3 = vld [vmem:[#allocation17 + $0x13a8] sm:$0xff]  ;;  %v1483_v4 = vld [vmem:[#allocation17 + $0x1398] sm:$0xff] }
 0x661   :  { %2235 = vmatprep.subr.bf16.mxu1 %v1801_v8  ;;  %v1819_v8 = vpack.c.bf16 %v1485_v3, %v1481_v60  ;;  %v1821_v12 = vpack.c.bf16 %v1487_v5, %v1483_v4  ;;  %v2335_v3 = vld [vmem:[#allocation20 + $0x1a8] sm:$0xff]  ;;  %v2286_v4 = vld [vmem:[#allocation20 + $0x20] sm:$0xff] }
 0x662   :  { %v2287_v5 = vld [vmem:[#allocation20 + $0x28] sm:$0xff] }
 0x663   :  { %2031 = vmatpush1.bf16.msra.mxu0 %v1798_v52  ;;  %v1486_v52 = vld [vmem:[#allocation17 + $0x13b0] sm:$0xff] }
 0x664   :  { %2236 = vmatpush1.bf16.msra.mxu1 %v1800_v14  ;;  %2032 = vmatprep.subr.bf16.mxu0 %v1803_v15  ;;  %v1489_v14 = vld [vmem:[#allocation17 + $0x13c8] sm:$0xff]  ;;  %v1820_v18 = vpack.c.bf16 %v1486_v52, %v1482_v21  ;;  %v2304_v21 = vld [vmem:[#allocation20 + $0xb0] sm:$0xff] }
 0x665   :  { %2237 = vmatprep.subr.bf16.mxu1 %v1805_v31  ;;  %v1493_v15 = vld [vmem:[#allocation17 + $0x13e8] sm:$0xff]  ;;  %v844_v31 = vadd.f32 1.0, %v2786_v11  ;;  %v2305_v11 = vld [vmem:[#allocation20 + $0xb8] sm:$0xff] }
 0x666   :  { %v1823_v24 = vpack.c.bf16 %v1493_v15, %v1489_v14  ;;  %v2361_v52 = vpack.c.bf16 %v2305_v11, %v2304_v21  ;;  %v2337_v14 = vld [vmem:[#allocation20 + $0x1b8] sm:$0xff]  ;;  %v2288_v15 = vld [vmem:[#allocation20 + $0x30] sm:$0xff] }
 0x667   :  { %2033 = vmatpush1.bf16.msra.mxu0 %v1802_v26  ;;  %v1494_v26 = vld [vmem:[#allocation17 + $0x13f0] sm:$0xff]  ;;  %v854_v34 = vmul.f32 %v844_v31, %v814_v30  ;;  %v2329_v21 = vld [vmem:[#allocation20 + $0x178] sm:$0xff] }
 0x668   :  { %2238 = vmatpush1.bf16.msra.mxu1 %v1804_v27  ;;  %2034 = vmatprep.subr.bf16.mxu0 %v1807_v29  ;;  %v2298_v27 = vld [vmem:[#allocation20 + $0x80] sm:$0xff]  ;;  %v2299_v29 = vld [vmem:[#allocation20 + $0x88] sm:$0xff]  ;;  %v1824_v28 = vpack.c.bf16 %v1494_v26, %v1490_v38  ;;  %v2320_v31 = vld [vmem:[#allocation20 + $0x130] sm:$0xff] }
 0x669   :  { %2239 = vmatprep.subr.bf16.mxu1 %v1809_v33  ;;  %v1822_v33 = vpack.c.bf16 %v1492_v35, %v1488_v25  ;;  %v2358_v36 = vpack.c.bf16 %v2299_v29, %v2298_v27  ;;  %v1504_v50 = vpack.c.bf16 %v854_v34, %v854_v34  ;;  %v2306_v25 = vld [vmem:[#allocation20 + $0xc0] sm:$0xff]  ;;  %v2307_v35 = vld [vmem:[#allocation20 + $0xc8] sm:$0xff] }
 0x66a   :  { %v2338_v38 = vld [vmem:[#allocation20 + $0x1c0] sm:$0xff]  ;;  %v2339_v26 = vld [vmem:[#allocation20 + $0x1c8] sm:$0xff] }
 0x66b   :  { %2035 = vmatpush1.bf16.msra.mxu0 %v1806_v46  ;;  %v2314_v46 = vld [vmem:[#allocation20 + $0x100] sm:$0xff]  ;;  %v2291_v29 = vld [vmem:[#allocation20 + $0x48] sm:$0xff]  ;;  %v2378_v30 = vpack.c.bf16 %v2339_v26, %v2338_v38 }
 0x66c   :  { %2240 = vmatpush1.bf16.msra.mxu1 %v1808_v39  ;;  %2036 = vmatprep.subr.bf16.mxu0 %v1811_v40  ;;  %v2374_v39 = vpack.c.bf16 %v2331_v32, %v2330_v45  ;;  %v2315_v40 = vld [vmem:[#allocation20 + $0x108] sm:$0xff]  ;;  %v2290_v27 = vld [vmem:[#allocation20 + $0x40] sm:$0xff] }
 0x66d   :  { %2241 = vmatprep.subr.bf16.mxu1 %v1813_v49  ;;  %v2333_v49 = vld [vmem:[#allocation20 + $0x198] sm:$0xff]  ;;  %v2366_v51 = vpack.c.bf16 %v2315_v40, %v2314_v46  ;;  %v2354_v45 = vpack.c.bf16 %v2291_v29, %v2290_v27  ;;  %v2322_v32 = vld [vmem:[#allocation20 + $0x140] sm:$0xff] }
 0x66e   :  { %v2341_v46 = vld [vmem:[#allocation20 + $0x1d8] sm:$0xff] }
 0x66f   :  { %2037 = vmatpush1.bf16.msra.mxu0 %v1810_v58  ;;  %v2375_v58 = vpack.c.bf16 %v2333_v49, %v2332_v47  ;;  %v2293_v40 = vld [vmem:[#allocation20 + $0x58] sm:$0xff]  ;;  %v2379_v41 = vpack.c.bf16 %v2341_v46, %v2340_v55  ;;  %v2324_v47 = vld [vmem:[#allocation20 + $0x150] sm:$0xff] }
 0x670   :  { %2242 = vmatpush1.bf16.msra.mxu1 %v1812_v59  ;;  %2038 = vmatprep.subr.bf16.mxu0 %v1815_v53  ;;  %v2316_v59 = vld [vmem:[#allocation20 + $0x110] sm:$0xff]  ;;  %v2317_v53 = vld [vmem:[#allocation20 + $0x118] sm:$0xff] }
 0x671   :  { %2243 = vmatprep.subr.bf16.mxu1 %v1817_v0  ;;  %v2367_v62 = vpack.c.bf16 %v2317_v53, %v2316_v59  ;;  %v2303_v0 = vld [vmem:[#allocation20 + $0xa8] sm:$0xff]  ;;  %v2325_v49 = vld [vmem:[#allocation20 + $0x158] sm:$0xff] }
 0x672   :  { %v2360_v60 = vpack.c.bf16 %v2303_v0, %v2302_v63  ;;  %v2295_v59 = vld [vmem:[#allocation20 + $0x68] sm:$0xff] }
 0x673   :  { %2039 = vmatpush1.bf16.msra.mxu0 %v1814_v6  ;;  %v2376_v6 = vpack.c.bf16 %v2335_v3, %v2334_v2  ;;  %v2327_v63 = vld [vmem:[#allocation20 + $0x168] sm:$0xff]  ;;  %v2312_v2 = vld [vmem:[#allocation20 + $0xf0] sm:$0xff] }
 0x674   :  { %2244 = vmatpush1.bf16.msra.mxu1 %v1816_v7  ;;  %2040 = vmatprep.subr.bf16.mxu0 %v1819_v8  ;;  %v2352_v7 = vpack.c.bf16 %v2287_v5, %v2286_v4  ;;  %v2318_v8 = vld [vmem:[#allocation20 + $0x120] sm:$0xff]  ;;  %v2344_v3 = vld [vmem:[#allocation20 + $0x1f0] sm:$0xff]  ;;  %v2345_v5 = vld [vmem:[#allocation20 + $0x1f8] sm:$0xff] }
 0x675   :  { %2245 = vmatprep.subr.bf16.mxu1 %v1821_v12  ;;  %v2368_v10 = vpack.c.bf16 %v2319_v9, %v2318_v8  ;;  %v2336_v12 = vld [vmem:[#allocation20 + $0x1b0] sm:$0xff]  ;;  %v2381_v8 = vpack.c.bf16 %v2345_v5, %v2344_v3 }
 0x676   :  { %v2377_v16 = vpack.c.bf16 %v2337_v14, %v2336_v12  ;;  %v1826_v12 = vld [vmem:[#allocation19] sm:$0xf]  ;;  %v2482_v5 = vld [vmem:[%s3631_s16 + $0x38] sm:$0xff] }
 0x677   :  { %2041 = vmatpush1.bf16.msra.mxu0 %v1818_v17  ;;  %v2353_v17 = vpack.c.bf16 %v2289_v37, %v2288_v15  ;;  %v1839_v14 = vrot.slane %v1826_v12, %v548_v43  ;;  %v1835_v15 = vrot.slane %v1826_v12, %v3466_v22  ;;  %v1843_v37 = vrot.slane %v1826_v12, %v552_v23 }
 0x678   :  { %2246 = vmatpush1.bf16.msra.mxu1 %v1820_v18  ;;  %2042 = vmatprep.subr.bf16.mxu0 %v1823_v24  ;;  %v2321_v18 = vld [vmem:[#allocation20 + $0x138] sm:$0xff] }
 0x679   :  { %2247 = vmatprep.subr.bf16.mxu1 %v1825_v48  ;;  %v2369_v24 = vpack.c.bf16 %v2321_v18, %v2320_v31  ;;  %v2362_v48 = vpack.c.bf16 %v2307_v35, %v2306_v25 }
 0x67b   :  { %2043 = vmatpush1.bf16.msra.mxu0 %v1822_v33  ;;  %v2323_v33 = vld [vmem:[#allocation20 + $0x148] sm:$0xff] }
 0x67c   :  { %2248 = vmatpush1.bf16.msra.mxu1 %v1824_v28  ;;  %2596 = vmatprep.subr.bf16.mxu0 %v2358_v36  ;;  %v2370_v34 = vpack.c.bf16 %v2323_v33, %v2322_v32  ;;  %v2308_v28 = vld [vmem:[#allocation20 + $0xd0] sm:$0xff]  ;;  %v2309_v36 = vld [vmem:[#allocation20 + $0xd8] sm:$0xff] }
 0x67d   :  { %2618 = vmatprep.subr.bf16.mxu1 %v2374_v39  ;;  %v2363_v44 = vpack.c.bf16 %v2309_v36, %v2308_v28  ;;  %v2292_v39 = vld [vmem:[#allocation20 + $0x50] sm:$0xff] }
 0x67e   :  { %2045 = vmatmul.mubr.bf16.vlgmr.msra.gmra.mrb[12].mxu0 %v1504_v50  ;;  %v2355_v42 = vpack.c.bf16 %v2293_v40, %v2292_v39 }
 0x67f   :  { %2250 = vmatmul.mubr.bf16.vlgmr.msra.gmra.mrb[24].mxu1 %v1504_v50  ;;  %2597 = vmatpush3.bf16.msra.mxu0 %v2350_v13  ;;  %v2371_v13 = vpack.c.bf16 %v2325_v49, %v2324_v47  ;;  %v2310_v50 = vld [vmem:[#allocation20 + $0xe0] sm:$0xff] }
 0x680   :  { %2619 = vmatpush3.bf16.msra.mxu1 %v2366_v51  ;;  %2598 = vmatprep.subr.bf16.mxu0 %v2359_v54  ;;  %v2311_v51 = vld [vmem:[#allocation20 + $0xe8] sm:$0xff]  ;;  %v2342_v54 = vld [vmem:[#allocation20 + $0x1e0] sm:$0xff] }
 0x681   :  { %2620 = vmatprep.subr.bf16.mxu1 %v2375_v58  ;;  %v2364_v56 = vpack.c.bf16 %v2311_v51, %v2310_v50  ;;  %v2294_v58 = vld [vmem:[#allocation20 + $0x60] sm:$0xff]  ;;  %v2380_v53 = vpack.c.bf16 %v2343_v57, %v2342_v54 }
 0x682   :  { %v2476_v50 = vld [vmem:[%s3631_s16 + $0x8] sm:$0xff] }
 0x683   :  { %2599 = vmatpush3.bf16.msra.mxu0 %v2351_v61  ;;  %v2356_v61 = vpack.c.bf16 %v2295_v59, %v2294_v58 }
 0x684   :  { %2621 = vmatpush3.bf16.msra.mxu1 %v2367_v62  ;;  %2600 = vmatprep.subr.bf16.mxu0 %v2360_v60  ;;  %v2326_v62 = vld [vmem:[#allocation20 + $0x160] sm:$0xff]  ;;  %v2313_v60 = vld [vmem:[#allocation20 + $0xf8] sm:$0xff] }
 0x685   :  { %2622 = vmatprep.subr.bf16.mxu1 %v2376_v6  ;;  %v2372_v0 = vpack.c.bf16 %v2327_v63, %v2326_v62  ;;  %v2365_v4 = vpack.c.bf16 %v2313_v60, %v2312_v2  ;;  %v2296_v6 = vld [vmem:[#allocation20 + $0x70] sm:$0xff]  ;;  %v2477_v62 = vld [vmem:[%s3631_s16 + $0x10] sm:$0xff]  ;;  %v2480_v60 = vld [vmem:[%s3631_s16 + $0x28] sm:$0xff] }
 0x686   :  { %v2478_v63 = vld [vmem:[%s3631_s16 + $0x18] sm:$0xff]  ;;  %v2479_v2 = vld [vmem:[%s3631_s16 + $0x20] sm:$0xff] }
 0x687   :  { %2601 = vmatpush3.bf16.msra.mxu0 %v2352_v7  ;;  %v2297_v7 = vld [vmem:[#allocation20 + $0x78] sm:$0xff]  ;;  %v2494_v3 = vpack.c.bf16 %v2480_v60, %v2479_v2 }
 0x688   :  { %2623 = vmatpush3.bf16.msra.mxu1 %v2368_v10  ;;  %2602 = vmatprep.subr.bf16.mxu0 %v2361_v52  ;;  %v2357_v9 = vpack.c.bf16 %v2297_v7, %v2296_v6  ;;  %v2328_v10 = vld [vmem:[#allocation20 + $0x170] sm:$0xff]  ;;  %v1831_v52 = vrot.slane %v1826_v12, %v3458_v20 }
 0x689   :  { %2624 = vmatprep.subr.bf16.mxu1 %v2377_v16  ;;  %v2373_v11 = vpack.c.bf16 %v2329_v21, %v2328_v10  ;;  %v2483_v7 = vld [vmem:[%s3631_s16 + $0x40] sm:$0xff]  ;;  %v2485_v10 = vld [vmem:[%s3631_s16 + $0x50] sm:$0xff]  ;;  %v2486_v21 = vld [vmem:[%s3631_s16 + $0x58] sm:$0xff] }
 0x68a   :  { %v2487_v12 = vld [vmem:[%s3631_s16 + $0x60] sm:$0xff] }
 0x68b   :  { %2603 = vmatpush3.bf16.msra.mxu0 %v2353_v17 }
 0x68c   :  { %2625 = vmatpush3.bf16.msra.mxu1 %v2369_v24  ;;  %2604 = vmatprep.subr.bf16.mxu0 %v2362_v48 }
 0x68d   :  { %2626 = vmatprep.subr.bf16.mxu1 %v2378_v30 }
 0x68f   :  { %2605 = vmatpush3.bf16.msra.mxu0 %v2354_v45 }
 0x690   :  { %2627 = vmatpush3.bf16.msra.mxu1 %v2370_v34  ;;  %2606 = vmatprep.subr.bf16.mxu0 %v2363_v44 }
 0x691   :  { %2628 = vmatprep.subr.bf16.mxu1 %v2379_v41 }
 0x693   :  { %2607 = vmatpush3.bf16.msra.mxu0 %v2355_v42 }
 0x694   :  { %2629 = vmatpush3.bf16.msra.mxu1 %v2371_v13  ;;  %2608 = vmatprep.subr.bf16.mxu0 %v2364_v56  ;;  %v2475_v13 = vld [vmem:[%s3631_s16] sm:$0xff] }
 0x695   :  { %2630 = vmatprep.subr.bf16.mxu1 %v2380_v53  ;;  %v2492_v58 = vpack.c.bf16 %v2476_v50, %v2475_v13 }
 0x697   :  { %2609 = vmatpush3.bf16.msra.mxu0 %v2356_v61 }
 0x698   :  { %2631 = vmatpush3.bf16.msra.mxu1 %v2372_v0  ;;  %2610 = vmatprep.subr.bf16.mxu0 %v2365_v4  ;;  %v2493_v0 = vpack.c.bf16 %v2478_v63, %v2477_v62  ;;  %v2481_v4 = vld [vmem:[%s3631_s16 + $0x30] sm:$0xff] }
 0x699   :  { %2632 = vmatprep.subr.bf16.mxu1 %v2381_v8  ;;  %v2495_v6 = vpack.c.bf16 %v2482_v5, %v2481_v4  ;;  %v2484_v8 = vld [vmem:[%s3631_s16 + $0x48] sm:$0xff] }
 0x69b   :  { %2611 = vmatpush3.bf16.msra.mxu0 %v2357_v9  ;;  %v2496_v9 = vpack.c.bf16 %v2484_v8, %v2483_v7 }
 0x69c   :  { %2633 = vmatpush3.bf16.msra.mxu1 %v2373_v11  ;;  %2685 = vmatprep.subr.bf16.mxu0 %v3121_v1  ;;  %v2497_v11 = vpack.c.bf16 %v2486_v21, %v2485_v10 }
 0x751   :  { %v2046_v16 = vpop.f32.mrb[12].mxu0 }
 0x752   :  { %v2705_v17 = vadd.f32 %v2046_v16, %v1831_v52  ;;  %v2251_v31 = vpop.f32.mrb[24].mxu1  ;;  %v2048_v18 = vpop.f32.mrb[13].mxu0  ;;  %v2488_v52 = vld [vmem:[%s3631_s16 + $0x68] sm:$0xff] }
 0x753   :  { %v2707_v24 = vadd.f32 %v2251_v31, %v1839_v14  ;;  %v2706_v25 = vadd.f32 %v2048_v18, %v1835_v15  ;;  %v2253_v35 = vpop.f32.mrb[25].mxu1  ;;  %v2050_v38 = vpop.f32.mrb[14].mxu0  ;;  %v2498_v14 = vpack.c.bf16 %v2488_v52, %v2487_v12  ;;  %v2489_v15 = vld [vmem:[%s3631_s16 + $0x70] sm:$0xff]  ;;  %v2580_v18 = vld [vmem:[#allocation22] ss:$0 sm:$0xff] }
 0x754   :  { %v2258_v48 = vmul.f32 0.999995, %v2705_v17  ;;  %v2708_v26 = vadd.f32 %v2253_v35, %v1843_v37  ;;  %v2255_v27 = vpop.f32.mrb[26].mxu1  ;;  %v2051_v20 = vpop.f32.mrb[15].mxu0  ;;  %v2490_v37 = vld [vmem:[%s3631_s16 + $0x78] sm:$0xff] }
 0x755   :  { %v2260_v29 = vmul.f32 0.999995, %v2707_v24  ;;  %v2259_v30 = vmul.f32 0.999995, %v2706_v25  ;;  %v2256_v43 = vpop.f32.mrb[27].mxu1  ;;  %v2499_v16 = vpack.c.bf16 %v2490_v37, %v2489_v15 }
 0x756   :  { %v2266_v45 = vmul.f32 0.70710677, %v2258_v48  ;;  %v2261_v22 = vmul.f32 0.999995, %v2708_v26  ;;  %v2262_v55 = vmul.f32 0.5, %v2258_v48 }
 0x757   :  { %v2268_v32 = vmul.f32 0.70710677, %v2260_v29  ;;  %v2267_v19 = vmul.f32 0.70710677, %v2259_v30  ;;  %v2264_v39 = vmul.f32 0.5, %v2260_v29  ;;  %v2263_v40 = vmul.f32 0.5, %v2259_v30 }
 0x758   :  { %2787 = verf.f32 %v2266_v45  ;;  %v2269_v23 = vmul.f32 0.70710677, %v2261_v22  ;;  %v2265_v47 = vmul.f32 0.5, %v2261_v22 }
 0x759   :  { %2789 = verf.f32 %v2268_v32 }
 0x75a   :  { %2791 = verf.f32 %v2267_v19 }
 0x75b   :  { %2793 = verf.f32 %v2269_v23 }
 0x762   :  { %v2788_v33 = vpop.eup %2787 }
 0x763   :  { %v2790_v34 = vpop.eup %2789  ;;  %v2274_v28 = vadd.f32 1.0, %v2788_v33  ;;  %v2581_v33 = vld [vmem:[#allocation2] ss:$0 sm:$0xff] }
 0x764   :  { %v2792_v36 = vpop.eup %2791  ;;  %v2276_v44 = vadd.f32 1.0, %v2790_v34 }
 0x765   :  { %v2794_v46 = vpop.eup %2793  ;;  %v2275_v41 = vadd.f32 1.0, %v2792_v36  ;;  %v2278_v42 = vmul.f32 %v2274_v28, %v2262_v55 }
 0x766   :  { %v2277_v49 = vadd.f32 1.0, %v2794_v46  ;;  %v2280_v51 = vmul.f32 %v2276_v44, %v2264_v39 }
 0x767   :  { %v2279_v54 = vmul.f32 %v2275_v41, %v2263_v40  ;;  %v2346_v59 = vpack.c.bf16 %v2278_v42, %v2278_v42 }
 0x768   :  { %v2281_v56 = vmul.f32 %v2277_v49, %v2265_v47  ;;  %v2348_v61 = vpack.c.bf16 %v2280_v51, %v2280_v51 }
 0x769   :  { %v2347_v57 = vpack.c.bf16 %v2279_v54, %v2279_v54 }
 0x76a   :  { %v2349_v53 = vpack.c.bf16 %v2281_v56, %v2281_v56 }
 0x76b   :  { %2421 = vmatprep.mubr.bf16.mxu0 %v2347_v57 }
 0x76c   :  { %2461 = vmatprep.mubr.bf16.mxu1 %v2349_v53  ;;  %2422 = vmatmul.mubr.bf16.vlgmr.msra.gmra.mrb[16].mxu0 %v2346_v59 }
 0x76d   :  { %2462 = vmatmul.mubr.bf16.vlgmr.msra.gmra.mrb[28].mxu1 %v2348_v61  ;;  %2686 = vmatpush3.bf16.msra.mxu0 %v2492_v58 }
 0x76e   :  { %2687 = vmatprep.subr.bf16.mxu0 %v3121_v1  ;;  %2701 = vmatprep.mubr.msk.bf16.mxu0 %vm3122_vm0, %v3121_v1 }
 0x771   :  { %2688 = vmatpush3.bf16.msra.mxu0 %v2493_v0 }
 0x772   :  { %2689 = vmatprep.subr.bf16.mxu0 %v3121_v1 }
 0x775   :  { %2690 = vmatpush3.bf16.msra.mxu0 %v2494_v3 }
 0x776   :  { %2691 = vmatprep.subr.bf16.mxu0 %v3121_v1 }
 0x779   :  { %2692 = vmatpush3.bf16.msra.mxu0 %v2495_v6 }
 0x77a   :  { %2693 = vmatprep.subr.bf16.mxu0 %v3121_v1 }
 0x77d   :  { %2694 = vmatpush3.bf16.msra.mxu0 %v2496_v9 }
 0x77e   :  { %2695 = vmatprep.subr.bf16.mxu0 %v3121_v1 }
 0x781   :  { %2696 = vmatpush3.bf16.msra.mxu0 %v2497_v11 }
 0x782   :  { %2697 = vmatprep.subr.bf16.mxu0 %v3121_v1 }
 0x785   :  { %2698 = vmatpush3.bf16.msra.mxu0 %v2498_v14 }
 0x786   :  { %2699 = vmatprep.subr.bf16.mxu0 %v3121_v1 }
 0x789   :  { %2700 = vmatpush3.bf16.msra.mxu0 %v2499_v16 }
 0x83f   :  { %v2612_v17 = vpop.f32.mrb[16].mxu0 }
 0x840   :  { %v2634_v31 = vpop.f32.mrb[28].mxu1  ;;  %v2613_v24 = vpop.f32.mrb[17].mxu0 }
 0x841   :  { %v2614_v25 = vadd.f32 %v2613_v24, %v2612_v17  ;;  %v2635_v35 = vpop.f32.mrb[29].mxu1  ;;  %v2615_v38 = vpop.f32.mrb[18].mxu0 }
 0x842   :  { %v2636_v48 = vadd.f32 %v2635_v35, %v2634_v31  ;;  %v2637_v26 = vpop.f32.mrb[30].mxu1  ;;  %v2616_v1 = vpop.f32.mrb[19].mxu0 }
 0x843   :  { %v2424_v27 = vadd.f32 %v2614_v25, %v2580_v18  ;;  %v2638_v20 = vpop.f32.mrb[31].mxu1 }
 0x845   :  { %v2464_v29 = vadd.f32 %v2636_v48, %v2424_v27 }
 0x847   :  { %v2469_v30 = vmul.f32 0.999995, %v2464_v29 }
 0x849   :  { %v2471_v43 = vmul.f32 0.70710677, %v2469_v30  ;;  %v2470_v22 = vmul.f32 0.5, %v2469_v30 }
 0x84b   :  { %2795 = verf.f32 %v2471_v43 }
 0x855   :  { %v2796_v45 = vpop.eup %2795 }
 0x856   :  { %v2473_v32 = vadd.f32 1.0, %v2796_v45 }
 0x858   :  { %v2474_v19 = vmul.f32 %v2473_v32, %v2470_v22 }
 0x85a   :  { %v2491_v23 = vpack.c.bf16 %v2474_v19, %v2474_v19 }
 0x85c   :  { %2702 = vmatmul.mubr.bf16.vlgmr.msra.gmra.mrb[20].mxu0 %v2491_v23 }
 0x92f   :  { %v2541_v34 = vpop.f32.mrb[20].mxu0 }
 0x930   :  { %v2542_v28 = vadd.f32 %v2581_v33, %v2541_v34  ;;  %v2703_v36 = vpop.f32.mrb[21].mxu0 }
 0x931   :  { %v2544_v55 = vpop.f32.mrb[22].mxu0 }
 0x932   :  { %v2547_v44 = vmul.f32 0.999995, %v2542_v28  ;;  %v2704_v46 = vpop.f32.mrb[23].mxu0 }
 0x934   :  { %v2548_v39 = vsub.f32 0.0, %v2547_v44 }
 0x936   :  { %v2549_v40 = vmul.f32 1.442695, %v2548_v39 }
 0x938   :  { %2797 = vpow2.f32 %v2549_v40 }
 0x942   :  { %v2798_v41 = vpop.eup %2797 }
 0x943   :  { %v2551_v42 = vadd.f32 1.0, %v2798_v41 }
 0x945   :  { %2799 = vrcp.f32 %v2551_v42 }
 0x94f   :  { %v2800_v47 = vpop.eup %2799 }
 0x950   :  { %2555 = vst.msk [vmem:[%s3633_s18] sm:$0x3] %vm2554_vm3, %v2800_v47 }
 0x951   :  { %2560 = vsyncpa [#allocation4], 1 }
 0x952   :  { %2561 = vsyncpa [#allocation6], 1 }
 0x953   :  { %2562 = vsyncpa [#allocation9], 1 }
 0x954   :  { %2563 = vsyncpa [#allocation12], 1 }
 0x955   :  { %2564 = vsyncpa [#allocation15], 1 }
 0x956   :  { %2565 = vsyncpa [#allocation18], 1 }
 0x957   :  { %2566 = vsyncpa [#allocation21], 1 }

</bundles_post_ra>
